<compile_context>
chip_gen: v5e
topology: v5e:2x2
jax: 0.10.0
libtpu: 0.0.40
codegen_flags: <defaults>
</compile_context>

<pallas_src>
import functools
import math

import jax
import jax.numpy as jnp
from jax.experimental import pallas as pl
from jax.experimental.pallas import tpu as pltpu


def _rff_kernel(xi_ref, xj_ref, w_ref, o_ref, *, scale2):
    # xi_ref, xj_ref: (tn, D); w_ref: (S, D) grid-invariant, resident in VMEM;
    # o_ref: (1, tn) lane-dense output row slice.
    d = xi_ref[...] - xj_ref[...]                        # VPU subtract, (tn, D)
    p = jax.lax.dot_general(                             # MXU, (S, tn), f32 acc
        w_ref[...], d,
        (((1,), (1,)), ((), ())),
        preferred_element_type=jnp.float32,
    )
    # EUP cos + sublane reduce over S; result is already lane-dense (1, tn).
    o_ref[...] = scale2 * jnp.sum(jnp.cos(p), axis=0, keepdims=True)


def _choose_row_tile(n, row_tile):
    """Pick the per-step row tile.

    Tiny problems get one full-extent block (no grid overhead). Larger
    problems get 128-aligned tiles sized so there are at least 2 grid steps
    (lets the 'parallel' axis shard across both v7x TensorCores).
    """
    if n <= 256:
        return n                                   # full-extent block: always legal
    half = pl.cdiv(pl.cdiv(n, 2), 128) * 128       # >= 2 steps, 128-aligned
    return max(128, min(int(row_tile), half))


def rff_forward(x_i, x_j, w, *, row_tile=2048):
    """k[n] = sum_f rff(x_i)[n, f] * rff(x_j)[n, f]; returns shape (N,) float32."""
    N, D = x_i.shape
    S, Dw = w.shape
    assert Dw == D and x_j.shape == (N, D)

    x_i = x_i.astype(jnp.float32)
    x_j = x_j.astype(jnp.float32)
    w = w.astype(jnp.float32)

    tn = _choose_row_tile(N, row_tile)
    grid = pl.cdiv(N, tn)

    kernel = functools.partial(_rff_kernel, scale2=2.0 / float(S))

    cost = pl.CostEstimate(
        flops=2 * N * D * S,
        transcendentals=N * S,
        bytes_accessed=2 * N * D * 4 + N * 4 + S * D * 4,
    )

    out = pl.pallas_call(
        kernel,
        out_shape=jax.ShapeDtypeStruct((1, N), jnp.float32),
        grid_spec=pltpu.PrefetchScalarGridSpec(
            num_scalar_prefetch=0,
            grid=(grid,),
            in_specs=[
                pl.BlockSpec((tn, D), lambda i: (i, 0)),
                pl.BlockSpec((tn, D), lambda i: (i, 0)),
                pl.BlockSpec((S, D), lambda i: (0, 0)),     # w stays resident across the grid
            ],
            out_specs=pl.BlockSpec((1, tn), lambda i: (0, i)),  # lane-dense output row
        ),
        compiler_params=pltpu.CompilerParams(
            dimension_semantics=("parallel",),
        ),
        cost_estimate=cost,
    )(x_i, x_j, w)
    return out[0]


if __name__ == "__main__":
    num_samples = 128   # S
    num_dims = 32       # D

    key = jax.random.PRNGKey(0)
    kw, kb, ki, kj = jax.random.split(key, 4)

    # Deterministic parameter init (shapes match the torch module's __init__).
    w = jax.random.normal(kw, (num_samples, num_dims), dtype=jnp.float32)
    b = jax.random.uniform(kb, (num_samples, 1), dtype=jnp.float32,
                           minval=0.0, maxval=2.0 * math.pi)   # unused in forward (mirrors torch module)

    def reference(x_i, x_j, w):
        scale = math.sqrt(2.0 / num_samples)
        pi = x_i @ w.T
        pj = x_j @ w.T
        fi = scale * jnp.concatenate([jnp.cos(pi), jnp.sin(pi)], axis=1)
        fj = scale * jnp.concatenate([jnp.cos(pj), jnp.sin(pj)], axis=1)
        return jnp.sum(fi * fj, axis=1)

    # Case 1: tiny N -> single full-extent block (no grid overhead).
    N = 8
    x_i = jax.random.normal(ki, (N, num_dims), dtype=jnp.float32)
    x_j = jax.random.normal(kj, (N, num_dims), dtype=jnp.float32)
    k = jax.block_until_ready(rff_forward(x_i, x_j, w))
    assert k.shape == (N,)
    assert jnp.allclose(k, reference(x_i, x_j, w), atol=1e-5, rtol=1e-5)

    # Case 2: ragged N -> >=2 grid steps, partial last block handled by Pallas
    # masking (no wrapper-side jnp.pad of the inputs).
    N2 = 300
    ki2, kj2 = jax.random.split(jax.random.PRNGKey(1))
    x_i2 = jax.random.normal(ki2, (N2, num_dims), dtype=jnp.float32)
    x_j2 = jax.random.normal(kj2, (N2, num_dims), dtype=jnp.float32)
    k2 = jax.block_until_ready(rff_forward(x_i2, x_j2, w))
    assert k2.shape == (N2,)
    assert jnp.allclose(k2, reference(x_i2, x_j2, w), atol=1e-5, rtol=1e-5)

    print("KERNEL_OK")
</pallas_src>

<mosaic_0001>
module attributes {stable_mosaic.version = 11 : i64} {
  func.func @_rff_kernel(%arg0: i32, %arg1: memref<8x32xf32, #tpu.memory_space<vmem>>, %arg2: memref<8x32xf32, #tpu.memory_space<vmem>>, %arg3: memref<128x32xf32, #tpu.memory_space<vmem>>, %arg4: memref<1x8xf32, #tpu.memory_space<vmem>>) attributes {dimension_semantics = [#tpu.dimension_semantics<parallel>], iteration_bounds = array<i64: 1>, scalar_prefetch = 0 : i64, scratch_operands = 0 : i64, tpu.core_type = #tpu.core_type<tc>, window_params = [{transform_indices = @transform_0, window_bounds = array<i64: 8, 32>}, {transform_indices = @transform_1, window_bounds = array<i64: 8, 32>}, {pipeline_mode = #tpu.pipeline_mode<synchronous>, transform_indices = @transform_2, window_bounds = array<i64: 128, 32>}, {transform_indices = @transform_3, window_bounds = array<i64: 1, 8>}]} {
    %c0 = arith.constant 0 : index
    %c0_0 = arith.constant 0 : index
    %0 = vector.load %arg1[%c0, %c0_0] : memref<8x32xf32, #tpu.memory_space<vmem>>, vector<8x32xf32>
    %c0_1 = arith.constant 0 : index
    %c0_2 = arith.constant 0 : index
    %1 = vector.load %arg2[%c0_1, %c0_2] : memref<8x32xf32, #tpu.memory_space<vmem>>, vector<8x32xf32>
    %2 = arith.subf %0, %1 : vector<8x32xf32>
    %c0_3 = arith.constant 0 : index
    %c0_4 = arith.constant 0 : index
    %3 = vector.load %arg3[%c0_3, %c0_4] : memref<128x32xf32, #tpu.memory_space<vmem>>, vector<128x32xf32>
    %cst = arith.constant dense<0.000000e+00> : vector<128x8xf32>
    %4 = tpu.matmul %3, %2, %cst {dimension_numbers = #tpu.dot_dimension_numbers<[1], [1], [0], [0], [0, 0, 1, 0], [], []>} : vector<128x32xf32>, vector<8x32xf32>, vector<128x8xf32> -> vector<128x8xf32>
    %5 = math.cos %4 : vector<128x8xf32>
    %cst_5 = arith.constant dense<0.000000e+00> : vector<8xf32>
    %6 = vector.multi_reduction <add>, %5, %cst_5 [0] : vector<128x8xf32> to vector<8xf32>
    %7 = vector.shape_cast %6 : vector<8xf32> to vector<1x8xf32>
    %cst_6 = arith.constant 1.562500e-02 : f32
    %8 = vector.broadcast %cst_6 : f32 to vector<1x8xf32>
    %9 = arith.mulf %8, %7 : vector<1x8xf32>
    %c0_7 = arith.constant 0 : index
    %c0_8 = arith.constant 0 : index
    %10 = vector.load %arg4[%c0_7, %c0_8] : memref<1x8xf32, #tpu.memory_space<vmem>>, vector<1x8xf32>
    tpu.vector_store %arg4[%c0_7, %c0_8], %9 {strides = array<i32>} : memref<1x8xf32, #tpu.memory_space<vmem>>, vector<1x8xf32>,
    return
  }
  func.func @transform_0(%arg0: i32) -> (i32, i32) {
    %c0_i32 = arith.constant 0 : i32
    %c0_i32_0 = arith.constant 0 : i32
    return %arg0, %c0_i32 : i32, i32
  }
  func.func @transform_1(%arg0: i32) -> (i32, i32) {
    %c0_i32 = arith.constant 0 : i32
    %c0_i32_0 = arith.constant 0 : i32
    return %arg0, %c0_i32 : i32, i32
  }
  func.func @transform_2(%arg0: i32) -> (i32, i32) {
    %c0_i32 = arith.constant 0 : i32
    %c0_i32_0 = arith.constant 0 : i32
    %c0_i32_1 = arith.constant 0 : i32
    return %c0_i32, %c0_i32_0 : i32, i32
  }
  func.func @transform_3(%arg0: i32) -> (i32, i32) {
    %c0_i32 = arith.constant 0 : i32
    %c0_i32_0 = arith.constant 0 : i32
    return %c0_i32, %arg0 : i32, i32
  }
}

</mosaic_0001>

<bundles_post_ra>
// kernel: tpu_custom_call.1
= control target key start
LH: loop header
LB: loop body
LE: loop exit
PB: predicated region body
PF: predicated region fallthrough
CT: control target
= control target key end

     0   :  { %8 = vsyncpa [#allocation3], 0  ;;  %vm34_vm0 = vcmask 261120   ;;  %v5819_v31 = vmov 683565275   ;;  %s5800_s0 = inlined_call_operand.vmem [shape: f32[8,32], index: 0, kind: input, shape index: {}]   ;;  %s5801_s1 = inlined_call_operand.vmem [shape: f32[8,32], index: 1, kind: input, shape index: {}]   ;;  %s5802_s2 = inlined_call_operand.vmem [shape: f32[128,32], index: 2, kind: input, shape index: {}]   ;;  %s5803_s3 = inlined_call_operand.hbm [shape: f32[1,8], index: 3, kind: output, shape index: {}]  }
   0x1   :  { %v15_v0 = vld [vmem:[%s5800_s0] sm:$0xff]  ;;  %v19_v7 = vld [vmem:[%s5802_s2 + $0x8] sm:$0xff]  ;;  %v20_v11 = vld [vmem:[%s5802_s2 + $0x10] sm:$0xff]  ;;  %v5810_v33 = vmov 2475754826  }
   0x2   :  { %v16_v1 = vld [vmem:[%s5801_s1] sm:$0xff]  ;;  %v23_v8 = vld [vmem:[%s5802_s2 + $0x28] sm:$0xff]  ;;  %v24_v12 = vld [vmem:[%s5802_s2 + $0x30] sm:$0xff]  ;;  %v5813_v36 = vmov 2131351028   ;;  %s2663_s1 = sshll.u32 %s5803_s3, 4  ;;  %s2664_s1 = int_to_ptr.hbm [resolvable:$true] %s2663_s1 }
   0x3   :  { %v17_v2 = vsub.f32 %v15_v0, %v16_v1  ;;  %v18_v3 = vld [vmem:[%s5802_s2] sm:$0xff]  ;;  %v27_v9 = vld [vmem:[%s5802_s2 + $0x48] sm:$0xff]  ;;  %v28_v13 = vld [vmem:[%s5802_s2 + $0x50] sm:$0xff]  ;;  %v5825_v39 = vmov 2102212464  }
   0x4   :  { %v22_v4 = vld [vmem:[%s5802_s2 + $0x20] sm:$0xff]  ;;  %v31_v10 = vld [vmem:[%s5802_s2 + $0x68] sm:$0xff]  ;;  %v32_v14 = vld [vmem:[%s5802_s2 + $0x70] sm:$0xff]  ;;  %v5806_v42 = vmov 920167782  }
   0x5   :  { %2672 = vmatpush.xpose.msk.msra.mxu0 %vm34_vm0, %v17_v2  ;;  %2737 = vmatpush.xpose.msk.msra.mxu1 %vm34_vm0, %v17_v2  ;;  %v26_v5 = vld [vmem:[%s5802_s2 + $0x40] sm:$0xff]  ;;  %v21_v15 = vld [vmem:[%s5802_s2 + $0x18] sm:$0xff]  ;;  %v5808_v45 = vmov 1326507024  }
   0x6   :  { %2738 = vmatpush.xpose.msk.msra.mxu2 %vm34_vm0, %v17_v2  ;;  %2739 = vmatpush.xpose.msk.msra.mxu3 %vm34_vm0, %v17_v2  ;;  %v30_v6 = vld [vmem:[%s5802_s2 + $0x60] sm:$0xff]  ;;  %v25_v16 = vld [vmem:[%s5802_s2 + $0x38] sm:$0xff] }
   0x7   :  { %v29_v17 = vld [vmem:[%s5802_s2 + $0x58] sm:$0xff] }
   0x8   :  { %2673 = vmatmul.msk.f32.vlgmr.msra.gmra.mxu0 %vm34_vm0, %v18_v3  ;;  %2677 = vmatmul.msk.f32.vlgmr.msra.gmra.mxu1 %vm34_vm0, %v22_v4  ;;  %v33_v18 = vld [vmem:[%s5802_s2 + $0x78] sm:$0xff]  ;;  %s2781_s2 = smov [#allocation2]  }
   0x9   :  { %2681 = vmatmul.msk.f32.vlgmr.msra.gmra.mxu2 %vm34_vm0, %v26_v5  ;;  %2685 = vmatmul.msk.f32.vlgmr.msra.gmra.mxu3 %vm34_vm0, %v30_v6  ;;  %s2661_s19 = sshll.u32 %s2781_s2, 4  ;;  %s2662_s19 = int_to_ptr.vmem [resolvable:$true] %s2661_s19 }
  0x10   :  { %2674 = vmatmul.msk.f32.gmra.mxu0 %vm34_vm0, %v19_v7  ;;  %2678 = vmatmul.msk.f32.gmra.mxu1 %vm34_vm0, %v23_v8 }
  0x11   :  { %2682 = vmatmul.msk.f32.gmra.mxu2 %vm34_vm0, %v27_v9  ;;  %2686 = vmatmul.msk.f32.gmra.mxu3 %vm34_vm0, %v31_v10 }
  0x18   :  { %2675 = vmatmul.msk.f32.gmra.mxu0 %vm34_vm0, %v20_v11  ;;  %2679 = vmatmul.msk.f32.gmra.mxu1 %vm34_vm0, %v24_v12 }
  0x19   :  { %2683 = vmatmul.msk.f32.gmra.mxu2 %vm34_vm0, %v28_v13  ;;  %2687 = vmatmul.msk.f32.gmra.mxu3 %vm34_vm0, %v32_v14 }
  0x20   :  { %2676 = vmatmul.msk.f32.gmra.mxu0 %vm34_vm0, %v21_v15  ;;  %2680 = vmatmul.msk.f32.gmra.mxu1 %vm34_vm0, %v25_v16 }
  0x21   :  { %2684 = vmatmul.msk.f32.gmra.mxu2 %vm34_vm0, %v29_v17  ;;  %2688 = vmatmul.msk.f32.gmra.mxu3 %vm34_vm0, %v33_v18 }
  0x85   :  { %v2876_v19 = vpop.f32.mrf.mxu0 }
  0x86   :  { %v154_v20 = vand.u32 2139095040, %v2876_v19  ;;  %v151_v24 = vand.u32 2147483647, %v2876_v19 }
  0x88   :  { %v155_v21 = vshrl.u32 %v154_v20, 23  ;;  %v158_v29 = vand.u32 8388607, %v151_v24 }
  0x8a   :  { %v2689_v22 = vadd.s32 4294967169, %v155_v21  ;;  %v159_v53 = vor.u32 8388608, %v158_v29 }
  0x8c   :  { %v161_v23 = vadd.s32 1, %v2689_v22  ;;  %v2935_v63 = vshll.u32 %v159_v53, 8 }
  0x8d   :  { %v2882_v28 = vpop.f32.mrf.mxu0 }
  0x8e   :  { %vm162_vm1 = vcmp.gt.s32.totalorder %v161_v23, 0  ;;  %5890 = vst [vmem:[#allocation5_spill] sm:$0xff] %v2882_v28  ;;  %v308_v50 = vand.u32 2139095040, %v2882_v28  ;;  %v200_v3 = vand.u32 65535, %v2935_v63  ;;  %v201_v9 = vshrl.u32 %v2935_v63, 16 }
  0x8f   :  { %v163_v25 = vsel %vm162_vm1, %v161_v23, 0  ;;  %v5816_v23 = vmov 0  }
  0x90   :  { %v165_v26 = vand.u32 31, %v163_v25  ;;  %v2886_v30 = vshrl.u32 %v163_v25, 5  ;;  %v309_v60 = vshrl.u32 %v308_v50, 23 }
  0x92   :  { %v2880_v27 = vsub.s32 32, %v165_v26  ;;  %v168_v32 = vshll.u32 %v5819_v31, %v165_v26  ;;  %v171_v34 = vshll.u32 %v5810_v33, %v165_v26  ;;  %v174_v38 = vshll.u32 %v5813_v36, %v165_v26 }
  0x93   :  { %v177_v41 = vshll.u32 %v5825_v39, %v165_v26  ;;  %v180_v44 = vshll.u32 %v5806_v42, %v165_v26  ;;  %vm183_vm2 = vcmp.lt.s32.totalorder %v2886_v30, 1  ;;  %vm186_vm3 = vcmp.lt.s32.totalorder %v2886_v30, 4 }
  0x94   :  { %v169_v35 = vshrl.u32 %v5810_v33, %v2880_v27  ;;  %v172_v37 = vshrl.u32 %v5813_v36, %v2880_v27  ;;  %v175_v40 = vshrl.u32 %v5825_v39, %v2880_v27  ;;  %v178_v43 = vshrl.u32 %v5806_v42, %v2880_v27 }
  0x95   :  { %v181_v46 = vshrl.u32 %v5808_v45, %v2880_v27  ;;  %vm185_vm4 = vcmp.lt.s32.totalorder %v2886_v30, 3  ;;  %vm184_vm5 = vcmp.lt.s32.totalorder %v2886_v30, 2  ;;  %v2692_v1 = vadd.s32 4294967169, %v309_v60 }
  0x96   :  { %v2903_v47 = vor.u32 %v169_v35, %v168_v32  ;;  %v2905_v48 = vor.u32 %v172_v37, %v171_v34  ;;  %v2907_v49 = vor.u32 %v175_v40, %v174_v38  ;;  %v179_v51 = vor.u32 %v178_v43, %v177_v41 }
  0x97   :  { %v182_v52 = vor.u32 %v181_v46, %v180_v44  ;;  %v315_v5 = vadd.s32 1, %v2692_v1  ;;  %v5812_v46 = vand.u32 2147483647, %v2882_v28 }
  0x98   :  { %v191_v54 = vsel %vm183_vm2, %v2903_v47, %v2905_v48  ;;  %v192_v55 = vsel %vm186_vm3, %v179_v51, 920167782  ;;  %v195_v56 = vsel %vm183_vm2, %v2905_v48, %v2907_v49 }
  0x99   :  { %v196_v57 = vsel %vm186_vm3, %v182_v52, 1326507024  ;;  %v193_v58 = vsel %vm185_vm4, %v2907_v49, %v192_v55  ;;  %vm316_vm6 = vcmp.gt.s32.totalorder %v315_v5, 0 }
  0x9a   :  { %v197_v59 = vsel %vm185_vm4, %v179_v51, %v196_v57  ;;  %v194_v61 = vsel %vm184_vm5, %v191_v54, %v193_v58  ;;  %v317_v16 = vsel %vm316_vm6, %v315_v5, 0  ;;  %v312_v5 = vand.u32 8388607, %v5812_v46 }
  0x9b   :  { %v198_v62 = vsel %vm184_vm5, %v195_v56, %v197_v59  ;;  %v225_v0 = vshrl.u32 %v194_v61, 16  ;;  %v224_v7 = vand.u32 65535, %v194_v61  ;;  %v319_v21 = vand.u32 31, %v317_v16 }
  0x9c   :  { %v203_v2 = vshrl.u32 %v198_v62, 16  ;;  %v202_v8 = vand.u32 65535, %v198_v62  ;;  %v2953_v53 = vshrl.u32 %v317_v16, 5 }
  0x9d   :  { %v227_v4 = vmul.u32 %v225_v0, %v200_v3  ;;  %v226_v12 = vmul.u32 %v224_v7, %v200_v3  ;;  %v2939_v13 = vmul.u32 %v224_v7, %v201_v9  ;;  %v229_v29 = vmul.u32 %v225_v0, %v201_v9 }
  0x9e   :  { %v205_v6 = vmul.u32 %v203_v2, %v200_v3  ;;  %v204_v14 = vmul.u32 %v202_v8, %v200_v3  ;;  %v206_v15 = vmul.u32 %v202_v8, %v201_v9  ;;  %v207_v32 = vmul.u32 %v203_v2, %v201_v9 }
  0x9f   :  { %v230_v10 = vshll.u32 %v227_v4, 16  ;;  %v232_v20 = vshll.u32 %v2939_v13, 16  ;;  %v2944_v35 = vsub.s32 32, %v319_v21  ;;  %v231_v52 = vshrl.u32 %v227_v4, 16 }
  0xa0   :  { %v208_v11 = vshll.u32 %v205_v6, 16  ;;  %v210_v22 = vshll.u32 %v206_v15, 16  ;;  %v209_v51 = vshrl.u32 %v205_v6, 16  ;;  %v331_v54 = vshll.u32 %v5825_v39, %v319_v21 }
  0xa1   :  { %vm234_vm7 = vc.u32 %v226_v12, %v230_v10  ;;  %v236_v17 = vadd.s32 %v230_v10, %v226_v12  ;;  %v332_v43 = vshrl.u32 %v5806_v42, %v2944_v35  ;;  %v335_v50 = vshrl.u32 %v5808_v45, %v2944_v35 }
  0xa2   :  { %vm212_vm8 = vc.u32 %v204_v14, %v208_v11  ;;  %v214_v18 = vadd.s32 %v208_v11, %v204_v14  ;;  %v235_v25 = vsel %vm234_vm7, 1, %v5816_v23  ;;  %v323_v55 = vshrl.u32 %v5810_v33, %v2944_v35 }
  0xa3   :  { %v213_v26 = vsel %vm212_vm8, 1, %v5816_v23  ;;  %vm238_vm9 = vc.u32 %v236_v17, %v232_v20  ;;  %v237_v34 = vadd.s32 %v235_v25, %v229_v29  ;;  %v326_v56 = vshrl.u32 %v5813_v36, %v2944_v35 }
  0xa4   :  { %vm216_vm10 = vc.u32 %v214_v18, %v210_v22  ;;  %v215_v37 = vadd.s32 %v213_v26, %v207_v32  ;;  %v239_v38 = vsel %vm238_vm9, 1, %v5816_v23  ;;  %v329_v57 = vshrl.u32 %v5825_v39, %v2944_v35 }
  0xa5   :  { %v217_v40 = vsel %vm216_vm10, 1, %v5816_v23  ;;  %v241_v41 = vadd.s32 %v239_v38, %v237_v34  ;;  %v334_v58 = vshll.u32 %v5806_v42, %v319_v21  ;;  %v322_v60 = vshll.u32 %v5819_v31, %v319_v21 }
  0xa6   :  { %v219_v44 = vadd.s32 %v217_v40, %v215_v37  ;;  %v333_v61 = vor.u32 %v332_v43, %v331_v54  ;;  %v325_v0 = vshll.u32 %v5810_v33, %v319_v21  ;;  %v328_v1 = vshll.u32 %v5813_v36, %v319_v21 }
  0xa7   :  { %v242_v59 = vadd.s32 %v241_v41, %v231_v52  ;;  %v336_v2 = vor.u32 %v335_v50, %v334_v58  ;;  %v211_v3 = vshrl.u32 %v206_v15, 16  ;;  %v233_v4 = vshrl.u32 %v2939_v13, 16  ;;  %v2983_v13 = vpop.f32.mrf.mxu0 }
  0xa8   :  { %v220_v62 = vadd.s32 %v219_v44, %v209_v51  ;;  %v2969_v6 = vor.u32 %v323_v55, %v322_v60  ;;  %v2971_v7 = vor.u32 %v326_v56, %v325_v0  ;;  %v2973_v8 = vor.u32 %v329_v57, %v328_v1  ;;  %5891 = vst [vmem:[#allocation6_spill] sm:$0xff] %v2983_v13 }
  0xa9   :  { %vm340_vm11 = vcmp.lt.s32.totalorder %v2953_v53, 4  ;;  %v167_v9 = vshrl.u32 %v5819_v31, %v2880_v27  ;;  %v188_v10 = vsel %vm186_vm3, %v2907_v49, 2102212464  ;;  %v243_v11 = vadd.s32 %v242_v59, %v233_v4 }
  0xaa   :  { %v346_v12 = vsel %vm340_vm11, %v333_v61, 920167782  ;;  %v2985_v14 = vadd.s32 %v220_v62, %v211_v3  ;;  %v350_v15 = vsel %vm340_vm11, %v336_v2, 1326507024  ;;  %v313_v27 = vor.u32 8388608, %v312_v5 }
  0xab   :  { %v187_v16 = vsel %vm183_vm2, %v167_v9, %v2903_v47  ;;  %vm337_vm12 = vcmp.lt.s32.totalorder %v2953_v53, 1  ;;  %vm339_vm13 = vcmp.lt.s32.totalorder %v2953_v53, 3  ;;  %v189_v49 = vsel %vm185_vm4, %v2905_v48, %v188_v10 }
  0xac   :  { %v2997_v18 = vadd.s32 %v236_v17, %v232_v20  ;;  %v345_v21 = vsel %vm337_vm12, %v2969_v6, %v2971_v7  ;;  %v347_v47 = vsel %vm339_vm13, %v2973_v8, %v346_v12  ;;  %v247_v22 = vadd.s32 1, %v243_v11 }
  0xad   :  { %v349_v25 = vsel %vm337_vm12, %v2971_v7, %v2973_v8  ;;  %v351_v48 = vsel %vm339_vm13, %v333_v61, %v350_v15  ;;  %v462_v17 = vand.u32 2139095040, %v2983_v13  ;;  %vm338_vm15 = vcmp.lt.s32.totalorder %v2953_v53, 2 }
  0xae   :  { %vm246_vm14 = vc.u32 %v2985_v14, %v2997_v18  ;;  %v190_v20 = vsel %vm184_vm5, %v187_v16, %v189_v49  ;;  %v348_v26 = vsel %vm338_vm15, %v345_v21, %v347_v47  ;;  %v352_v29 = vsel %vm338_vm15, %v349_v25, %v351_v48 }
  0xaf   :  { %v3022_v32 = vshll.u32 %v313_v27, 8  ;;  %v248_v34 = vsel %vm246_vm14, %v247_v22, %v243_v11  ;;  %v463_v37 = vshrl.u32 %v462_v17, 23  ;;  %v244_v38 = vmul.u32 %v2935_v63, %v190_v20 }
  0xb0   :  { %v379_v40 = vshrl.u32 %v348_v26, 16  ;;  %v357_v41 = vshrl.u32 %v352_v29, 16  ;;  %v378_v54 = vand.u32 65535, %v348_v26  ;;  %v356_v55 = vand.u32 65535, %v352_v29  ;;  %v3044_v29 = vpop.f32.mrf.mxu0 }
  0xb1   :  { %v249_v43 = vadd.s32 %v248_v34, %v244_v38  ;;  %v354_v44 = vand.u32 65535, %v3022_v32  ;;  %v2695_v50 = vadd.s32 4294967169, %v463_v37  ;;  %v355_v57 = vshrl.u32 %v3022_v32, 16  ;;  %5892 = vst [vmem:[#allocation7_spill] sm:$0xff] %v3044_v29 }
  0xb2   :  { %v5805_v20 = vand.u32 2147483647, %v2983_v13  ;;  %v321_v34 = vshrl.u32 %v5819_v31, %v2944_v35  ;;  %v342_v38 = vsel %vm340_vm11, %v2973_v8, 2102212464 }
  0xb3   :  { %v381_v30 = vmul.u32 %v379_v40, %v354_v44  ;;  %v359_v51 = vmul.u32 %v357_v41, %v354_v44  ;;  %v250_v52 = vadd.s32 536870912, %v249_v43  ;;  %v469_v56 = vadd.s32 1, %v2695_v50 }
  0xb4   :  { %v380_v61 = vmul.u32 %v378_v54, %v354_v44  ;;  %v3029_v63 = vmul.u32 %v378_v54, %v355_v57  ;;  %v358_v62 = vmul.u32 %v356_v55, %v354_v44  ;;  %v360_v0 = vmul.u32 %v356_v55, %v355_v57 }
  0xb5   :  { %v384_v58 = vshll.u32 %v381_v30, 16  ;;  %v362_v59 = vshll.u32 %v359_v51, 16  ;;  %v3027_v60 = vshrl.u32 %v250_v52, 30  ;;  %vm470_vm0 = vcmp.gt.s32.totalorder %v469_v56, 0 }
  0xb6   :  { %v386_v4 = vshll.u32 %v3029_v63, 16  ;;  %v471_v5 = vsel %vm470_vm0, %v469_v56, 0  ;;  %v364_v9 = vshll.u32 %v360_v0, 16  ;;  %v383_v12 = vmul.u32 %v379_v40, %v355_v57 }
  0xb7   :  { %vm388_vm1 = vc.u32 %v380_v61, %v384_v58  ;;  %v390_v1 = vadd.s32 %v384_v58, %v380_v61  ;;  %vm366_vm2 = vc.u32 %v358_v62, %v362_v59  ;;  %v368_v2 = vadd.s32 %v362_v59, %v358_v62 }
  0xb8   :  { %v252_v3 = vshll.u32 %v3027_v60, 30  ;;  %v389_v10 = vsel %vm388_vm1, 1, %v5816_v23  ;;  %v367_v11 = vsel %vm366_vm2, 1, %v5816_v23  ;;  %v361_v15 = vmul.u32 %v357_v41, %v355_v57 }
  0xb9   :  { %vm392_vm3 = vc.u32 %v390_v1, %v386_v4  ;;  %vm370_vm4 = vc.u32 %v368_v2, %v364_v9  ;;  %v473_v16 = vand.u32 31, %v471_v5  ;;  %v391_v49 = vadd.s32 %v389_v10, %v383_v12 }
  0xba   :  { %v3035_v27 = vsub.s32 %v249_v43, %v252_v3  ;;  %v369_v21 = vadd.s32 %v367_v11, %v361_v15  ;;  %v393_v47 = vsel %vm392_vm3, 1, %v5816_v23  ;;  %v371_v22 = vsel %vm370_vm4, 1, %v5816_v23 }
  0xbb   :  { %v3039_v25 = vsub.s32 32, %v473_v16  ;;  %v395_v17 = vadd.s32 %v393_v47, %v391_v49  ;;  %v385_v37 = vshrl.u32 %v381_v30, 16  ;;  %v363_v40 = vshrl.u32 %v359_v51, 16 }
  0xbc   :  { %v255_v48 = vsub.s32 0, %v3035_v27  ;;  %vm254_vm5 = vcmp.lt.s32.totalorder %v3035_v27, 0  ;;  %v373_v26 = vadd.s32 %v371_v22, %v369_v21  ;;  %v387_v50 = vshrl.u32 %v3029_v63, 16 }
  0xbd   :  { %v486_v41 = vshrl.u32 %v5806_v42, %v3039_v25  ;;  %v489_v43 = vshrl.u32 %v5808_v45, %v3039_v25  ;;  %v396_v52 = vadd.s32 %v395_v17, %v385_v37  ;;  %v466_v35 = vand.u32 8388607, %v5805_v20 }
  0xbe   :  { %v256_v44 = vsel %vm254_vm5, %v255_v48, %v3035_v27  ;;  %v374_v30 = vadd.s32 %v373_v26, %v363_v40  ;;  %v485_v54 = vshll.u32 %v5825_v39, %v473_v16  ;;  %v488_v8 = vshll.u32 %v5806_v42, %v473_v16 }
  0xbf   :  { %v616_v51 = vand.u32 2139095040, %v3044_v29  ;;  %v3062_v55 = vshrl.u32 %v471_v5, 5  ;;  %v477_v56 = vshrl.u32 %v5810_v33, %v3039_v25  ;;  %v480_v57 = vshrl.u32 %v5813_v36, %v3039_v25 }
  0xc0   :  { %v483_v58 = vshrl.u32 %v5825_v39, %v3039_v25  ;;  %v257_v59 = vclz %v256_v44  ;;  %v365_v61 = vshrl.u32 %v360_v0, 16  ;;  %v487_v63 = vor.u32 %v486_v41, %v485_v54 }
  0xc1   :  { %v490_v62 = vor.u32 %v489_v43, %v488_v8  ;;  %v397_v2 = vadd.s32 %v396_v52, %v387_v50  ;;  %v476_v3 = vshll.u32 %v5819_v31, %v473_v16  ;;  %v479_v9 = vshll.u32 %v5810_v33, %v473_v16 }
  0xc2   :  { %v482_v5 = vshll.u32 %v5813_v36, %v473_v16  ;;  %v341_v10 = vsel %vm337_vm12, %v321_v34, %v2969_v6  ;;  %v343_v11 = vsel %vm339_vm13, %v2971_v7, %v342_v38  ;;  %v3079_v12 = vadd.s32 %v374_v30, %v365_v61 }
  0xc3   :  { %v617_v0 = vshrl.u32 %v616_v51, 23  ;;  %v3081_v15 = vor.u32 %v477_v56, %v476_v3  ;;  %v3083_v49 = vor.u32 %v480_v57, %v479_v9  ;;  %vm494_vm6 = vcmp.lt.s32.totalorder %v3062_v55, 4 }
  0xc4   :  { %v3085_v21 = vor.u32 %v483_v58, %v482_v5  ;;  %v2690_v16 = vadd.s32 4294967294, %v257_v59  ;;  %v3088_v47 = vadd.s32 %v390_v1, %v386_v4  ;;  %v500_v6 = vsel %vm494_vm6, %v487_v63, 920167782 }
  0xc5   :  { %v504_v7 = vsel %vm494_vm6, %v490_v62, 1326507024  ;;  %v344_v22 = vsel %vm338_vm15, %v341_v10, %v343_v11  ;;  %v401_v48 = vadd.s32 1, %v397_v2  ;;  %v467_v17 = vor.u32 8388608, %v466_v35 }
  0xc6   :  { %vm400_vm7 = vc.u32 %v3079_v12, %v3088_v47  ;;  %vm491_vm8 = vcmp.lt.s32.totalorder %v3062_v55, 1  ;;  %vm493_vm9 = vcmp.lt.s32.totalorder %v3062_v55, 3  ;;  %v2698_v1 = vadd.s32 4294967169, %v617_v0 }
  0xc7   :  { %v499_v4 = vsel %vm491_vm8, %v3081_v15, %v3083_v49  ;;  %v501_v53 = vsel %vm493_vm9, %v3085_v21, %v500_v6  ;;  %v503_v26 = vsel %vm491_vm8, %v3083_v49, %v3085_v21  ;;  %v505_v34 = vsel %vm493_vm9, %v487_v63, %v504_v7 }
  0xc8   :  { %vm2691_vm10 = vcmp.lt.s32.totalorder %v2690_v16, 0  ;;  %v402_v37 = vsel %vm400_vm7, %v401_v48, %v397_v2  ;;  %vm492_vm11 = vcmp.lt.s32.totalorder %v3062_v55, 2  ;;  %v398_v38 = vmul.u32 %v3022_v32, %v344_v22 }
  0xc9   :  { %v502_v40 = vsel %vm492_vm11, %v499_v4, %v501_v53  ;;  %v506_v41 = vsel %vm492_vm11, %v503_v26, %v505_v34  ;;  %v623_v43 = vadd.s32 1, %v2698_v1  ;;  %v260_v44 = vsel %vm2691_vm10, 0, %v2690_v16  ;;  %v3148_v26 = vpop.f32.mrf.mxu1 }
  0xca   :  { %v3119_v50 = vshll.u32 %v467_v17, 8  ;;  %v403_v52 = vadd.s32 %v402_v37, %v398_v38  ;;  %v511_v35 = vshrl.u32 %v506_v41, 16  ;;  %v533_v30 = vshrl.u32 %v502_v40, 16  ;;  %5893 = vst [vmem:[#allocation8_spill] sm:$0xff] %v3148_v26 }
  0xcb   :  { %v265_v54 = vsub.s32 4294967266, %v260_v44  ;;  %vm624_vm12 = vcmp.gt.s32.totalorder %v623_v43, 0  ;;  %v261_v58 = vsub.s32 32, %v260_v44  ;;  %v510_v61 = vand.u32 65535, %v506_v41 }
  0xcc   :  { %v508_v8 = vand.u32 65535, %v3119_v50  ;;  %v404_v51 = vadd.s32 536870912, %v403_v52  ;;  %v625_v57 = vsel %vm624_vm12, %v623_v43, 0  ;;  %v532_v63 = vand.u32 65535, %v502_v40 }
  0xcd   :  { %v266_v59 = vadd.s32 127, %v265_v54  ;;  %v245_v62 = vadd.s32 %v2997_v18, %v2985_v14  ;;  %v627_v3 = vand.u32 31, %v625_v57  ;;  %v509_v9 = vshrl.u32 %v3119_v50, 16 }
  0xce   :  { %v3122_v56 = vmul.u32 %v511_v35, %v508_v8  ;;  %v3124_v32 = vmul.u32 %v533_v30, %v508_v8  ;;  %v3128_v2 = vshrl.u32 %v404_v51, 30  ;;  %v5804_v16 = vand.u32 2147483647, %v3044_v29 }
  0xcf   :  { %v263_v11 = vshrl.u32 %v245_v62, %v261_v58  ;;  %v267_v0 = vshll.u32 %v266_v59, 23  ;;  %v512_v6 = vmul.u32 %v510_v61, %v508_v8  ;;  %v3134_v7 = vmul.u32 %v510_v61, %v509_v9 }
  0xd0   :  { %v516_v5 = vshll.u32 %v3122_v56, 16  ;;  %v538_v10 = vshll.u32 %v3124_v32, 16  ;;  %v534_v22 = vmul.u32 %v532_v63, %v508_v8  ;;  %v3136_v48 = vmul.u32 %v532_v63, %v509_v9 }
  0xd1   :  { %v406_v14 = vshll.u32 %v3128_v2, 30  ;;  %v3139_v18 = vsub.s32 32, %v627_v3  ;;  %v262_v17 = vshll.u32 %v3035_v27, %v260_v44  ;;  %v3146_v53 = vand.u32 8388607, %v5804_v16 }
  0xd2   :  { %vm520_vm13 = vc.u32 %v512_v6, %v516_v5  ;;  %v522_v1 = vadd.s32 %v516_v5, %v512_v6  ;;  %v3142_v4 = vadd.s32 %v538_v10, %v534_v22  ;;  %vm542_vm14 = vc.u32 %v534_v22, %v538_v10 }
  0xd3   :  { %v264_v34 = vor.u32 %v263_v11, %v262_v17  ;;  %v268_v37 = vor.u32 4788187, %v267_v0  ;;  %v518_v38 = vshll.u32 %v3134_v7, 16  ;;  %v540_v40 = vshll.u32 %v3136_v48, 16 }
  0xd4   :  { %v3152_v41 = vsub.s32 %v403_v52, %v406_v14  ;;  %v515_v27 = vmul.u32 %v511_v35, %v509_v9  ;;  %v521_v43 = vsel %vm520_vm13, 1, %v5816_v23  ;;  %v640_v44 = vshrl.u32 %v5806_v42, %v3139_v18 }
  0xd5   :  { %vm3157_vm15 = vc.u32 %v522_v1, %v518_v38  ;;  %v543_v8 = vsel %vm542_vm14, 1, %v5816_v23  ;;  %vm546_vm0 = vc.u32 %v3142_v4, %v540_v40  ;;  %v643_v52 = vshrl.u32 %v5808_v45, %v3139_v18 }
  0xd6   :  { %v537_v51 = vmul.u32 %v533_v30, %v509_v9  ;;  %v3167_v35 = vshrl.u32 %v625_v57, 5  ;;  %v639_v58 = vshll.u32 %v5825_v39, %v627_v3  ;;  %v770_v59 = vand.u32 2139095040, %v3148_v26 }
  0xd7   :  { %v631_v61 = vshrl.u32 %v5810_v33, %v3139_v18  ;;  %v634_v63 = vshrl.u32 %v5813_v36, %v3139_v18  ;;  %v637_v62 = vshrl.u32 %v5825_v39, %v3139_v18  ;;  %v642_v5 = vshll.u32 %v5806_v42, %v627_v3 }
  0xd8   :  { %v523_v10 = vadd.s32 %v521_v43, %v515_v27  ;;  %v545_v11 = vadd.s32 %v543_v8, %v537_v51  ;;  %v547_v30 = vsel %vm546_vm0, 1, %v5816_v23  ;;  %v641_v57 = vor.u32 %v640_v44, %v639_v58 }
  0xd9   :  { %v630_v9 = vshll.u32 %v5819_v31, %v627_v3  ;;  %v633_v0 = vshll.u32 %v5810_v33, %v627_v3  ;;  %v636_v6 = vshll.u32 %v5813_v36, %v627_v3  ;;  %v644_v22 = vor.u32 %v643_v52, %v642_v5 }
  0xda   :  { %v525_v14 = vsel %vm3157_vm15, 1, %v5816_v23  ;;  %v771_v17 = vshrl.u32 %v770_v59, 23  ;;  %vm648_vm1 = vcmp.lt.s32.totalorder %v3167_v35, 4  ;;  %v271_v43 = vcvt.s32.f32 %v264_v34 }
  0xdb   :  { %v3185_v1 = vor.u32 %v631_v61, %v630_v9  ;;  %v3187_v38 = vor.u32 %v634_v63, %v633_v0  ;;  %v3189_v27 = vor.u32 %v637_v62, %v636_v6  ;;  %v549_v44 = vadd.s32 %v547_v30, %v545_v11 }
  0xdc   :  { %v621_v8 = vor.u32 8388608, %v3146_v53  ;;  %v654_v3 = vsel %vm648_vm1, %v641_v57, 920167782  ;;  %v269_v52 = vand.u32 2147483647, %v268_v37  ;;  %v409_v54 = vsub.s32 0, %v3152_v41 }
  0xdd   :  { %v527_v51 = vadd.s32 %v525_v14, %v523_v10  ;;  %v658_v58 = vsel %vm648_vm1, %v644_v22, 1326507024  ;;  %v539_v59 = vshrl.u32 %v3124_v32, 16  ;;  %vm645_vm2 = vcmp.lt.s32.totalorder %v3167_v35, 1 }
  0xde   :  { %vm647_vm3 = vcmp.lt.s32.totalorder %v3167_v35, 3  ;;  %v2701_v34 = vadd.s32 4294967169, %v771_v17  ;;  %vm408_vm4 = vcmp.lt.s32.totalorder %v3152_v41, 0  ;;  %v517_v53 = vshrl.u32 %v3122_v56, 16 }
  0xdf   :  { %v653_v37 = vsel %vm645_vm2, %v3185_v1, %v3187_v38  ;;  %v655_v61 = vsel %vm647_vm3, %v3189_v27, %v654_v3  ;;  %v550_v63 = vadd.s32 %v549_v44, %v539_v59  ;;  %v657_v32 = vsel %vm645_vm2, %v3187_v38, %v3189_v27 }
  0xe0   :  { %v659_v62 = vsel %vm647_vm3, %v641_v57, %v658_v58  ;;  %v272_v5 = vmul.f32 %v271_v43, %v269_v52  ;;  %v528_v56 = vadd.s32 %v527_v51, %v517_v53  ;;  %vm646_vm5 = vcmp.lt.s32.totalorder %v3167_v35, 2 }
  0xe1   :  { %v410_v10 = vsel %vm408_vm4, %v409_v54, %v3152_v41  ;;  %v541_v11 = vshrl.u32 %v3136_v48, 16  ;;  %v656_v30 = vsel %vm646_vm5, %v653_v37, %v655_v61  ;;  %v777_v9 = vadd.s32 1, %v2701_v34 }
  0xe2   :  { %v519_v0 = vshrl.u32 %v3134_v7, 16  ;;  %v3224_v6 = vsel %vm646_vm5, %v657_v32, %v659_v62  ;;  %v3226_v22 = vshll.u32 %v621_v8, 8  ;;  %v496_v57 = vsel %vm494_vm6, %v3085_v21, 2102212464 }
  0xe3   :  { %v551_v14 = vadd.s32 %v550_v63, %v541_v11  ;;  %v411_v17 = vclz %v410_v10  ;;  %v475_v43 = vshrl.u32 %v5819_v31, %v3039_v25  ;;  %v687_v3 = vshrl.u32 %v656_v30, 16 }
  0xe4   :  { %v3233_v44 = vadd.s32 %v528_v56, %v519_v0  ;;  %v273_v52 = vxor.u32 2147483648, %v272_v5  ;;  %v665_v7 = vshrl.u32 %v3224_v6, 16  ;;  %vm778_vm7 = vcmp.gt.s32.totalorder %v777_v9, 0 }
  0xe5   :  { %v495_v8 = vsel %vm491_vm8, %v475_v43, %v3081_v15  ;;  %v497_v21 = vsel %vm493_vm9, %v3083_v49, %v496_v57  ;;  %v3245_v54 = vadd.s32 %v3142_v4, %v540_v40  ;;  %v662_v25 = vand.u32 65535, %v3226_v22 }
  0xe6   :  { %v555_v51 = vadd.s32 1, %v551_v14  ;;  %v2693_v58 = vadd.s32 4294967294, %v411_v17  ;;  %v779_v34 = vsel %vm778_vm7, %v777_v9, 0  ;;  %vm153_vm8 = vcmp.lt.s32.totalorder %v2876_v19, 0 }
  0xe7   :  { %vm554_vm6 = vc.u32 %v3233_v44, %v3245_v54  ;;  %v3250_v59 = vmul.u32 %v687_v3, %v662_v25  ;;  %v498_v15 = vsel %vm492_vm11, %v495_v8, %v497_v21  ;;  %v3255_v49 = vmul.u32 %v665_v7, %v662_v25 }
  0xe8   :  { %v274_v48 = vsel %vm153_vm8, %v273_v52, %v272_v5  ;;  %v664_v4 = vand.u32 65535, %v3224_v6  ;;  %v686_v40 = vand.u32 65535, %v656_v30  ;;  %vm3262_vm9 = vcmp.le.f32.partialorder %v151_v24, 0.7853982 }
  0xe9   :  { %v556_v37 = vsel %vm554_vm6, %v555_v51, %v551_v14  ;;  %v781_v61 = vand.u32 31, %v779_v34  ;;  %vm2694_vm10 = vcmp.lt.s32.totalorder %v2693_v58, 0  ;;  %v552_v55 = vmul.u32 %v3119_v50, %v498_v15 }
  0xea   :  { %v663_v63 = vshrl.u32 %v3226_v22, 16  ;;  %v692_v32 = vshll.u32 %v3250_v59, 16  ;;  %v3272_v62 = vsel %vm3262_vm9, %v2876_v19, %v274_v48  ;;  %v670_v5 = vshll.u32 %v3255_v49, 16 }
  0xeb   :  { %v3275_v24 = vadd.s32 %v556_v37, %v552_v55  ;;  %v688_v10 = vmul.u32 %v686_v40, %v662_v25  ;;  %v3281_v30 = vsel %vm2694_vm10, 0, %v2693_v58  ;;  %v666_v50 = vmul.u32 %v664_v4, %v662_v25 }
  0xec   :  { %v3277_v56 = vmul.u32 %v664_v4, %v663_v63  ;;  %v3279_v11 = vmul.u32 %v686_v40, %v663_v63  ;;  %v3283_v9 = vsub.s32 32, %v781_v61  ;;  %v399_v0 = vadd.s32 %v3088_v47, %v3079_v12 }
  0xed   :  { %v3287_v6 = vadd.s32 %v692_v32, %v688_v10  ;;  %v3291_v57 = vmul.f32 %v3272_v62, %v3272_v62  ;;  %vm674_vm11 = vc.u32 %v666_v50, %v670_v5  ;;  %vm696_vm12 = vc.u32 %v688_v10, %v692_v32 }
  0xee   :  { %v5815_v14 = vand.u32 2147483647, %v3148_v26  ;;  %v419_v17 = vsub.s32 4294967266, %v3281_v30  ;;  %v558_v43 = vadd.s32 536870912, %v3275_v24  ;;  %v672_v52 = vshll.u32 %v3277_v56, 16 }
  0xef   :  { %v694_v8 = vshll.u32 %v3279_v11, 16  ;;  %v676_v21 = vadd.s32 %v670_v5, %v666_v50  ;;  %v691_v12 = vmul.u32 %v687_v3, %v663_v63  ;;  %v793_v47 = vshll.u32 %v5825_v39, %v781_v61 }
  0xf0   :  { %v794_v25 = vshrl.u32 %v5806_v42, %v3283_v9  ;;  %v675_v51 = vsel %vm674_vm11, 1, %v5816_v23  ;;  %v697_v58 = vsel %vm696_vm12, 1, %v5816_v23  ;;  %v3310_v48 = vshrl.u32 %v779_v34, 5 }
  0xf1   :  { %vm3306_vm13 = vc.u32 %v3287_v6, %v694_v8  ;;  %v784_v3 = vshll.u32 %v5819_v31, %v781_v61  ;;  %v787_v4 = vshll.u32 %v5810_v33, %v781_v61  ;;  %v796_v40 = vshll.u32 %v5806_v42, %v781_v61 }
  0xf2   :  { %v797_v37 = vshrl.u32 %v5808_v45, %v3283_v9  ;;  %v785_v55 = vshrl.u32 %v5810_v33, %v3283_v9  ;;  %v788_v32 = vshrl.u32 %v5813_v36, %v3283_v9  ;;  %v790_v5 = vshll.u32 %v5813_v36, %v781_v61 }
  0xf3   :  { %v791_v34 = vshrl.u32 %v5825_v39, %v3283_v9  ;;  %v420_v10 = vadd.s32 127, %v419_v17  ;;  %v669_v50 = vmul.u32 %v665_v7, %v663_v63  ;;  %vm678_vm14 = vc.u32 %v676_v21, %v672_v52 }
  0xf4   :  { %v795_v16 = vor.u32 %v794_v25, %v793_v47  ;;  %v415_v20 = vsub.s32 32, %v3281_v30  ;;  %v3325_v42 = vshrl.u32 %v558_v43, 30  ;;  %v699_v45 = vadd.s32 %v697_v58, %v691_v12 }
  0xf5   :  { %vm802_vm15 = vcmp.lt.s32.totalorder %v3310_v48, 4  ;;  %v677_v33 = vadd.s32 %v675_v51, %v669_v50  ;;  %v701_v46 = vsel %vm3306_vm13, 1, %v5816_v23  ;;  %v774_v61 = vand.u32 8388607, %v5815_v14 }
  0xf6   :  { %v798_v36 = vor.u32 %v797_v37, %v796_v40  ;;  %v679_v7 = vsel %vm678_vm14, 1, %v5816_v23  ;;  %v3334_v63 = vor.u32 %v785_v55, %v784_v3  ;;  %v3336_v17 = vor.u32 %v788_v32, %v787_v4 }
  0xf7   :  { %v3338_v43 = vor.u32 %v791_v34, %v790_v5  ;;  %v421_v52 = vshll.u32 %v420_v10, 23  ;;  %vm799_vm0 = vcmp.lt.s32.totalorder %v3310_v48, 1  ;;  %vm801_vm4 = vcmp.lt.s32.totalorder %v3310_v48, 3 }
  0xf8   :  { %v808_v21 = vsel %vm802_vm15, %v795_v16, 920167782  ;;  %v280_v12 = vmul.f32 -0.001358992, %v3291_v57  ;;  %v287_v47 = vmul.f32 -0.00019511016, %v3291_v57  ;;  %v703_v51 = vadd.s32 %v701_v46, %v699_v45  ;;  %v3358_v45 = vpop.f32.mrf.mxu1 }
  0xf9   :  { %v560_v25 = vshll.u32 %v3325_v42, 30  ;;  %v417_v58 = vshrl.u32 %v399_v0, %v415_v20  ;;  %v681_v15 = vadd.s32 %v679_v7, %v677_v33  ;;  %v693_v3 = vshrl.u32 %v3250_v59, 16  ;;  %5900 = vst [vmem:[#allocation9_spill] sm:$0xff] %v3358_v45 }
  0xfa   :  { %v812_v4 = vsel %vm802_vm15, %v798_v36, 1326507024  ;;  %v775_v40 = vor.u32 8388608, %v774_v61  ;;  %vm800_vm7 = vcmp.lt.s32.totalorder %v3310_v48, 2  ;;  %v807_v37 = vsel %vm799_vm0, %v3334_v63, %v3336_v17 }
  0xfb   :  { %v809_v55 = vsel %vm801_vm4, %v3338_v43, %v808_v21  ;;  %v416_v33 = vshll.u32 %v3152_v41, %v3281_v30  ;;  %v422_v46 = vor.u32 4788187, %v421_v52  ;;  %v671_v36 = vshrl.u32 %v3255_v49, 16 }
  0xfc   :  { %v3364_v20 = vsub.s32 %v3275_v24, %v560_v25  ;;  %v704_v59 = vadd.s32 %v703_v51, %v693_v3  ;;  %v811_v0 = vsel %vm799_vm0, %v3336_v17, %v3338_v43  ;;  %v813_v32 = vsel %vm801_vm4, %v795_v16, %v812_v4 }
  0xfd   :  { %v281_v5 = vadd.f32 0.041655596, %v280_v12  ;;  %v418_v34 = vor.u32 %v417_v58, %v416_v33  ;;  %v682_v10 = vadd.s32 %v681_v15, %v671_v36  ;;  %v3374_v41 = vsel %vm800_vm7, %v807_v37, %v809_v55 }
  0xfe   :  { %v288_v49 = vadd.f32 0.008332121, %v287_v47  ;;  %v695_v24 = vshrl.u32 %v3279_v11, 16  ;;  %v3377_v30 = vshll.u32 %v775_v40, 8  ;;  %v924_v50 = vand.u32 2139095040, %v3358_v45 }
  0xff   :  { %v423_v61 = vand.u32 2147483647, %v422_v46  ;;  %v650_v7 = vsel %vm648_vm1, %v3189_v27, 2102212464  ;;  %v673_v16 = vshrl.u32 %v3277_v56, 16  ;;  %v3386_v52 = vsel %vm800_vm7, %v811_v0, %v813_v32 }
 0x100   :  { %v563_v21 = vsub.s32 0, %v3364_v20  ;;  %v705_v12 = vadd.s32 %v704_v59, %v695_v24  ;;  %v841_v47 = vshrl.u32 %v3374_v41, 16  ;;  %v925_v25 = vshrl.u32 %v924_v50, 23 }
 0x101   :  { %v425_v51 = vcvt.s32.f32 %v418_v34  ;;  %vm562_vm6 = vcmp.lt.s32.totalorder %v3364_v20, 0  ;;  %v629_v58 = vshrl.u32 %v5819_v31, %v3139_v18  ;;  %v3393_v15 = vadd.s32 %v682_v10, %v673_v16 }
 0x102   :  { %v275_v27 = vsub.s32 4, %v3027_v60  ;;  %v816_v56 = vand.u32 65535, %v3377_v30  ;;  %v819_v3 = vshrl.u32 %v3386_v52, 16  ;;  %v2704_v4 = vadd.s32 4294967169, %v925_v25 }
 0x103   :  { %5901 = vst [vmem:[#allocation10_spill] sm:$0xff] %v3393_v15  ;;  %v426_v40 = vmul.f32 %v425_v51, %v423_v61  ;;  %v649_v37 = vsel %vm645_vm2, %v629_v58, %v3185_v1  ;;  %v651_v55 = vsel %vm647_vm3, %v3187_v38, %v650_v7  ;;  %v3407_v18 = vadd.s32 %v3287_v6, %v694_v8 }
 0x104   :  { %v564_v33 = vsel %vm562_vm6, %v563_v21, %v3364_v20  ;;  %v709_v46 = vadd.s32 1, %v705_v12  ;;  %v3410_v36 = vmul.u32 %v841_v47, %v816_v56  ;;  %v931_v59 = vadd.s32 1, %v2704_v4 }
 0x105   :  { %5902 = vst [vmem:[#allocation11_spill] sm:$0xff] %v3407_v18  ;;  %v282_v0 = vmul.f32 %v281_v5, %v3291_v57  ;;  %v289_v32 = vmul.f32 %v288_v49, %v3291_v57  ;;  %vm708_vm1 = vc.u32 %v3393_v15, %v3407_v18  ;;  %v652_v1 = vsel %vm646_vm5, %v649_v37, %v651_v55 }
 0x106   :  { %v3420_v38 = vmul.u32 %v819_v3, %v816_v56  ;;  %v840_v11 = vand.u32 65535, %v3374_v41  ;;  %vm932_vm2 = vcmp.gt.s32.totalorder %v931_v59, 0  ;;  %vm307_vm3 = vcmp.lt.s32.totalorder %v2882_v28, 0 }
 0x107   :  { %v427_v6 = vxor.u32 2147483648, %v426_v40  ;;  %v565_v8 = vclz %v564_v33  ;;  %v818_v5 = vand.u32 65535, %v3386_v52  ;;  %v276_v34 = vsel %vm153_vm8, %v275_v27, %v3027_v60 }
 0x108   :  { %v710_v10 = vsel %vm708_vm1, %v709_v46, %v705_v12  ;;  %v817_v35 = vshrl.u32 %v3377_v30, 16  ;;  %v846_v49 = vshll.u32 %v3410_v36, 16  ;;  %v283_v24 = vadd.f32 -0.4999988, %v282_v0 }
 0x109   :  { %v290_v50 = vadd.f32 -0.16666654, %v289_v32  ;;  %v706_v41 = vmul.u32 %v3226_v22, %v652_v1  ;;  %v933_v61 = vsel %vm932_vm2, %v931_v59, 0  ;;  %v429_v7 = vsub.s32 4, %v3128_v2 }
 0x10a   :  { %v824_v16 = vshll.u32 %v3420_v38, 16  ;;  %v842_v21 = vmul.u32 %v840_v11, %v816_v56  ;;  %v3433_v25 = vmul.u32 %v840_v11, %v817_v35  ;;  %v428_v60 = vsel %vm307_vm3, %v427_v6, %v426_v40 }
 0x10b   :  { %v2696_v12 = vadd.s32 4294967294, %v565_v8  ;;  %v3437_v51 = vadd.s32 %v710_v10, %v706_v41  ;;  %v820_v58 = vmul.u32 %v818_v5, %v816_v56  ;;  %v3439_v27 = vmul.u32 %v818_v5, %v817_v35 }
 0x10c   :  { %vm850_vm5 = vc.u32 %v842_v21, %v846_v49  ;;  %v3441_v4 = vadd.s32 %v846_v49, %v842_v21  ;;  %v935_v22 = vand.u32 31, %v933_v61  ;;  %v278_v37 = vsel %vm3262_vm9, 0, %v276_v34 }
 0x10d   :  { %v284_v55 = vmul.f32 %v283_v24, %v3291_v57  ;;  %v291_v33 = vmul.f32 %v290_v50, %v3291_v57  ;;  %v5903_v46 = vand.u32 2147483647, %v2882_v28  ;;  %v3456_v56 = vsel %vm307_vm3, %v429_v7, %v3128_v2  ;;  %v3484_v24 = vpop.f32.mrf.mxu1 }
 0x10e   :  { %v830_v59 = vadd.s32 %v824_v16, %v820_v58  ;;  %v5818_v0 = vshll.u32 %v3433_v25, 16  ;;  %vm2697_vm9 = vcmp.lt.s32.totalorder %v2696_v12, 0  ;;  %v712_v57 = vadd.s32 536870912, %v3437_v51  ;;  %5906 = vst [vmem:[#allocation12_spill] sm:$0xff] %v3484_v24 }
 0x10f   :  { %vm3449_vm8 = vcmp.le.f32.partialorder %v5903_v46, 0.7853982  ;;  %vm828_vm10 = vc.u32 %v820_v58, %v824_v16  ;;  %v851_v32 = vsel %vm850_vm5, 1, %v5816_v23  ;;  %v826_v1 = vshll.u32 %v3439_v27, 16 }
 0x110   :  { %v3461_v53 = vsel %vm3449_vm8, %v2882_v28, %v428_v60  ;;  %v845_v11 = vmul.u32 %v841_v47, %v817_v35  ;;  %vm854_vm11 = vc.u32 %v3441_v4, %v5818_v0  ;;  %v3470_v2 = vsub.s32 32, %v935_v22 }
 0x111   :  { %v3472_v6 = vadd.f32 1.0, %v284_v55  ;;  %v292_v8 = vadd.f32 1.0, %v291_v33  ;;  %v3474_v5 = vand.u32 3, %v278_v37  ;;  %v3481_v10 = vmul.f32 %v3461_v53, %v3461_v53 }
 0x112   :  { %v829_v47 = vsel %vm828_vm10, 1, %v5816_v23  ;;  %vm832_vm12 = vc.u32 %v830_v59, %v826_v1  ;;  %v853_v49 = vadd.s32 %v851_v32, %v845_v11  ;;  %v3487_v50 = vsel %vm2697_vm9, 0, %v2696_v12 }
 0x113   :  { %v3489_v41 = vshrl.u32 %v712_v57, 30  ;;  %v823_v7 = vmul.u32 %v819_v3, %v817_v35  ;;  %v855_v16 = vsel %vm854_vm11, 1, %v5816_v23  ;;  %v947_v21 = vshll.u32 %v5825_v39, %v935_v22 }
 0x114   :  { %v5908_v60 = vmov 920167782   ;;  %v5909_v55 = vmov 1326507024   ;;  %v833_v12 = vsel %vm832_vm12, 1, %v5816_v23  ;;  %v3502_v57 = vshrl.u32 %v933_v61, 5 }
 0x115   :  { %5907 = vst [vmem:[#allocation13_spill] sm:$0xff] %v3489_v41  ;;  %v948_v58 = vshrl.u32 %v5908_v60, %v3470_v2  ;;  %v950_v37 = vshll.u32 %v5908_v60, %v935_v22  ;;  %v951_v33 = vshrl.u32 %v5909_v55, %v3470_v2  ;;  %v831_v46 = vadd.s32 %v829_v47, %v823_v7 }
 0x116   :  { %v857_v52 = vadd.s32 %v855_v16, %v853_v49  ;;  %v938_v3 = vshll.u32 %v5819_v31, %v935_v22  ;;  %v5910_v35 = vmov 2475754826   ;;  %v1078_v1 = vand.u32 2139095040, %v3484_v24 }
 0x117   :  { %v941_v32 = vshll.u32 %v5910_v35, %v935_v22  ;;  %v939_v11 = vshrl.u32 %v5910_v35, %v3470_v2  ;;  %v5911_v14 = vmov 2131351028   ;;  %v945_v7 = vshrl.u32 %v5825_v39, %v3470_v2 }
 0x118   :  { %v942_v34 = vshrl.u32 %v5911_v14, %v3470_v2  ;;  %v944_v47 = vshll.u32 %v5911_v14, %v935_v22  ;;  %v434_v61 = vmul.f32 -0.001358992, %v3481_v10  ;;  %v441_v49 = vmul.f32 -0.00019511016, %v3481_v10 }
 0x119   :  { %v949_v16 = vor.u32 %v948_v58, %v947_v21  ;;  %v952_v23 = vor.u32 %v951_v33, %v950_v37  ;;  %v714_v0 = vshll.u32 %v3489_v41, 30  ;;  %v835_v31 = vadd.s32 %v833_v12, %v831_v46 }
 0x11a   :  { %v847_v59 = vshrl.u32 %v3410_v36, 16  ;;  %vm956_vm13 = vcmp.lt.s32.totalorder %v3502_v57, 4  ;;  %v573_v28 = vsub.s32 4294967266, %v3487_v50  ;;  %v825_v22 = vshrl.u32 %v3420_v38, 16 }
 0x11b   :  { %v5912_v26 = vand.u32 2147483647, %v3358_v45  ;;  %v1079_v29 = vshrl.u32 %v1078_v1, 23  ;;  %v3523_v15 = vor.u32 %v939_v11, %v938_v3  ;;  %v3525_v21 = vor.u32 %v942_v34, %v941_v32 }
 0x11c   :  { %v858_v18 = vadd.s32 %v857_v52, %v847_v59  ;;  %v3527_v58 = vor.u32 %v945_v7, %v944_v47  ;;  %vm953_vm14 = vcmp.lt.s32.totalorder %v3502_v57, 1  ;;  %vm955_vm6 = vcmp.lt.s32.totalorder %v3502_v57, 3 }
 0x11d   :  { %v928_v39 = vand.u32 8388607, %v5912_v26  ;;  %v962_v36 = vsel %vm956_vm13, %v949_v16, 920167782  ;;  %v966_v38 = vsel %vm956_vm13, %v952_v23, 1326507024  ;;  %v3536_v26 = vsub.s32 %v3437_v51, %v714_v0 }
 0x11e   :  { %v5913_v37 = vmov 683565275   ;;  %v827_v34 = vshrl.u32 %v3439_v27, 16  ;;  %v836_v46 = vadd.s32 %v835_v31, %v825_v22  ;;  %v849_v12 = vshrl.u32 %v3433_v25, 16 }
 0x11f   :  { %v783_v33 = vshrl.u32 %v5913_v37, %v3283_v9  ;;  %v929_v59 = vor.u32 8388608, %v928_v39  ;;  %vm954_vm1 = vcmp.lt.s32.totalorder %v3502_v57, 2  ;;  %v2707_v52 = vadd.s32 4294967169, %v1079_v29 }
 0x120   :  { %v961_v23 = vsel %vm953_vm14, %v3523_v15, %v3525_v21  ;;  %v963_v51 = vsel %vm955_vm6, %v3527_v58, %v962_v36  ;;  %v965_v31 = vsel %vm953_vm14, %v3525_v21, %v3527_v58  ;;  %v967_v39 = vsel %vm955_vm6, %v949_v16, %v966_v38 }
 0x121   :  { %v3557_v9 = vmul.f32 %v292_v8, %v3272_v62  ;;  %v442_v29 = vadd.f32 0.008332121, %v441_v49  ;;  %v804_v27 = vsel %vm802_vm15, %v3338_v43, 2102212464  ;;  %v859_v0 = vadd.s32 %v858_v18, %v849_v12 }
 0x122   :  { %v435_v3 = vadd.f32 0.041655596, %v434_v61  ;;  %v569_v32 = vsub.s32 32, %v3487_v50  ;;  %v574_v1 = vadd.s32 127, %v573_v28  ;;  %v3563_v11 = vadd.s32 %v836_v46, %v827_v34 }
 0x123   :  { %v803_v47 = vsel %vm799_vm0, %v783_v33, %v3334_v63  ;;  %v3570_v62 = vsel %vm954_vm1, %v961_v23, %v963_v51  ;;  %v3574_v8 = vsel %vm954_vm1, %v965_v31, %v967_v39  ;;  %v1085_v43 = vadd.s32 1, %v2707_v52 }
 0x124   :  { %5914 = vst [vmem:[#allocation14_spill] sm:$0xff] %v3563_v11  ;;  %v717_v18 = vsub.s32 0, %v3536_v26  ;;  %v805_v28 = vsel %vm801_vm4, %v3336_v17, %v804_v27  ;;  %v5915_v7 = vshll.u32 %v3433_v25, 16  ;;  %v3585_v63 = vshll.u32 %v929_v59, 8 }
 0x125   :  { %v443_v49 = vmul.f32 %v442_v29, %v3481_v10  ;;  %v553_v16 = vadd.s32 %v3245_v54, %v3233_v44  ;;  %vm716_vm15 = vcmp.lt.s32.totalorder %v3536_v26, 0  ;;  %v863_v22 = vadd.s32 1, %v859_v0 }
 0x126   :  { %v3583_v61 = vadd.s32 %v3441_v4, %v5915_v7  ;;  %v298_v36 = vxor.u32 2147483648, %v3557_v9  ;;  %v5831_v17 = vshrl.u32 %v3574_v8, 16  ;;  %v5832_v25 = vshrl.u32 %v3570_v62, 16 }
 0x127   :  { %v571_v4 = vshrl.u32 %v553_v16, %v569_v32  ;;  %v575_v38 = vshll.u32 %v574_v1, 23  ;;  %v806_v33 = vsel %vm800_vm7, %v803_v47, %v805_v28  ;;  %vm1086_vm4 = vcmp.gt.s32.totalorder %v1085_v43, 0 }
 0x128   :  { %5916 = vst [vmem:[#allocation15_spill] sm:$0xff] %v3583_v61  ;;  %vm862_vm0 = vc.u32 %v3563_v11, %v3583_v61  ;;  %v436_v44 = vmul.f32 %v435_v3, %v3481_v10  ;;  %v718_v54 = vsel %vm716_vm15, %v717_v18, %v3536_v26  ;;  %v970_v34 = vand.u32 65535, %v3585_v63 }
 0x129   :  { %v1087_v46 = vsel %vm1086_vm4, %v1085_v43, 0  ;;  %v444_v12 = vadd.f32 -0.16666654, %v443_v49  ;;  %v570_v59 = vshll.u32 %v3364_v20, %v3487_v50  ;;  %v864_v52 = vsel %vm862_vm0, %v863_v22, %v859_v0 }
 0x12a   :  { %v1089_v23 = vand.u32 31, %v1087_v46  ;;  %v860_v51 = vmul.u32 %v3377_v30, %v806_v33  ;;  %v972_v31 = vand.u32 65535, %v3574_v8  ;;  %v3607_v48 = vmul.u32 %v5831_v17, %v970_v34 }
 0x12b   :  { %v3611_v39 = vmul.u32 %v5832_v25, %v970_v34  ;;  %vm297_vm7 = vcmp.eq.s32.totalorder %v3474_v5, 0  ;;  %v3614_v29 = vor.u32 %v571_v4, %v570_v59  ;;  %v3616_v27 = vor.u32 4788187, %v575_v38 }
 0x12c   :  { %v719_v20 = vclz %v718_v54  ;;  %v5917_v30 = vsel %vm3449_vm8, 0, %v3456_v56  ;;  %v3624_v0 = vadd.s32 %v864_v52, %v860_v51  ;;  %v971_v3 = vshrl.u32 %v3585_v63, 16 }
 0x12d   :  { %v3622_v50 = vand.u32 3, %v5917_v30  ;;  %v994_v32 = vand.u32 65535, %v3570_v62  ;;  %v3629_v1 = vsel %vm297_vm7, %v3472_v6, %v298_v36  ;;  %v437_v43 = vadd.f32 -0.4999988, %v436_v44 }
 0x12e   :  { %v3632_v18 = vsub.s32 32, %v1089_v23  ;;  %v3635_v40 = vmul.f32 %v444_v12, %v3481_v10  ;;  %v3637_v56 = vmul.u32 %v972_v31, %v971_v3  ;;  %v978_v28 = vshll.u32 %v3607_v48, 16 }
 0x12f   :  { %5918 = vst [vmem:[#allocation16_spill] sm:$0xff] %v3622_v50  ;;  %v1000_v7 = vshll.u32 %v3611_v39, 16  ;;  %v577_v49 = vand.u32 2147483647, %v3616_v27  ;;  %v579_v16 = vcvt.s32.f32 %v3614_v29  ;;  %v3643_v22 = vadd.s32 4294967294, %v719_v20 }
 0x130   :  { %5919 = vst [vmem:[#allocation17_spill] sm:$0xff] %v3632_v18  ;;  %v866_v4 = vadd.s32 536870912, %v3624_v0  ;;  %v974_v38 = vmul.u32 %v972_v31, %v970_v34  ;;  %v996_v33 = vmul.u32 %v994_v32, %v970_v34  ;;  %v3647_v44 = vmul.u32 %v994_v32, %v971_v3 }
 0x131   :  { %v5920_v54 = vmov 2102212464   ;;  %v1102_v59 = vshrl.u32 %v5908_v60, %v3632_v18  ;;  %v1104_v52 = vshll.u32 %v5908_v60, %v1089_v23  ;;  %v1105_v51 = vshrl.u32 %v5909_v55, %v3632_v18 }
 0x132   :  { %v1101_v12 = vshll.u32 %v5920_v54, %v1089_v23  ;;  %v980_v29 = vshll.u32 %v3637_v56, 16  ;;  %vm3656_vm2 = vc.u32 %v974_v38, %v978_v28  ;;  %vm1004_vm3 = vc.u32 %v996_v33, %v1000_v7 }
 0x133   :  { %v3660_v34 = vshrl.u32 %v1087_v46, 5  ;;  %v984_v31 = vadd.s32 %v978_v28, %v974_v38  ;;  %v3662_v20 = vadd.s32 %v1000_v7, %v996_v33  ;;  %v1092_v30 = vshll.u32 %v5913_v37, %v1089_v23 }
 0x134   :  { %v1095_v32 = vshll.u32 %v5910_v35, %v1089_v23  ;;  %vm300_vm5 = vcmp.eq.s32.totalorder %v3474_v5, 2  ;;  %v1093_v47 = vshrl.u32 %v5910_v35, %v3632_v18  ;;  %v1096_v17 = vshrl.u32 %v5911_v14, %v3632_v18 }
 0x135   :  { %v1098_v36 = vshll.u32 %v5911_v14, %v1089_v23  ;;  %v1099_v46 = vshrl.u32 %v5920_v54, %v3632_v18  ;;  %vm296_vm8 = vcmp.lt.s32.totalorder %v3474_v5, 2  ;;  %v5923_v7 = vmov 0  }
 0x136   :  { %v1005_v38 = vsel %vm1004_vm3, 1, %v5923_v7  ;;  %v1103_v33 = vor.u32 %v1102_v59, %v1101_v12  ;;  %v1106_v25 = vor.u32 %v1105_v51, %v1104_v52  ;;  %v3677_v45 = vshrl.u32 %v866_v4, 30 }
 0x137   :  { %v5924_v41 = vshrl.u32 %v3570_v62, 16  ;;  %v5925_v11 = vand.u32 2147483647, %v3484_v24  ;;  %vm1110_vm9 = vcmp.lt.s32.totalorder %v3660_v34, 4  ;;  %v5926_v23 = vshrl.u32 %v3574_v8, 16 }
 0x138   :  { %v983_v28 = vsel %vm3656_vm2, 1, %v5923_v7  ;;  %vm3689_vm10 = vc.u32 %v984_v31, %v980_v29  ;;  %v5929_v4 = vshll.u32 %v3647_v44, 16  ;;  %vm294_vm12 = vweird.f32 %v2876_v19 }
 0x139   :  { %v999_v61 = vmul.u32 %v5924_v41, %v971_v3  ;;  %v1082_v50 = vand.u32 8388607, %v5925_v11  ;;  %v977_v18 = vmul.u32 %v5926_v23, %v971_v3  ;;  %v3697_v11 = vor.u32 %v1093_v47, %v1092_v30 }
 0x13a   :  { %vm1008_vm11 = vc.u32 %v3662_v20, %v5929_v4  ;;  %v3699_v62 = vor.u32 %v1096_v17, %v1095_v32  ;;  %v3701_v8 = vor.u32 %v1099_v46, %v1098_v36  ;;  %vm461_vm15 = vcmp.lt.s32.totalorder %v2983_v13, 0 }
 0x13b   :  { %v1007_v41 = vadd.s32 %v1005_v38, %v999_v61  ;;  %vm1107_vm0 = vcmp.lt.s32.totalorder %v3660_v34, 1  ;;  %vm1109_vm4 = vcmp.lt.s32.totalorder %v3660_v34, 3  ;;  %v1116_v3 = vsel %vm1110_vm9, %v1103_v33, 920167782 }
 0x13c   :  { %v1120_v59 = vsel %vm1110_vm9, %v1106_v25, 1326507024  ;;  %v438_v61 = vmul.f32 %v437_v43, %v3481_v10  ;;  %v580_v47 = vmul.f32 %v579_v16, %v577_v49  ;;  %v985_v52 = vadd.s32 %v983_v28, %v977_v18 }
 0x13d   :  { %v1009_v17 = vsel %vm1008_vm11, 1, %v5923_v7  ;;  %v868_v36 = vshll.u32 %v3677_v45, 30  ;;  %v987_v51 = vsel %vm3689_vm10, 1, %v5923_v7  ;;  %v1083_v29 = vor.u32 8388608, %v1082_v50 }
 0x13e   :  { %vm1108_vm7 = vcmp.lt.s32.totalorder %v3660_v34, 2  ;;  %v5930_v27 = vand.u32 2147483647, %v2983_v13  ;;  %v1115_v10 = vsel %vm1107_vm0, %v3697_v11, %v3699_v62  ;;  %v1117_v25 = vsel %vm1109_vm4, %v3701_v8, %v1116_v3 }
 0x13f   :  { %v1119_v50 = vsel %vm1107_vm0, %v3699_v62, %v3701_v8  ;;  %v1121_v43 = vsel %vm1109_vm4, %v1103_v33, %v1120_v59  ;;  %v5933_v18 = vxor.u32 2147483648, %v3472_v6  ;;  %v446_v16 = vadd.f32 1.0, %v3635_v40 }
 0x140   :  { %vm3719_vm2 = vcmp.le.f32.partialorder %v5930_v27, 0.7853982  ;;  %vm2700_vm3 = vcmp.lt.s32.totalorder %v3643_v22, 0  ;;  %v1011_v30 = vadd.s32 %v1009_v17, %v1007_v41  ;;  %v3746_v46 = vadd.f32 1.0, %v438_v61 }
 0x141   :  { %v302_v49 = vsel %vm300_vm5, %v5933_v18, %v3557_v9  ;;  %v581_v28 = vxor.u32 2147483648, %v580_v47  ;;  %v989_v38 = vadd.s32 %v987_v51, %v985_v52  ;;  %v583_v33 = vsub.s32 4, %v3325_v42  ;;  %v3794_v51 = vpop.f32.mrf.mxu1 }
 0x142   :  { %v303_v32 = vsel %vm296_vm8, %v3629_v1, %v302_v49  ;;  %v1001_v6 = vshrl.u32 %v3611_v39, 16  ;;  %v3752_v9 = vsel %vm1108_vm7, %v1115_v10, %v1117_v25  ;;  %v3756_v40 = vsel %vm1108_vm7, %v1119_v50, %v1121_v43  ;;  %5935 = vst [vmem:[#allocation19_spill] sm:$0xff] %v3794_v51 }
 0x143   :  { %v3759_v23 = vsel %vm2700_vm3, 0, %v3643_v22  ;;  %v3762_v5 = vsub.s32 %v3624_v0, %v868_v36  ;;  %v979_v1 = vshrl.u32 %v3607_v48, 16  ;;  %v3765_v12 = vshll.u32 %v1083_v29, 8 }
 0x144   :  { %v3769_v39 = vsel %vm294_vm12, nan, %v303_v32  ;;  %v3772_v4 = vmul.f32 %v446_v16, %v3461_v53  ;;  %v937_v41 = vshrl.u32 %v5913_v37, %v3470_v2  ;;  %v1012_v3 = vadd.s32 %v1011_v30, %v1001_v6 }
 0x145   :  { %5934 = vst [vmem:[#allocation18_spill] sm:$0xff] %v3769_v39  ;;  %v582_v22 = vsel %vm461_vm15, %v581_v28, %v580_v47  ;;  %v990_v0 = vadd.s32 %v989_v38, %v979_v1  ;;  %v1127_v59 = vshrl.u32 %v3756_v40, 16  ;;  %v1149_v48 = vshrl.u32 %v3752_v9, 16 }
 0x146   :  { %v727_v19 = vsub.s32 4294967266, %v3759_v23  ;;  %v958_v53 = vsel %vm956_vm13, %v3527_v58, 2102212464  ;;  %v1003_v52 = vshrl.u32 %v3647_v44, 16  ;;  %v3789_v2 = vsel %vm461_vm15, %v583_v33, %v3325_v42 }
 0x147   :  { %v871_v47 = vsub.s32 0, %v3762_v5  ;;  %v981_v17 = vshrl.u32 %v3637_v56, 16  ;;  %v1124_v36 = vand.u32 65535, %v3765_v12  ;;  %v3799_v29 = vsel %vm3719_vm2, %v2983_v13, %v582_v22 }
 0x148   :  { %vm870_vm13 = vcmp.lt.s32.totalorder %v3762_v5, 0  ;;  %v957_v42 = vsel %vm953_vm14, %v937_v41, %v3523_v15  ;;  %v1013_v58 = vadd.s32 %v1012_v3, %v1003_v52  ;;  %v959_v56 = vsel %vm955_vm6, %v3525_v21, %v958_v53 }
 0x149   :  { %v3808_v27 = vadd.s32 %v990_v0, %v981_v17  ;;  %v3810_v10 = vmul.u32 %v1127_v59, %v1124_v36  ;;  %v3814_v25 = vmul.u32 %v1149_v48, %v1124_v36  ;;  %v728_v15 = vadd.s32 127, %v727_v19  ;;  %v5938_v17 = vld [vmem:[#allocation11_spill] sm:$0xff] }
 0x14a   :  { %v1126_v18 = vand.u32 65535, %v3756_v40  ;;  %v872_v49 = vsel %vm870_vm13, %v871_v47, %v3762_v5  ;;  %v5936_v21 = vshll.u32 %v3647_v44, 16  ;;  %v1148_v30 = vand.u32 65535, %v3752_v9  ;;  %v5937_v47 = vld [vmem:[#allocation10_spill] sm:$0xff] }
 0x14b   :  { %v1232_v32 = vand.u32 2139095040, %v3794_v51  ;;  %v3831_v28 = vmul.f32 %v3799_v29, %v3799_v29  ;;  %v960_v38 = vsel %vm954_vm1, %v957_v42, %v959_v56  ;;  %v1017_v33 = vadd.s32 1, %v1013_v58 }
 0x14c   :  { %v3825_v16 = vadd.s32 %v3662_v20, %v5936_v21  ;;  %v1125_v6 = vshrl.u32 %v3765_v12, 16  ;;  %v1132_v44 = vshll.u32 %v3810_v10, 16  ;;  %v1154_v20 = vshll.u32 %v3814_v25, 16 }
 0x14d   :  { %v1233_v40 = vshrl.u32 %v1232_v32, 23  ;;  %v723_v1 = vsub.s32 32, %v3759_v23  ;;  %v729_v41 = vshll.u32 %v728_v15, 23  ;;  %v873_v3 = vclz %v872_v49 }
 0x14e   :  { %vm1016_vm14 = vc.u32 %v3808_v27, %v3825_v16  ;;  %v1128_v22 = vmul.u32 %v1126_v18, %v1124_v36  ;;  %v3841_v0 = vmul.u32 %v1126_v18, %v1125_v6  ;;  %v1150_v57 = vmul.u32 %v1148_v30, %v1124_v36 }
 0x14f   :  { %v3843_v19 = vmul.u32 %v1148_v30, %v1125_v6  ;;  %v2710_v53 = vadd.s32 4294967169, %v1233_v40  ;;  %v588_v52 = vmul.f32 -0.001358992, %v3831_v28  ;;  %v707_v42 = vadd.s32 %v5938_v17, %v5937_v47 }
 0x150   :  { %v1014_v56 = vmul.u32 %v3585_v63, %v960_v38  ;;  %v1018_v21 = vsel %vm1016_vm14, %v1017_v33, %v1013_v58  ;;  %vm1136_vm6 = vc.u32 %v1128_v22, %v1132_v44  ;;  %v1138_v32 = vadd.s32 %v1132_v44, %v1128_v22 }
 0x151   :  { %v3849_v43 = vadd.s32 %v1154_v20, %v1150_v57  ;;  %v1239_v15 = vadd.s32 1, %v2710_v53  ;;  %v725_v49 = vshrl.u32 %v707_v42, %v723_v1  ;;  %v730_v18 = vor.u32 4788187, %v729_v41 }
 0x152   :  { %v2702_v50 = vadd.s32 4294967294, %v873_v3  ;;  %vm1158_vm1 = vc.u32 %v1150_v57, %v1154_v20  ;;  %v3851_v36 = vadd.s32 %v1018_v21, %v1014_v56  ;;  %v1134_v30 = vshll.u32 %v3841_v0, 16 }
 0x153   :  { %v5841_v40 = vshll.u32 %v3843_v19, 16  ;;  %vm1240_vm5 = vcmp.gt.s32.totalorder %v1239_v15, 0  ;;  %v724_v63 = vshll.u32 %v3536_v26, %v3759_v23  ;;  %v1131_v58 = vmul.u32 %v1127_v59, %v1125_v6 }
 0x154   :  { %v1137_v38 = vsel %vm1136_vm6, 1, %v5923_v7  ;;  %v1241_v33 = vsel %vm1240_vm5, %v1239_v15, 0  ;;  %vm1140_vm8 = vc.u32 %v1138_v32, %v1134_v30  ;;  %v1159_v44 = vsel %vm1158_vm1, 1, %v5923_v7 }
 0x155   :  { %vm1162_vm10 = vc.u32 %v3849_v43, %v5841_v40  ;;  %v1243_v20 = vand.u32 31, %v1241_v33  ;;  %v726_v1 = vor.u32 %v725_v49, %v724_v63  ;;  %v731_v41 = vand.u32 2147483647, %v730_v18 }
 0x156   :  { %vm2703_vm11 = vcmp.lt.s32.totalorder %v2702_v50, 0  ;;  %v1153_v3 = vmul.u32 %v1149_v48, %v1125_v6  ;;  %v1020_v26 = vadd.s32 536870912, %v3851_v36  ;;  %v1139_v23 = vadd.s32 %v1137_v38, %v1131_v58 }
 0x157   :  { %v5844_v59 = vand.u32 2147483647, %v3794_v51  ;;  %v3866_v22 = vsub.s32 32, %v1243_v20  ;;  %v1141_v57 = vsel %vm1140_vm8, 1, %v5923_v7  ;;  %v1163_v47 = vsel %vm1162_vm10, 1, %v5923_v7 }
 0x158   :  { %v1161_v53 = vadd.s32 %v1159_v44, %v1153_v3  ;;  %v1255_v17 = vshll.u32 %v5920_v54, %v1243_v20  ;;  %v3871_v42 = vshrl.u32 %v1241_v33, 5  ;;  %v1246_v56 = vshll.u32 %v5913_v37, %v1243_v20  ;;  %v5939_v3 = vld [vmem:[#allocation16_spill] sm:$0xff] }
 0x159   :  { %v1249_v9 = vshll.u32 %v5910_v35, %v1243_v20  ;;  %v1252_v48 = vshll.u32 %v5911_v14, %v1243_v20  ;;  %v1247_v6 = vshrl.u32 %v5910_v35, %v3866_v22  ;;  %v1250_v21 = vshrl.u32 %v5911_v14, %v3866_v22 }
 0x15a   :  { %v1253_v32 = vshrl.u32 %v5920_v54, %v3866_v22  ;;  %v1256_v15 = vshrl.u32 %v5908_v60, %v3866_v22  ;;  %v589_v49 = vadd.f32 0.041655596, %v588_v52  ;;  %v595_v18 = vmul.f32 -0.00019511016, %v3831_v28 }
 0x15b   :  { %v733_v30 = vcvt.s32.f32 %v726_v1  ;;  %v3886_v63 = vsel %vm2703_vm11, 0, %v2702_v50  ;;  %v1236_v58 = vand.u32 8388607, %v5844_v59  ;;  %v1258_v33 = vshll.u32 %v5908_v60, %v1243_v20  ;;  %v5941_v1 = vld [vmem:[#allocation7_spill] sm:$0xff] }
 0x15c   :  { %v1257_v38 = vor.u32 %v1256_v15, %v1255_v17  ;;  %v1259_v44 = vshrl.u32 %v5909_v55, %v3866_v22  ;;  %vm454_vm12 = vcmp.eq.s32.totalorder %v5939_v3, 2  ;;  %v3894_v61 = vshrl.u32 %v1020_v26, 30 }
 0x15d   :  { %v734_v40 = vmul.f32 %v733_v30, %v731_v41  ;;  %v1143_v52 = vadd.s32 %v1141_v57, %v1139_v23  ;;  %v1165_v39 = vadd.s32 %v1163_v47, %v1161_v53  ;;  %vm615_vm15 = vcmp.lt.s32.totalorder %v5941_v1, 0 }
 0x15e   :  { %5940 = vst [vmem:[#allocation10_spill] sm:$0xff] %v3894_v61  ;;  %v3897_v50 = vor.u32 %v1247_v6, %v1246_v56  ;;  %v3899_v13 = vor.u32 %v1250_v21, %v1249_v9  ;;  %v3901_v59 = vor.u32 %v1253_v32, %v1252_v48  ;;  %vm1264_vm3 = vcmp.lt.s32.totalorder %v3871_v42, 4 }
 0x15f   :  { %v881_v20 = vsub.s32 4294967266, %v3886_v63  ;;  %v1155_v17 = vshrl.u32 %v3814_v25, 16  ;;  %vm1261_vm13 = vcmp.lt.s32.totalorder %v3871_v42, 1  ;;  %vm1263_vm14 = vcmp.lt.s32.totalorder %v3871_v42, 3 }
 0x160   :  { %v1133_v41 = vshrl.u32 %v3810_v10, 16  ;;  %v1237_v26 = vor.u32 8388608, %v1236_v58  ;;  %v1260_v23 = vor.u32 %v1259_v44, %v1258_v33  ;;  %v1270_v57 = vsel %vm1264_vm3, %v1257_v38, 920167782 }
 0x161   :  { %v596_v53 = vadd.f32 0.008332121, %v595_v18  ;;  %v735_v47 = vxor.u32 2147483648, %v734_v40  ;;  %v1022_v56 = vshll.u32 %v3894_v61, 30  ;;  %v1166_v9 = vadd.s32 %v1165_v39, %v1155_v17  ;;  %v5945_v39 = vld [vmem:[#allocation17_spill] sm:$0xff] }
 0x162   :  { %v1144_v48 = vadd.s32 %v1143_v52, %v1133_v41  ;;  %vm1262_vm6 = vcmp.lt.s32.totalorder %v3871_v42, 2  ;;  %v1269_v25 = vsel %vm1261_vm13, %v3897_v50, %v3899_v13  ;;  %v1271_v10 = vsel %vm1263_vm14, %v3901_v59, %v1270_v57 }
 0x163   :  { %v5942_v6 = vand.u32 2147483647, %v5941_v1  ;;  %v882_v32 = vadd.s32 127, %v881_v20  ;;  %v1091_v15 = vshrl.u32 %v5913_v37, %v5945_v39  ;;  %v1112_v18 = vsel %vm1110_vm9, %v3701_v8, 2102212464 }
 0x164   :  { %v1157_v30 = vshrl.u32 %v3843_v19, 16  ;;  %v1135_v58 = vshrl.u32 %v3841_v0, 16  ;;  %v1273_v33 = vsel %vm1261_vm13, %v3899_v13, %v3901_v59  ;;  %v1274_v44 = vsel %vm1264_vm3, %v1260_v23, 1326507024 }
 0x165   :  { %vm3922_vm1 = vcmp.le.f32.partialorder %v5942_v6, 0.7853982  ;;  %v3939_v52 = vshll.u32 %v1237_v26, 8  ;;  %v3942_v20 = vsub.s32 %v3851_v36, %v1022_v56  ;;  %v1272_v8 = vsel %vm1262_vm6, %v1269_v25, %v1271_v10 }
 0x166   :  { %v1167_v17 = vadd.s32 %v1166_v9, %v1157_v30  ;;  %v1275_v0 = vsel %vm1263_vm14, %v1257_v38, %v1274_v44  ;;  %v5946_v41 = vxor.u32 2147483648, %v3746_v46  ;;  %v590_v26 = vmul.f32 %v589_v49, %v3831_v28  ;;  %v5949_v44 = vld [vmem:[#allocation14_spill] sm:$0xff] }
 0x167   :  { %v597_v23 = vmul.f32 %v596_v53, %v3831_v28  ;;  %v3957_v36 = vadd.s32 %v1144_v48, %v1135_v58  ;;  %v736_v56 = vsel %vm615_vm15, %v735_v47, %v734_v40  ;;  %v1111_v38 = vsel %vm1107_vm0, %v1091_v15, %v3697_v11  ;;  %v3975_v47 = vpop.f32.mrf.mxu2 }
 0x168   :  { %v3953_v57 = vsel %vm454_vm12, %v5946_v41, %v3772_v4  ;;  %v1113_v9 = vsel %vm1109_vm4, %v3699_v62, %v1112_v18  ;;  %v1276_v25 = vsel %vm1262_vm6, %v1273_v33, %v1275_v0  ;;  %v5947_v49 = vshll.u32 %v3843_v19, 16  ;;  %5948 = vst [vmem:[#allocation11_spill] sm:$0xff] %v3975_v47  ;;  %v5950_v0 = vld [vmem:[#allocation15_spill] sm:$0xff] }
 0x169   :  { %v1278_v48 = vand.u32 65535, %v3939_v52  ;;  %v1281_v10 = vshrl.u32 %v1276_v25, 16  ;;  %v1303_v40 = vshrl.u32 %v1272_v8, 16  ;;  %v877_v11 = vsub.s32 32, %v3886_v63 }
 0x16a   :  { %v3972_v53 = vadd.s32 %v3849_v43, %v5947_v49  ;;  %v883_v6 = vshll.u32 %v882_v32, 23  ;;  %v1025_v39 = vsub.s32 0, %v3942_v20  ;;  %v1171_v62 = vadd.s32 1, %v1167_v17 }
 0x16b   :  { %vm1024_vm9 = vcmp.lt.s32.totalorder %v3942_v20, 0  ;;  %v3982_v19 = vmul.u32 %v1281_v10, %v1278_v48  ;;  %v1302_v43 = vand.u32 65535, %v1272_v8  ;;  %v591_v15 = vadd.f32 -0.4999988, %v590_v26 }
 0x16c   :  { %vm1170_vm0 = vc.u32 %v3957_v36, %v3972_v53  ;;  %v1114_v18 = vsel %vm1108_vm7, %v1111_v38, %v1113_v9  ;;  %v1280_v30 = vand.u32 65535, %v1276_v25  ;;  %v3986_v58 = vmul.u32 %v1303_v40, %v1278_v48 }
 0x16d   :  { %v598_v33 = vadd.f32 -0.16666654, %v597_v23  ;;  %v3991_v32 = vsel %vm3922_vm1, %v5941_v1, %v736_v56  ;;  %v861_v41 = vadd.s32 %v5950_v0, %v5949_v44  ;;  %v1386_v49 = vand.u32 2139095040, %v3975_v47 }
 0x16e   :  { %vm451_vm4 = vcmp.eq.s32.totalorder %v5939_v3, 0  ;;  %v1026_v8 = vsel %vm1024_vm9, %v1025_v39, %v3942_v20  ;;  %v1172_v34 = vsel %vm1170_vm0, %v1171_v62, %v1167_v17  ;;  %v1279_v26 = vshrl.u32 %v3939_v52, 16 }
 0x16f   :  { %v1286_v38 = vshll.u32 %v3982_v19, 16  ;;  %v879_v23 = vshrl.u32 %v861_v41, %v877_v11  ;;  %v884_v9 = vor.u32 4788187, %v883_v6  ;;  %v1168_v25 = vmul.u32 %v3765_v12, %v1114_v18 }
 0x170   :  { %v1304_v56 = vmul.u32 %v1302_v43, %v1278_v48  ;;  %v1282_v51 = vmul.u32 %v1280_v30, %v1278_v48  ;;  %v4001_v24 = vmul.u32 %v1280_v30, %v1279_v26  ;;  %v4003_v44 = vmul.u32 %v1302_v43, %v1279_v26 }
 0x171   :  { %v1308_v0 = vshll.u32 %v3986_v58, 16  ;;  %v878_v39 = vshll.u32 %v3762_v5, %v3886_v63  ;;  %v1027_v17 = vclz %v1026_v8  ;;  %v4008_v62 = vadd.s32 %v1172_v34, %v1168_v25 }
 0x172   :  { %v1387_v61 = vshrl.u32 %v1386_v49, 23  ;;  %vm450_vm7 = vcmp.lt.s32.totalorder %v5939_v3, 2  ;;  %v599_v11 = vmul.f32 %v598_v33, %v3831_v28  ;;  %vm1290_vm5 = vc.u32 %v1282_v51, %v1286_v38 }
 0x173   :  { %v1292_v12 = vadd.s32 %v1286_v38, %v1282_v51  ;;  %vm1312_vm8 = vc.u32 %v1304_v56, %v1308_v0  ;;  %v4014_v48 = vmul.f32 %v3991_v32, %v3991_v32  ;;  %v880_v6 = vor.u32 %v879_v23, %v878_v39 }
 0x174   :  { %v885_v43 = vand.u32 2147483647, %v884_v9  ;;  %v1313_v18 = vsel %vm1312_vm8, 1, %v5923_v7  ;;  %v1288_v5 = vshll.u32 %v4001_v24, 16  ;;  %v1307_v63 = vmul.u32 %v1303_v40, %v1279_v26 }
 0x175   :  { %v1310_v30 = vshll.u32 %v4003_v44, 16  ;;  %v4019_v41 = vadd.s32 %v1308_v0, %v1304_v56  ;;  %v2705_v49 = vadd.s32 4294967294, %v1027_v17  ;;  %v1174_v33 = vadd.s32 536870912, %v4008_v62 }
 0x176   :  { %v1291_v51 = vsel %vm1290_vm5, 1, %v5923_v7  ;;  %v2713_v8 = vadd.s32 4294967169, %v1387_v61  ;;  %v1285_v34 = vmul.u32 %v1281_v10, %v1279_v26  ;;  %vm1294_vm10 = vc.u32 %v1292_v12, %v1288_v5 }
 0x177   :  { %v1315_v38 = vadd.s32 %v1313_v18, %v1307_v63  ;;  %vm1316_vm11 = vc.u32 %v4019_v41, %v1310_v30  ;;  %v5951_v23 = vxor.u32 2147483648, %v3772_v4  ;;  %v592_v9 = vmul.f32 %v591_v15, %v3831_v28  ;;  %v5953_v18 = vld [vmem:[#allocation13_spill] sm:$0xff] }
 0x178   :  { %v1317_v25 = vsel %vm1316_vm11, 1, %v5923_v7  ;;  %v1393_v56 = vadd.s32 1, %v2713_v8  ;;  %v600_v0 = vadd.f32 1.0, %v599_v11  ;;  %v742_v61 = vmul.f32 -0.001358992, %v4014_v48 }
 0x179   :  { %v453_v40 = vsel %vm451_vm4, %v3746_v46, %v5951_v23  ;;  %v887_v10 = vcvt.s32.f32 %v880_v6  ;;  %v1293_v26 = vadd.s32 %v1291_v51, %v1285_v34  ;;  %vm2706_vm12 = vcmp.lt.s32.totalorder %v2705_v49, 0 }
 0x17a   :  { %v4034_v39 = vshrl.u32 %v1174_v33, 30  ;;  %v1295_v17 = vsel %vm1294_vm10, 1, %v5923_v7  ;;  %vm1394_vm9 = vcmp.gt.s32.totalorder %v1393_v56, 0  ;;  %v5952_v46 = vsel %vm3719_vm2, 0, %v3789_v2 }
 0x17b   :  { %v4041_v4 = vand.u32 3, %v5952_v46  ;;  %v4043_v28 = vmul.f32 %v887_v10, %v885_v43  ;;  %v1319_v15 = vadd.s32 %v1317_v25, %v1315_v38  ;;  %v1395_v11 = vsel %vm1394_vm9, %v1393_v56, 0  ;;  %v5954_v25 = vld [vmem:[#allocation8_spill] sm:$0xff] }
 0x17c   :  { %v4048_v12 = vsel %vm450_vm7, %v453_v40, %v3953_v57  ;;  %v4050_v6 = vadd.f32 1.0, %v592_v9  ;;  %v1397_v63 = vand.u32 31, %v1395_v11  ;;  %v4054_v31 = vmul.f32 %v600_v0, %v3799_v29 }
 0x17d   :  { %v4056_v2 = vsel %vm2706_vm12, 0, %v2705_v49  ;;  %v1297_v33 = vadd.s32 %v1295_v17, %v1293_v26  ;;  %v1309_v43 = vshrl.u32 %v3986_v58, 16  ;;  %v4059_v51 = vadd.f32 0.041655596, %v742_v61 }
 0x17e   :  { %v749_v8 = vmul.f32 -0.00019511016, %v4014_v48  ;;  %v1176_v3 = vshll.u32 %v4034_v39, 30  ;;  %v4063_v57 = vsub.s32 32, %v1397_v63  ;;  %v889_v34 = vxor.u32 2147483648, %v4043_v28 }
 0x17f   :  { %v1015_v38 = vadd.s32 %v3825_v16, %v3808_v27  ;;  %v1287_v29 = vshrl.u32 %v3982_v19, 16  ;;  %v1320_v49 = vadd.s32 %v1319_v15, %v1309_v43  ;;  %v1035_v23 = vsub.s32 4294967266, %v4056_v2 }
 0x180   :  { %v1245_v58 = vshrl.u32 %v5913_v37, %v3866_v22  ;;  %v1266_v40 = vsel %vm1264_vm3, %v3901_v59, 2102212464  ;;  %vm769_vm2 = vcmp.lt.s32.totalorder %v5954_v25, 0  ;;  %v1311_v0 = vshrl.u32 %v4003_v44, 16 }
 0x181   :  { %v1298_v56 = vadd.s32 %v1297_v33, %v1287_v29  ;;  %v1409_v27 = vshll.u32 %v5920_v54, %v1397_v63  ;;  %v1410_v16 = vshrl.u32 %v5908_v60, %v4063_v57  ;;  %v4082_v19 = vsub.s32 %v4008_v62, %v1176_v3  ;;  %v5971_v33 = vld [vmem:[#allocation10_spill] sm:$0xff] }
 0x182   :  { %v1289_v22 = vshrl.u32 %v4001_v24, 16  ;;  %v4085_v61 = vshrl.u32 %v1395_v11, 5  ;;  %v1412_v59 = vshll.u32 %v5908_v60, %v1397_v63  ;;  %v1321_v10 = vadd.s32 %v1320_v49, %v1311_v0 }
 0x183   :  { %v1400_v26 = vshll.u32 %v5913_v37, %v1397_v63  ;;  %v1403_v17 = vshll.u32 %v5910_v35, %v1397_v63  ;;  %v1413_v46 = vshrl.u32 %v5909_v55, %v4063_v57  ;;  %v5955_v15 = vand.u32 2147483647, %v5954_v25 }
 0x184   :  { %v1401_v24 = vshrl.u32 %v5910_v35, %v4063_v57  ;;  %v1404_v62 = vshrl.u32 %v5911_v14, %v4063_v57  ;;  %v1406_v11 = vshll.u32 %v5911_v14, %v1397_v63  ;;  %v1407_v43 = vshrl.u32 %v5920_v54, %v4063_v57 }
 0x185   :  { %vm4094_vm3 = vcmp.le.f32.partialorder %v5955_v15, 0.7853982  ;;  %v1031_v3 = vsub.s32 32, %v4056_v2  ;;  %v1036_v29 = vadd.s32 127, %v1035_v23  ;;  %v4106_v49 = vadd.s32 %v1298_v56, %v1289_v22 }
 0x186   :  { %v1411_v0 = vor.u32 %v1410_v16, %v1409_v27  ;;  %v1265_v15 = vsel %vm1261_vm13, %v1245_v58, %v3897_v50  ;;  %v1267_v5 = vsel %vm1263_vm14, %v3899_v13, %v1266_v40  ;;  %v1414_v9 = vor.u32 %v1413_v46, %v1412_v59 }
 0x187   :  { %vm1418_vm0 = vcmp.lt.s32.totalorder %v4085_v61, 4  ;;  %vm1178_vm4 = vcmp.lt.s32.totalorder %v4082_v19, 0  ;;  %v1179_v63 = vsub.s32 0, %v4082_v19  ;;  %v4120_v23 = vadd.s32 %v4019_v41, %v1310_v30  ;;  %v5960_v30 = vld [vmem:[#allocation5_spill] sm:$0xff] }
 0x188   :  { %v5959_v56 = vand.u32 2147483647, %v3975_v47  ;;  %v1325_v50 = vadd.s32 1, %v1321_v10  ;;  %v4124_v58 = vor.u32 %v1401_v24, %v1400_v26  ;;  %v4126_v16 = vor.u32 %v1404_v62, %v1403_v17 }
 0x189   :  { %5958 = vst [vmem:[#allocation16_spill] sm:$0xff] %v4120_v23  ;;  %v4128_v13 = vor.u32 %v1407_v43, %v1406_v11  ;;  %vm1324_vm13 = vc.u32 %v4106_v49, %v4120_v23  ;;  %vm1415_vm14 = vcmp.lt.s32.totalorder %v4085_v61, 1  ;;  %vm1417_vm7 = vcmp.lt.s32.totalorder %v4085_v61, 3 }
 0x18a   :  { %v1390_v27 = vand.u32 8388607, %v5959_v56  ;;  %v1424_v44 = vsel %vm1418_vm0, %v1411_v0, 920167782  ;;  %vm448_vm5 = vweird.f32 %v5960_v30  ;;  %v890_v41 = vsel %vm769_vm2, %v889_v34, %v4043_v28 }
 0x18b   :  { %v1037_v40 = vshll.u32 %v1036_v29, 23  ;;  %v1268_v22 = vsel %vm1262_vm6, %v1265_v15, %v1267_v5  ;;  %v1428_v59 = vsel %vm1418_vm0, %v1414_v9, 1326507024  ;;  %v750_v26 = vadd.f32 0.008332121, %v749_v8 }
 0x18c   :  { %v1033_v17 = vshrl.u32 %v1015_v38, %v1031_v3  ;;  %v1180_v46 = vsel %vm1178_vm4, %v1179_v63, %v4082_v19  ;;  %v1391_v24 = vor.u32 8388608, %v1390_v27  ;;  %v1326_v62 = vsel %vm1324_vm13, %v1325_v50, %v1321_v10 }
 0x18d   :  { %vm1416_vm8 = vcmp.lt.s32.totalorder %v4085_v61, 2  ;;  %v1423_v28 = vsel %vm1415_vm14, %v4124_v58, %v4126_v16  ;;  %v1425_v42 = vsel %vm1417_vm7, %v4128_v13, %v1424_v44  ;;  %v4158_v5 = vsel %vm4094_vm3, %v5954_v25, %v890_v41 }
 0x18e   :  { %v1322_v8 = vmul.u32 %v3939_v52, %v1268_v22  ;;  %v1427_v34 = vsel %vm1415_vm14, %v4126_v16, %v4128_v13  ;;  %v1429_v38 = vsel %vm1417_vm7, %v1411_v0, %v1428_v59  ;;  %v5961_v9 = vsub.s32 4, %v5953_v18  ;;  %v4174_v52 = vpop.f32.mrf.mxu2 }
 0x18f   :  { %v1032_v11 = vshll.u32 %v3942_v20, %v4056_v2  ;;  %v1038_v43 = vor.u32 4788187, %v1037_v40  ;;  %v1181_v3 = vclz %v1180_v46  ;;  %5962 = vst [vmem:[#allocation7_spill] sm:$0xff] %v4174_v52  ;;  %vm605_vm6 = vcmp.eq.s32.totalorder %v4041_v4, 0 }
 0x190   :  { %v738_v10 = vsel %vm615_vm15, %v5961_v9, %v5953_v18  ;;  %v751_v29 = vmul.f32 %v750_v26, %v4014_v48  ;;  %v4178_v15 = vadd.s32 %v1326_v62, %v1322_v8  ;;  %v4182_v0 = vsel %vm1416_vm8, %v1423_v28, %v1425_v42 }
 0x191   :  { %v4186_v18 = vmul.f32 %v4158_v5, %v4158_v5  ;;  %v1034_v63 = vor.u32 %v1033_v17, %v1032_v11  ;;  %v4190_v20 = vsel %vm1416_vm8, %v1427_v34, %v1429_v38  ;;  %v4192_v2 = vshll.u32 %v1391_v24, 8 }
 0x192   :  { %v606_v56 = vxor.u32 2147483648, %v4054_v31  ;;  %v609_v27 = vxor.u32 2147483648, %v4050_v6  ;;  %v740_v50 = vsel %vm3922_vm1, 0, %v738_v10  ;;  %v744_v44 = vmul.f32 %v4059_v51, %v4014_v48 }
 0x193   :  { %v1039_v41 = vand.u32 2147483647, %v1038_v43  ;;  %v2708_v40 = vadd.s32 4294967294, %v1181_v3  ;;  %v5852_v22 = vshrl.u32 %v4182_v0, 16  ;;  %v1540_v59 = vand.u32 2139095040, %v4174_v52  ;;  %v5965_v43 = vld [vmem:[#allocation9_spill] sm:$0xff] }
 0x194   :  { %v4205_v26 = vsel %vm448_vm5, nan, %v4048_v12  ;;  %v752_v17 = vadd.f32 -0.16666654, %v751_v29  ;;  %v1328_v46 = vadd.s32 536870912, %v4178_v15  ;;  %v5851_v21 = vshrl.u32 %v4190_v20, 16 }
 0x195   :  { %5963 = vst [vmem:[#allocation17_spill] sm:$0xff] %v4205_v26  ;;  %vm608_vm15 = vcmp.eq.s32.totalorder %v4041_v4, 2  ;;  %v896_v51 = vmul.f32 -0.001358992, %v4186_v18  ;;  %v1041_v24 = vcvt.s32.f32 %v1034_v63  ;;  %v1432_v62 = vand.u32 65535, %v4192_v2 }
 0x196   :  { %v4215_v28 = vsel %vm605_vm6, %v4050_v6, %v606_v56  ;;  %v4218_v12 = vsel %vm608_vm15, %v609_v27, %v4054_v31  ;;  %v745_v30 = vadd.f32 -0.4999988, %v744_v44  ;;  %v4220_v42 = vand.u32 3, %v740_v50 }
 0x197   :  { %v1042_v8 = vmul.f32 %v1041_v24, %v1039_v41  ;;  %vm2709_vm1 = vcmp.lt.s32.totalorder %v2708_v40, 0  ;;  %v4224_v34 = vmul.u32 %v5852_v22, %v1432_v62  ;;  %v1541_v38 = vshrl.u32 %v1540_v59, 23 }
 0x198   :  { %v753_v9 = vmul.f32 %v752_v17, %v4014_v48  ;;  %v903_v10 = vmul.f32 -0.00019511016, %v4186_v18  ;;  %v4228_v11 = vshrl.u32 %v1328_v46, 30  ;;  %v4232_v6 = vmul.u32 %v5851_v21, %v1432_v62 }
 0x199   :  { %v897_v31 = vadd.f32 0.041655596, %v896_v51  ;;  %v5966_v3 = vand.u32 2147483647, %v5965_v43  ;;  %vm923_vm11 = vcmp.lt.s32.totalorder %v5965_v43, 0  ;;  %v1456_v63 = vand.u32 65535, %v4182_v0 }
 0x19a   :  { %5964 = vst [vmem:[#allocation14_spill] sm:$0xff] %v4228_v11  ;;  %v746_v56 = vmul.f32 %v745_v30, %v4014_v48  ;;  %v891_v27 = vsub.s32 4, %v3677_v45  ;;  %v4244_v50 = vsel %vm2709_vm1, 0, %v2708_v40  ;;  %v1434_v44 = vand.u32 65535, %v4190_v20 }
 0x19b   :  { %vm4236_vm10 = vcmp.le.f32.partialorder %v5966_v3, 0.7853982  ;;  %v1043_v41 = vxor.u32 2147483648, %v1042_v8  ;;  %v1433_v59 = vshrl.u32 %v4192_v2, 16  ;;  %v1462_v17 = vshll.u32 %v4224_v34, 16 }
 0x19c   :  { %v2716_v46 = vadd.s32 4294967169, %v1541_v38  ;;  %v754_v51 = vadd.f32 1.0, %v753_v9  ;;  %v904_v24 = vadd.f32 0.008332121, %v903_v10  ;;  %v1330_v3 = vshll.u32 %v4228_v11, 30 }
 0x19d   :  { %v1440_v21 = vshll.u32 %v4232_v6, 16  ;;  %v898_v48 = vmul.f32 %v897_v31, %v4186_v18  ;;  %v1189_v30 = vsub.s32 4294967266, %v4244_v50  ;;  %v1458_v40 = vmul.u32 %v1456_v63, %v1432_v62 }
 0x19e   :  { %v4253_v22 = vmul.u32 %v1456_v63, %v1433_v59  ;;  %v747_v26 = vadd.f32 1.0, %v746_v56  ;;  %v892_v47 = vsel %vm769_vm2, %v891_v27, %v3677_v45  ;;  %v1436_v23 = vmul.u32 %v1434_v44, %v1432_v62 }
 0x19f   :  { %v4258_v38 = vmul.u32 %v1434_v44, %v1433_v59  ;;  %v1044_v9 = vsel %vm923_vm11, %v1043_v41, %v1042_v8  ;;  %vm1466_vm12 = vc.u32 %v1458_v40, %v1462_v17  ;;  %v4262_v10 = vadd.s32 %v1462_v17, %v1458_v40 }
 0x1a0   :  { %v1547_v31 = vadd.s32 1, %v2716_v46  ;;  %v905_v11 = vmul.f32 %v904_v24, %v4186_v18  ;;  %v4266_v63 = vsub.s32 %v4178_v15, %v1330_v3  ;;  %vm1444_vm9 = vc.u32 %v1436_v23, %v1440_v21 }
 0x1a1   :  { %v1446_v56 = vadd.s32 %v1440_v21, %v1436_v23  ;;  %vm604_vm4 = vcmp.lt.s32.totalorder %v4041_v4, 2  ;;  %v755_v45 = vmul.f32 %v754_v51, %v3991_v32  ;;  %v899_v62 = vadd.f32 -0.4999988, %v898_v48 }
 0x1a2   :  { %v1190_v27 = vadd.s32 127, %v1189_v30  ;;  %v5858_v44 = vshll.u32 %v4253_v22, 16  ;;  %v4274_v8 = vsel %vm4236_vm10, %v5965_v43, %v1044_v9  ;;  %v1185_v41 = vsub.s32 32, %v4244_v50 }
 0x1a3   :  { %v1442_v15 = vshll.u32 %v4258_v38, 16  ;;  %v1467_v17 = vsel %vm1466_vm12, 1, %v5923_v7  ;;  %vm759_vm2 = vcmp.eq.s32.totalorder %v4220_v42, 0  ;;  %vm762_vm13 = vcmp.eq.s32.totalorder %v4220_v42, 2 }
 0x1a4   :  { %v1445_v32 = vsel %vm1444_vm9, 1, %v5923_v7  ;;  %v5969_v23 = vshrl.u32 %v4182_v0, 16  ;;  %vm1470_vm5 = vc.u32 %v4262_v10, %v5858_v44  ;;  %vm1548_vm6 = vcmp.gt.s32.totalorder %v1547_v31, 0 }
 0x1a5   :  { %v906_v46 = vadd.f32 -0.16666654, %v905_v11  ;;  %v1333_v51 = vsub.s32 0, %v4266_v63  ;;  %v5970_v24 = vshrl.u32 %v4190_v20, 16  ;;  %vm1448_vm15 = vc.u32 %v1446_v56, %v1442_v15 }
 0x1a6   :  { %v1461_v21 = vmul.u32 %v5969_v23, %v1433_v59  ;;  %v1169_v48 = vadd.s32 %v3972_v53, %v3957_v36  ;;  %v1191_v30 = vshll.u32 %v1190_v27, 23  ;;  %vm1332_vm1 = vcmp.lt.s32.totalorder %v4266_v63, 0 }
 0x1a7   :  { %v1439_v3 = vmul.u32 %v5970_v24, %v1433_v59  ;;  %v4295_v40 = vmul.f32 %v4274_v8, %v4274_v8  ;;  %v1471_v11 = vsel %vm1470_vm5, 1, %v5923_v7  ;;  %v1549_v23 = vsel %vm1548_vm6, %v1547_v31, 0 }
 0x1a8   :  { %v1469_v0 = vadd.s32 %v1467_v17, %v1461_v21  ;;  %v763_v44 = vxor.u32 2147483648, %v747_v26  ;;  %v894_v20 = vsel %vm4094_vm3, 0, %v892_v47  ;;  %v1187_v59 = vshrl.u32 %v1169_v48, %v1185_v41 }
 0x1a9   :  { %v1447_v9 = vadd.s32 %v1445_v32, %v1439_v3  ;;  %v1449_v56 = vsel %vm1448_vm15, 1, %v5923_v7  ;;  %v760_v36 = vxor.u32 2147483648, %v755_v45  ;;  %v900_v53 = vmul.f32 %v899_v62, %v4186_v18 }
 0x1aa   :  { %v907_v27 = vmul.f32 %v906_v46, %v4186_v18  ;;  %v1334_v15 = vsel %vm1332_vm1, %v1333_v51, %v4266_v63  ;;  %v1186_v17 = vshll.u32 %v4082_v19, %v4244_v50  ;;  %v1192_v32 = vor.u32 4788187, %v1191_v30 }
 0x1ab   :  { %v1473_v21 = vadd.s32 %v1471_v11, %v1469_v0  ;;  %v1551_v31 = vand.u32 31, %v1549_v23  ;;  %v4310_v47 = vsel %vm604_vm4, %v4215_v28, %v4218_v12  ;;  %v1045_v41 = vsub.s32 4, %v5971_v33 }
 0x1ac   :  { %v1057_v62 = vmul.f32 -0.00019511016, %v4295_v40  ;;  %v1451_v24 = vadd.s32 %v1449_v56, %v1447_v9  ;;  %v4314_v18 = vand.u32 3, %v894_v20  ;;  %v1188_v46 = vor.u32 %v1187_v59, %v1186_v17 }
 0x1ad   :  { %v1335_v51 = vclz %v1334_v15  ;;  %v1463_v19 = vshrl.u32 %v4224_v34, 16  ;;  %v4319_v50 = vsel %vm759_vm2, %v747_v26, %v760_v36  ;;  %v4323_v4 = vsel %vm762_vm13, %v763_v44, %v755_v45 }
 0x1ae   :  { %v908_v28 = vadd.f32 1.0, %v907_v27  ;;  %v1441_v12 = vshrl.u32 %v4232_v6, 16  ;;  %v4326_v3 = vadd.f32 1.0, %v900_v53  ;;  %v1193_v48 = vand.u32 2147483647, %v1192_v32  ;;  %v5972_v32 = vld [vmem:[#allocation12_spill] sm:$0xff] }
 0x1af   :  { %v1474_v30 = vadd.s32 %v1473_v21, %v1463_v19  ;;  %v4328_v0 = vsub.s32 32, %v1551_v31  ;;  %v4333_v34 = vsel %vm923_vm11, %v1045_v41, %v5971_v33  ;;  %v1050_v26 = vmul.f32 -0.001358992, %v4295_v40 }
 0x1b0   :  { %v1058_v9 = vadd.f32 0.008332121, %v1057_v62  ;;  %v1452_v11 = vadd.s32 %v1451_v24, %v1441_v12  ;;  %v1195_v45 = vcvt.s32.f32 %v1188_v46  ;;  %v2711_v44 = vadd.s32 4294967294, %v1335_v51 }
 0x1b1   :  { %v1399_v6 = vshrl.u32 %v5913_v37, %v4063_v57  ;;  %v1465_v20 = vshrl.u32 %v4253_v22, 16  ;;  %v4340_v59 = vmul.f32 %v908_v28, %v4158_v5  ;;  %v1420_v56 = vsel %vm1418_vm0, %v4128_v13, 2102212464 }
 0x1b2   :  { %v1443_v36 = vshrl.u32 %v4258_v38, 16  ;;  %v5859_v53 = vand.u32 2147483647, %v4174_v52  ;;  %v1196_v27 = vmul.f32 %v1195_v45, %v1193_v48  ;;  %v1566_v17 = vshll.u32 %v5908_v60, %v1551_v31 }
 0x1b3   :  { %v1475_v15 = vadd.s32 %v1474_v30, %v1465_v20  ;;  %v1567_v57 = vshrl.u32 %v5909_v55, %v4328_v0  ;;  %vm1077_vm3 = vcmp.lt.s32.totalorder %v5972_v32, 0  ;;  %v4353_v5 = vshrl.u32 %v1549_v23, 5  ;;  %v4394_v20 = vpop.f32.mrf.mxu2 }
 0x1b4   :  { %v4351_v21 = vadd.s32 %v1452_v11, %v1443_v36  ;;  %v1563_v33 = vshll.u32 %v5920_v54, %v1551_v31  ;;  %v1564_v13 = vshrl.u32 %v5908_v60, %v4328_v0  ;;  %vm2712_vm0 = vcmp.lt.s32.totalorder %v2711_v44, 0  ;;  %5977 = vst [vmem:[#allocation15_spill] sm:$0xff] %v4394_v20 }
 0x1b5   :  { %v1419_v38 = vsel %vm1415_vm14, %v1399_v6, %v4124_v58  ;;  %v1421_v41 = vsel %vm1417_vm7, %v4126_v16, %v1420_v56  ;;  %v5973_v62 = vshll.u32 %v4253_v22, 16  ;;  %v1557_v23 = vshll.u32 %v5910_v35, %v1551_v31 }
 0x1b6   :  { %v1558_v46 = vshrl.u32 %v5911_v14, %v4328_v0  ;;  %v1560_v51 = vshll.u32 %v5911_v14, %v1551_v31  ;;  %v1561_v19 = vshrl.u32 %v5920_v54, %v4328_v0  ;;  %vm758_vm14 = vcmp.lt.s32.totalorder %v4220_v42, 2 }
 0x1b7   :  { %v4367_v24 = vadd.s32 %v4262_v10, %v5973_v62  ;;  %v5974_v58 = vand.u32 2147483647, %v5972_v32  ;;  %v1479_v22 = vadd.s32 1, %v1475_v15  ;;  %v1554_v10 = vshll.u32 %v5913_v37, %v1551_v31 }
 0x1b8   :  { %v1555_v28 = vshrl.u32 %v5910_v35, %v4328_v0  ;;  %v1568_v12 = vor.u32 %v1567_v57, %v1566_v17  ;;  %vm913_vm11 = vcmp.eq.s32.totalorder %v4314_v18, 0  ;;  %v1051_v48 = vadd.f32 0.041655596, %v1050_v26 }
 0x1b9   :  { %vm4378_vm7 = vcmp.le.f32.partialorder %v5974_v58, 0.7853982  ;;  %vm1478_vm12 = vc.u32 %v4351_v21, %v4367_v24  ;;  %v1565_v30 = vor.u32 %v1564_v13, %v1563_v33  ;;  %vm1572_vm9 = vcmp.lt.s32.totalorder %v4353_v5, 4 }
 0x1ba   :  { %v1059_v11 = vmul.f32 %v1058_v9, %v4295_v40  ;;  %v1197_v45 = vxor.u32 2147483648, %v1196_v27  ;;  %v1422_v6 = vsel %vm1416_vm8, %v1419_v38, %v1421_v41  ;;  %v1544_v31 = vand.u32 8388607, %v5859_v53 }
 0x1bb   :  { %v4397_v56 = vsel %vm2712_vm0, 0, %v2711_v44  ;;  %v4399_v26 = vor.u32 %v1558_v46, %v1557_v23  ;;  %v4401_v36 = vor.u32 %v1561_v19, %v1560_v51  ;;  %vm1569_vm4 = vcmp.lt.s32.totalorder %v4353_v5, 1  ;;  %v5978_v23 = vld [vmem:[#allocation6_spill] sm:$0xff] }
 0x1bc   :  { %vm912_vm2 = vcmp.lt.s32.totalorder %v4314_v18, 2  ;;  %v1480_v9 = vsel %vm1478_vm12, %v1479_v22, %v1475_v15  ;;  %v4405_v17 = vor.u32 %v1555_v28, %v1554_v10  ;;  %vm1571_vm8 = vcmp.lt.s32.totalorder %v4353_v5, 3 }
 0x1bd   :  { %v1582_v61 = vsel %vm1572_vm9, %v1568_v12, 1326507024  ;;  %v914_v57 = vxor.u32 2147483648, %v4340_v59  ;;  %v1052_v44 = vmul.f32 %v1051_v48, %v4295_v40  ;;  %v1476_v33 = vmul.u32 %v4192_v2, %v1422_v6 }
 0x1be   :  { %v1578_v13 = vsel %vm1572_vm9, %v1565_v30, 920167782  ;;  %v1198_v38 = vsel %vm1077_vm3, %v1197_v45, %v1196_v27  ;;  %v1343_v15 = vsub.s32 4294967266, %v4397_v56  ;;  %v1545_v41 = vor.u32 8388608, %v1544_v31 }
 0x1bf   :  { %v1694_v62 = vand.u32 2139095040, %v4394_v20  ;;  %vm602_vm13 = vweird.f32 %v5978_v23  ;;  %vm756_vm5 = vweird.f32 %v5941_v1  ;;  %v4421_v46 = vadd.s32 %v1480_v9, %v1476_v33 }
 0x1c0   :  { %vm1570_vm6 = vcmp.lt.s32.totalorder %v4353_v5, 2  ;;  %v1581_v2 = vsel %vm1569_vm4, %v4399_v26, %v4401_v36  ;;  %v1583_v27 = vsel %vm1571_vm8, %v1565_v30, %v1582_v61  ;;  %v917_v51 = vxor.u32 2147483648, %v4326_v3 }
 0x1c1   :  { %v1060_v19 = vadd.f32 -0.16666654, %v1059_v11  ;;  %v1577_v58 = vsel %vm1569_vm4, %v4405_v17, %v4399_v26  ;;  %v1579_v22 = vsel %vm1571_vm8, %v4401_v36, %v1578_v13  ;;  %v765_v10 = vsel %vm758_vm14, %v4319_v50, %v4323_v4 }
 0x1c2   :  { %vm910_vm15 = vweird.f32 %v5954_v25  ;;  %vm916_vm1 = vcmp.eq.s32.totalorder %v4314_v18, 2  ;;  %v1048_v28 = vsel %vm4236_vm10, 0, %v4333_v34  ;;  %v4450_v12 = vsel %vm4378_vm7, %v5972_v32, %v1198_v38 }
 0x1c3   :  { %v915_v48 = vsel %vm913_vm11, %v4326_v3, %v914_v57  ;;  %v1053_v30 = vadd.f32 -0.4999988, %v1052_v44  ;;  %v1344_v42 = vadd.s32 127, %v1343_v15  ;;  %v4457_v50 = vsel %vm1570_vm6, %v1581_v2, %v1583_v27  ;;  %v5979_v15 = vld [vmem:[#allocation16_spill] sm:$0xff] }
 0x1c4   :  { %v1482_v4 = vadd.s32 536870912, %v4421_v46  ;;  %v4462_v29 = vsel %vm1570_vm6, %v1577_v58, %v1579_v22  ;;  %v4464_v34 = vshll.u32 %v1545_v41, 8  ;;  %v1695_v11 = vshrl.u32 %v1694_v62, 23 }
 0x1c5   :  { %v918_v45 = vsel %vm916_vm1, %v917_v51, %v4340_v59  ;;  %v1061_v6 = vmul.f32 %v1060_v19, %v4295_v40  ;;  %v4468_v3 = vand.u32 3, %v1048_v28  ;;  %v4472_v31 = vmul.f32 %v4450_v12, %v4450_v12 }
 0x1c6   :  { %v919_v9 = vsel %vm912_vm2, %v915_v48, %v918_v45  ;;  %v1339_v61 = vsub.s32 32, %v4397_v56  ;;  %v1589_v57 = vshrl.u32 %v4457_v50, 16  ;;  %v2719_v44 = vadd.s32 4294967169, %v1695_v11 }
 0x1c7   :  { %v1054_v33 = vmul.f32 %v1053_v30, %v4295_v40  ;;  %v1199_v59 = vsub.s32 4, %v4034_v39  ;;  %v1345_v13 = vshll.u32 %v1344_v42, 23  ;;  %v1611_v38 = vshrl.u32 %v4462_v29, 16 }
 0x1c8   :  { %v1323_v41 = vadd.s32 %v5979_v15, %v4106_v49  ;;  %v4483_v62 = vshrl.u32 %v1482_v4, 30  ;;  %v1586_v18 = vand.u32 65535, %v4464_v34  ;;  %v1701_v2 = vadd.s32 1, %v2719_v44 }
 0x1c9   :  { %v4489_v27 = vsel %vm602_vm13, nan, %v4310_v47  ;;  %v4493_v40 = vsel %vm756_vm5, nan, %v765_v10  ;;  %v1062_v51 = vadd.f32 1.0, %v1061_v6  ;;  %v1204_v19 = vmul.f32 -0.001358992, %v4472_v31 }
 0x1ca   :  { %5980 = vst [vmem:[#allocation13_spill] sm:$0xff] %v4483_v62  ;;  %vm1070_vm10 = vcmp.eq.s32.totalorder %v4468_v3, 2  ;;  %v1211_v49 = vmul.f32 -0.00019511016, %v4472_v31  ;;  %v1341_v58 = vshrl.u32 %v1323_v41, %v1339_v61  ;;  %v4500_v22 = vmul.u32 %v1589_v57, %v1586_v18 }
 0x1cb   :  { %5981 = vst [vmem:[#allocation8_spill] sm:$0xff] %v4489_v27  ;;  %vm1702_vm0 = vcmp.gt.s32.totalorder %v1701_v2, 0  ;;  %v4504_v47 = vsel %vm910_vm15, nan, %v919_v9  ;;  %v1055_v1 = vadd.f32 1.0, %v1054_v33  ;;  %v1346_v23 = vor.u32 4788187, %v1345_v13 }
 0x1cc   :  { %5982 = vst [vmem:[#allocation5_spill] sm:$0xff] %v4493_v40  ;;  %v4508_v10 = vmul.u32 %v1611_v38, %v1586_v18  ;;  %vm1067_vm14 = vcmp.eq.s32.totalorder %v4468_v3, 0  ;;  %v1200_v28 = vsel %vm1077_vm3, %v1199_v59, %v4034_v39  ;;  %v1340_v48 = vshll.u32 %v4266_v63, %v4397_v56 }
 0x1cd   :  { %5983 = vst [vmem:[#allocation9_spill] sm:$0xff] %v4504_v47  ;;  %v1484_v30 = vshll.u32 %v4483_v62, 30  ;;  %v1588_v25 = vand.u32 65535, %v4457_v50  ;;  %v1063_v42 = vmul.f32 %v1062_v51, %v4274_v8  ;;  %v1205_v4 = vadd.f32 0.041655596, %v1204_v19 }
 0x1ce   :  { %v1610_v11 = vand.u32 65535, %v4462_v29  ;;  %v1703_v45 = vsel %vm1702_vm0, %v1701_v2, 0  ;;  %v1212_v6 = vadd.f32 0.008332121, %v1211_v49  ;;  %v1342_v9 = vor.u32 %v1341_v58, %v1340_v48  ;;  %v5984_v48 = vld [vmem:[#allocation19_spill] sm:$0xff] }
 0x1cf   :  { %v1587_v61 = vshrl.u32 %v4464_v34, 16  ;;  %v1594_v44 = vshll.u32 %v4500_v22, 16  ;;  %v1071_v39 = vxor.u32 2147483648, %v1055_v1  ;;  %v1202_v63 = vsel %vm4378_vm7, 0, %v1200_v28 }
 0x1d0   :  { %v1347_v56 = vand.u32 2147483647, %v1346_v23  ;;  %v1616_v33 = vshll.u32 %v4508_v10, 16  ;;  %v4526_v59 = vsub.s32 %v4421_v46, %v1484_v30  ;;  %v1590_v8 = vmul.u32 %v1588_v25, %v1586_v18 }
 0x1d1   :  { %v4528_v13 = vmul.u32 %v1588_v25, %v1587_v61  ;;  %v1705_v15 = vand.u32 31, %v1703_v45  ;;  %v1068_v41 = vxor.u32 2147483648, %v1063_v42  ;;  %v1206_v2 = vmul.f32 %v1205_v4, %v4472_v31 }
 0x1d2   :  { %v1612_v51 = vmul.u32 %v1610_v11, %v1586_v18  ;;  %v4531_v19 = vmul.u32 %v1610_v11, %v1587_v61  ;;  %v1213_v49 = vmul.f32 %v1212_v6, %v4472_v31  ;;  %v4534_v16 = vand.u32 3, %v1202_v63  ;;  %v4555_v63 = vpop.f32.mrf.mxu2 }
 0x1d3   :  { %v1349_v58 = vcvt.s32.f32 %v1342_v9  ;;  %v1600_v23 = vadd.s32 %v1594_v44, %v1590_v8  ;;  %v4538_v46 = vsel %vm1070_vm10, %v1071_v39, %v1063_v42  ;;  %vm1598_vm3 = vc.u32 %v1590_v8, %v1594_v44  ;;  %5986 = vst [vmem:[#allocation6_spill] sm:$0xff] %v4555_v63 }
 0x1d4   :  { %vm1620_vm7 = vc.u32 %v1612_v51, %v1616_v33  ;;  %v4540_v28 = vadd.s32 %v1616_v33, %v1612_v51  ;;  %vm1231_vm11 = vcmp.lt.s32.totalorder %v5984_v48, 0  ;;  %v1487_v18 = vsub.s32 0, %v4526_v59 }
 0x1d5   :  { %v1350_v30 = vmul.f32 %v1349_v58, %v1347_v56  ;;  %v1596_v25 = vshll.u32 %v4528_v13, 16  ;;  %v4545_v4 = vsub.s32 32, %v1705_v15  ;;  %v4549_v11 = vsel %vm1067_vm14, %v1055_v1, %v1068_v41 }
 0x1d6   :  { %v1207_v6 = vadd.f32 -0.4999988, %v1206_v2  ;;  %vm1486_vm12 = vcmp.lt.s32.totalorder %v4526_v59, 0  ;;  %v5860_v42 = vshll.u32 %v4531_v19, 16  ;;  %v1214_v9 = vadd.f32 -0.16666654, %v1213_v49 }
 0x1d7   :  { %5985 = vst [vmem:[#allocation10_spill] sm:$0xff] %v4545_v4  ;;  %v1599_v44 = vsel %vm1598_vm3, 1, %v5923_v7  ;;  %vm1602_vm2 = vc.u32 %v1600_v23, %v1596_v25  ;;  %v1621_v39 = vsel %vm1620_vm7, 1, %v5923_v7  ;;  %v1593_v56 = vmul.u32 %v1589_v57, %v1587_v61 }
 0x1d8   :  { %v1615_v1 = vmul.u32 %v1611_v38, %v1587_v61  ;;  %vm1624_vm13 = vc.u32 %v4540_v28, %v5860_v42  ;;  %v5987_v8 = vand.u32 2147483647, %v5984_v48  ;;  %v1351_v2 = vxor.u32 2147483648, %v1350_v30 }
 0x1d9   :  { %v1488_v51 = vsel %vm1486_vm12, %v1487_v18, %v4526_v59  ;;  %v1717_v50 = vshll.u32 %v5920_v54, %v1705_v15  ;;  %v1718_v29 = vshrl.u32 %v5908_v60, %v4545_v4  ;;  %v1601_v57 = vadd.s32 %v1599_v44, %v1593_v56 }
 0x1da   :  { %vm4567_vm5 = vcmp.le.f32.partialorder %v5987_v8, 0.7853982  ;;  %v1603_v38 = vsel %vm1602_vm2, 1, %v5923_v7  ;;  %v1623_v61 = vadd.s32 %v1621_v39, %v1615_v1  ;;  %v4576_v49 = vshrl.u32 %v1703_v45, 5 }
 0x1db   :  { %v1625_v58 = vsel %vm1624_vm13, 1, %v5923_v7  ;;  %v1708_v23 = vshll.u32 %v5913_v37, %v1705_v15  ;;  %v1711_v25 = vshll.u32 %v5910_v35, %v1705_v15  ;;  %v1848_v8 = vand.u32 2139095040, %v4555_v63 }
 0x1dc   :  { %vm1066_vm15 = vcmp.lt.s32.totalorder %v4468_v3, 2  ;;  %v1709_v18 = vshrl.u32 %v5910_v35, %v4545_v4  ;;  %v1712_v44 = vshrl.u32 %v5911_v14, %v4545_v4  ;;  %v1714_v39 = vshll.u32 %v5911_v14, %v1705_v15 }
 0x1dd   :  { %v1715_v45 = vshrl.u32 %v5920_v54, %v4545_v4  ;;  %v1215_v56 = vmul.f32 %v1214_v9, %v4472_v31  ;;  %v1719_v1 = vor.u32 %v1718_v29, %v1717_v50  ;;  %v1720_v53 = vshll.u32 %v5908_v60, %v1705_v15 }
 0x1de   :  { %v1721_v42 = vshrl.u32 %v5909_v55, %v4545_v4  ;;  %v1352_v33 = vsel %vm1231_vm11, %v1351_v2, %v1350_v30  ;;  %v1489_v47 = vclz %v1488_v51  ;;  %v1627_v40 = vadd.s32 %v1625_v58, %v1623_v61 }
 0x1df   :  { %vm1726_vm1 = vcmp.lt.s32.totalorder %v4576_v49, 4  ;;  %v1595_v27 = vshrl.u32 %v4500_v22, 16  ;;  %v1605_v52 = vadd.s32 %v1603_v38, %v1601_v57  ;;  %v1617_v32 = vshrl.u32 %v4508_v10, 16 }
 0x1e0   :  { %v5990_v9 = vand.u32 2147483647, %v4394_v20  ;;  %v4601_v29 = vor.u32 %v1709_v18, %v1708_v23  ;;  %v4603_v15 = vor.u32 %v1712_v44, %v1711_v25  ;;  %v4605_v4 = vor.u32 %v1715_v45, %v1714_v39  ;;  %v5992_v25 = vld [vmem:[#allocation14_spill] sm:$0xff] }
 0x1e1   :  { %v1849_v62 = vshrl.u32 %v1848_v8, 23  ;;  %v1722_v30 = vor.u32 %v1721_v42, %v1720_v53  ;;  %vm1723_vm10 = vcmp.lt.s32.totalorder %v4576_v49, 1  ;;  %vm1725_vm0 = vcmp.lt.s32.totalorder %v4576_v49, 3 }
 0x1e2   :  { %v1698_v50 = vand.u32 8388607, %v5990_v9  ;;  %v1732_v22 = vsel %vm1726_vm1, %v1719_v1, 920167782  ;;  %v1208_v10 = vmul.f32 %v1207_v6, %v4472_v31  ;;  %v1216_v2 = vadd.f32 1.0, %v1215_v56 }
 0x1e3   :  { %v4615_v51 = vsel %vm4567_vm5, %v5984_v48, %v1352_v33  ;;  %v1628_v57 = vadd.s32 %v1627_v40, %v1617_v32  ;;  %v2714_v38 = vadd.s32 4294967294, %v1489_v47  ;;  %v1606_v61 = vadd.s32 %v1605_v52, %v1595_v27 }
 0x1e4   :  { %5991 = vst [vmem:[#allocation16_spill] sm:$0xff] %v4615_v51  ;;  %v1619_v53 = vshrl.u32 %v4531_v19, 16  ;;  %v1699_v42 = vor.u32 8388608, %v1698_v50  ;;  %vm1064_vm14 = vweird.f32 %v5965_v43  ;;  %vm1724_vm3 = vcmp.lt.s32.totalorder %v4576_v49, 2 }
 0x1e5   :  { %v1731_v31 = vsel %vm1723_vm10, %v4601_v29, %v4603_v15  ;;  %v1733_v6 = vsel %vm1725_vm0, %v4605_v4, %v1732_v22  ;;  %v2722_v33 = vadd.s32 4294967169, %v1849_v62  ;;  %v1073_v52 = vsel %vm1066_vm15, %v4549_v11, %v4538_v46 }
 0x1e6   :  { %v1553_v32 = vshrl.u32 %v5913_v37, %v4328_v0  ;;  %v1597_v27 = vshrl.u32 %v4528_v13, 16  ;;  %v1736_v40 = vsel %vm1726_vm1, %v1722_v30, 1326507024  ;;  %v1209_v47 = vadd.f32 1.0, %v1208_v10 }
 0x1e7   :  { %v1217_v58 = vmul.f32 %v1216_v2, %v4450_v12  ;;  %vm1221_vm7 = vcmp.eq.s32.totalorder %v4534_v16, 0  ;;  %vm1224_vm12 = vcmp.eq.s32.totalorder %v4534_v16, 2  ;;  %v1574_v3 = vsel %vm1572_vm9, %v4401_v36, 2102212464 }
 0x1e8   :  { %v1629_v62 = vadd.s32 %v1628_v57, %v1619_v53  ;;  %v4644_v0 = vmul.f32 %v4615_v51, %v4615_v51  ;;  %vm2715_vm2 = vcmp.lt.s32.totalorder %v2714_v38, 0  ;;  %v4646_v13 = vadd.s32 %v1606_v61, %v1597_v27 }
 0x1e9   :  { %v4650_v46 = vsel %vm1724_vm3, %v1731_v31, %v1733_v6  ;;  %v1735_v12 = vsel %vm1723_vm10, %v4603_v15, %v4605_v4  ;;  %v1737_v36 = vsel %vm1725_vm0, %v1719_v1, %v1736_v40  ;;  %v4658_v11 = vshll.u32 %v1699_v42, 8 }
 0x1ea   :  { %v1855_v23 = vadd.s32 1, %v2722_v33  ;;  %v1353_v8 = vsub.s32 4, %v5992_v25  ;;  %v1573_v18 = vsel %vm1569_vm4, %v1553_v32, %v4405_v17  ;;  %v1575_v44 = vsel %vm1571_vm8, %v4399_v26, %v1574_v3 }
 0x1eb   :  { %v5993_v39 = vshll.u32 %v4531_v19, 16  ;;  %v1225_v56 = vxor.u32 2147483648, %v1209_v47  ;;  %v4672_v1 = vsel %vm2715_vm2, 0, %v2714_v38  ;;  %v1633_v9 = vadd.s32 1, %v1629_v62 }
 0x1ec   :  { %v5868_v50 = vshrl.u32 %v4650_v46, 16  ;;  %v1222_v30 = vxor.u32 2147483648, %v1217_v58  ;;  %v1358_v22 = vmul.f32 -0.001358992, %v4644_v0  ;;  %v4680_v26 = vsel %vm1724_vm3, %v1735_v12, %v1737_v36 }
 0x1ed   :  { %v4670_v45 = vadd.s32 %v4540_v28, %v5993_v39  ;;  %v1365_v17 = vmul.f32 -0.00019511016, %v4644_v0  ;;  %v1576_v19 = vsel %vm1570_vm6, %v1573_v18, %v1575_v44  ;;  %v1740_v28 = vand.u32 65535, %v4658_v11 }
 0x1ee   :  { %vm1856_vm4 = vcmp.gt.s32.totalorder %v1855_v23, 0  ;;  %v4688_v10 = vsel %vm1064_vm14, nan, %v1073_v52  ;;  %v4693_v2 = vsel %vm1231_vm11, %v1353_v8, %v5992_v25  ;;  %v1497_v57 = vsub.s32 4294967266, %v4672_v1 }
 0x1ef   :  { %vm1632_vm9 = vc.u32 %v4646_v13, %v4670_v45  ;;  %5994 = vst [vmem:[#allocation14_spill] sm:$0xff] %v4688_v10  ;;  %v1857_v38 = vsel %vm1856_vm4, %v1855_v23, 0  ;;  %v5867_v53 = vshrl.u32 %v4680_v26, 16  ;;  %v4699_v5 = vmul.u32 %v5868_v50, %v1740_v28 }
 0x1f0   :  { %v1634_v61 = vsel %vm1632_vm9, %v1633_v9, %v1629_v62  ;;  %v1859_v42 = vand.u32 31, %v1857_v38  ;;  %v4703_v43 = vsel %vm1221_vm7, %v1209_v47, %v1222_v30  ;;  %v4707_v31 = vsel %vm1224_vm12, %v1225_v56, %v1217_v58 }
 0x1f1   :  { %v1477_v6 = vadd.s32 %v4367_v24, %v4351_v21  ;;  %v1630_v33 = vmul.u32 %v4464_v34, %v1576_v19  ;;  %v4712_v52 = vadd.f32 0.041655596, %v1358_v22  ;;  %v4714_v32 = vadd.f32 0.008332121, %v1365_v17 }
 0x1f2   :  { %v1493_v27 = vsub.s32 32, %v4672_v1  ;;  %v4717_v40 = vsub.s32 32, %v1859_v42  ;;  %v4719_v3 = vadd.s32 127, %v1497_v57  ;;  %v1764_v58 = vand.u32 65535, %v4650_v46 }
 0x1f3   :  { %v4721_v47 = vadd.s32 %v1634_v61, %v1630_v33  ;;  %v5872_v62 = vand.u32 2147483647, %v4555_v63  ;;  %v1742_v21 = vand.u32 65535, %v4680_v26  ;;  %v4728_v24 = vmul.u32 %v5867_v53, %v1740_v28 }
 0x1f4   :  { %v1770_v34 = vshll.u32 %v4699_v5, 16  ;;  %v4731_v12 = vshrl.u32 %v1857_v38, 5  ;;  %v1862_v36 = vshll.u32 %v5913_v37, %v1859_v42  ;;  %v1865_v23 = vshll.u32 %v5910_v35, %v1859_v42 }
 0x1f5   :  { %v1868_v25 = vshll.u32 %v5911_v14, %v1859_v42  ;;  %v1871_v8 = vshll.u32 %v5920_v54, %v1859_v42  ;;  %v1863_v18 = vshrl.u32 %v5910_v35, %v4717_v40  ;;  %v1866_v44 = vshrl.u32 %v5911_v14, %v4717_v40 }
 0x1f6   :  { %v1869_v39 = vshrl.u32 %v5920_v54, %v4717_v40  ;;  %v1872_v56 = vshrl.u32 %v5908_v60, %v4717_v40  ;;  %v1741_v9 = vshrl.u32 %v4658_v11, 16  ;;  %v1766_v30 = vmul.u32 %v1764_v58, %v1740_v28 }
 0x1f7   :  { %v1874_v22 = vshll.u32 %v5908_v60, %v1859_v42  ;;  %v1875_v17 = vshrl.u32 %v5909_v55, %v4717_v40  ;;  %v1636_v19 = vadd.s32 536870912, %v4721_v47  ;;  %v1748_v57 = vshll.u32 %v4728_v24, 16 }
 0x1f8   :  { %v1852_v38 = vand.u32 8388607, %v5872_v62  ;;  %v1873_v61 = vor.u32 %v1872_v56, %v1871_v8  ;;  %v1744_v33 = vmul.u32 %v1742_v21, %v1740_v28  ;;  %v4753_v53 = vmul.u32 %v1764_v58, %v1741_v9 }
 0x1f9   :  { %vm4755_vm8 = vc.u32 %v1766_v30, %v1770_v34  ;;  %v1876_v10 = vor.u32 %v1875_v17, %v1874_v22  ;;  %vm1220_vm6 = vcmp.lt.s32.totalorder %v4534_v16, 2  ;;  %v4760_v42 = vor.u32 %v1863_v18, %v1862_v36 }
 0x1fa   :  { %v4762_v20 = vor.u32 %v1866_v44, %v1865_v23  ;;  %v4764_v48 = vor.u32 %v1869_v39, %v1868_v25  ;;  %vm1880_vm11 = vcmp.lt.s32.totalorder %v4731_v12, 4  ;;  %v4767_v62 = vadd.s32 %v1770_v34, %v1766_v30 }
 0x1fb   :  { %vm1877_vm13 = vcmp.lt.s32.totalorder %v4731_v12, 1  ;;  %vm1879_vm15 = vcmp.lt.s32.totalorder %v4731_v12, 3  ;;  %v1886_v28 = vsel %vm1880_vm11, %v1873_v61, 920167782  ;;  %v4773_v58 = vshrl.u32 %v1636_v19, 30 }
 0x1fc   :  { %v4775_v8 = vmul.u32 %v1742_v21, %v1741_v9  ;;  %vm4777_vm14 = vc.u32 %v1744_v33, %v1748_v57  ;;  %v1853_v23 = vor.u32 8388608, %v1852_v38  ;;  %v1754_v25 = vadd.s32 %v1748_v57, %v1744_v33 }
 0x1fd   :  { %5997 = vst [vmem:[#allocation20_spill] sm:$0xff] %v4773_v58  ;;  %v5873_v34 = vshll.u32 %v4753_v53, 16  ;;  %v1775_v18 = vsel %vm4755_vm8, 1, %v5923_v7  ;;  %v1890_v44 = vsel %vm1880_vm11, %v1876_v10, 1326507024  ;;  %vm1878_vm7 = vcmp.lt.s32.totalorder %v4731_v12, 2 }
 0x1fe   :  { %v1885_v21 = vsel %vm1877_vm13, %v4760_v42, %v4762_v20  ;;  %v1887_v39 = vsel %vm1879_vm15, %v4764_v48, %v1886_v28  ;;  %v1889_v50 = vsel %vm1877_vm13, %v4762_v20, %v4764_v48  ;;  %v1495_v56 = vshrl.u32 %v1477_v6, %v1493_v27 }
 0x1ff   :  { %v6000_v30 = vshrl.u32 %v4650_v46, 16  ;;  %vm1778_vm12 = vc.u32 %v4767_v62, %v5873_v34  ;;  %v1891_v22 = vsel %vm1879_vm15, %v1873_v61, %v1890_v44  ;;  %v1494_v17 = vshll.u32 %v4526_v59, %v4672_v1 }
 0x200   :  { %v1638_v19 = vshll.u32 %v4773_v58, 30  ;;  %v1750_v57 = vshll.u32 %v4775_v8, 16  ;;  %v4810_v38 = vshll.u32 %v1853_v23, 8  ;;  %v1753_v46 = vsel %vm4777_vm14, 1, %v5923_v7 }
 0x201   :  { %v1769_v10 = vmul.u32 %v6000_v30, %v1741_v9  ;;  %v1888_v27 = vsel %vm1878_vm7, %v1885_v21, %v1887_v39  ;;  %v1892_v61 = vsel %vm1878_vm7, %v1889_v50, %v1891_v22  ;;  %v1499_v33 = vshll.u32 %v4719_v3, 23 }
 0x202   :  { %v6001_v59 = vshrl.u32 %v4680_v26, 16  ;;  %vm1756_vm2 = vc.u32 %v1754_v25, %v1750_v57  ;;  %v1779_v28 = vsel %vm1778_vm12, 1, %v5923_v7  ;;  %v4827_v36 = vsel %vm1220_vm6, %v4703_v43, %v4707_v31 }
 0x203   :  { %v1777_v6 = vadd.s32 %v1775_v18, %v1769_v10  ;;  %v1496_v18 = vor.u32 %v1495_v56, %v1494_v17  ;;  %v1897_v44 = vshrl.u32 %v1892_v61, 16  ;;  %v4833_v3 = vsub.s32 %v4721_v47, %v1638_v19  ;;  %v6003_v10 = vld [vmem:[#allocation13_spill] sm:$0xff] }
 0x204   :  { %v1747_v1 = vmul.u32 %v6001_v59, %v1741_v9  ;;  %v1894_v9 = vand.u32 65535, %v4810_v38  ;;  %v1919_v25 = vshrl.u32 %v1888_v27, 16  ;;  %v4838_v21 = vmul.f32 %v4712_v52, %v4644_v0 }
 0x205   :  { %6002 = vst [vmem:[#allocation21_spill] sm:$0xff] %v4833_v3  ;;  %v1757_v16 = vsel %vm1756_vm2, 1, %v5923_v7  ;;  %v1781_v43 = vadd.s32 %v1779_v28, %v1777_v6  ;;  %v1896_v31 = vand.u32 65535, %v1892_v61  ;;  %v1367_v39 = vmul.f32 %v4714_v32, %v4644_v0 }
 0x206   :  { %v1755_v26 = vadd.s32 %v1753_v46, %v1747_v1  ;;  %v1500_v50 = vor.u32 4788187, %v1499_v33  ;;  %v4843_v56 = vmul.u32 %v1897_v44, %v1894_v9  ;;  %v1918_v47 = vand.u32 65535, %v1888_v27  ;;  %v6004_v27 = vld [vmem:[#allocation11_spill] sm:$0xff]  ;;  %v6005_v1 = vld [vmem:[#allocation10_spill] sm:$0xff] }
 0x207   :  { %v1503_v30 = vcvt.s32.f32 %v1496_v18  ;;  %v1507_v22 = vsub.s32 4, %v6003_v10  ;;  %v1771_v17 = vshrl.u32 %v4699_v5, 16  ;;  %v1895_v19 = vshrl.u32 %v4810_v38, 16 }
 0x208   :  { %v1641_v52 = vsub.s32 0, %v4833_v3  ;;  %v1759_v57 = vadd.s32 %v1757_v16, %v1755_v26  ;;  %v1902_v46 = vshll.u32 %v4843_v56, 16  ;;  %v4850_v6 = vmul.u32 %v1919_v25, %v1894_v9  ;;  %v6006_v26 = vld [vmem:[#allocation12_spill] sm:$0xff] }
 0x209   :  { %vm1640_vm9 = vcmp.lt.s32.totalorder %v4833_v3, 0  ;;  %v1782_v32 = vadd.s32 %v1781_v43, %v1771_v17  ;;  %v1898_v61 = vmul.u32 %v1896_v31, %v1894_v9  ;;  %v4853_v33 = vmul.u32 %v1896_v31, %v1895_v19  ;;  %v4866_v17 = vpop.f32.mrf.mxu3 }
 0x20a   :  { %vm1385_vm4 = vcmp.lt.s32.totalorder %v6004_v27, 0  ;;  %v1501_v59 = vand.u32 2147483647, %v1500_v50  ;;  %v1707_v5 = vshrl.u32 %v5913_v37, %v6005_v1  ;;  %v1749_v28 = vshrl.u32 %v4728_v24, 16 }
 0x20b   :  { %v4859_v18 = vmul.u32 %v1918_v47, %v1895_v19  ;;  %vm1218_vm8 = vweird.f32 %v6006_v26  ;;  %v1728_v16 = vsel %vm1726_vm1, %v4605_v4, 2102212464  ;;  %v1773_v43 = vshrl.u32 %v4753_v53, 16 }
 0x20c   :  { %vm1906_vm6 = vc.u32 %v1898_v61, %v1902_v46  ;;  %v1908_v31 = vadd.s32 %v1902_v46, %v1898_v61  ;;  %v1642_v50 = vsel %vm1640_vm9, %v1641_v52, %v4833_v3  ;;  %v1760_v23 = vadd.s32 %v1759_v57, %v1749_v28 }
 0x20d   :  { %v1920_v1 = vmul.u32 %v1918_v47, %v1894_v9  ;;  %v1924_v24 = vshll.u32 %v4850_v6, 16  ;;  %v6007_v34 = vand.u32 2147483647, %v6004_v27  ;;  %v1751_v4 = vshrl.u32 %v4775_v8, 16 }
 0x20e   :  { %v1783_v58 = vadd.s32 %v1782_v32, %v1773_v43  ;;  %v1904_v51 = vshll.u32 %v4853_v33, 16  ;;  %v1923_v46 = vmul.u32 %v1919_v25, %v1895_v19  ;;  %v1907_v61 = vsel %vm1906_vm6, 1, %v5923_v7 }
 0x20f   :  { %vm4872_vm14 = vcmp.le.f32.partialorder %v6007_v34, 0.7853982  ;;  %v1926_v52 = vshll.u32 %v4859_v18, 16  ;;  %vm1928_vm1 = vc.u32 %v1920_v1, %v1924_v24  ;;  %v4880_v9 = vadd.s32 %v1924_v24, %v1920_v1 }
 0x210   :  { %v1901_v47 = vmul.u32 %v1897_v44, %v1895_v19  ;;  %vm1910_vm12 = vc.u32 %v1908_v31, %v1904_v51  ;;  %v1929_v34 = vsel %vm1928_vm1, 1, %v5923_v7  ;;  %v2002_v57 = vand.u32 2139095040, %v4866_v17 }
 0x211   :  { %v1504_v28 = vmul.f32 %v1503_v30, %v1501_v59  ;;  %v4884_v3 = vadd.s32 %v1760_v23, %v1751_v4  ;;  %v1931_v8 = vadd.s32 %v1929_v34, %v1923_v46  ;;  %vm1932_vm2 = vc.u32 %v4880_v9, %v1926_v52 }
 0x212   :  { %v1727_v25 = vsel %vm1723_vm10, %v1707_v5, %v4601_v29  ;;  %v1909_v32 = vadd.s32 %v1907_v61, %v1901_v47  ;;  %v1933_v44 = vsel %vm1932_vm2, 1, %v5923_v7  ;;  %v2003_v51 = vshrl.u32 %v2002_v57, 23 }
 0x213   :  { %v1643_v19 = vclz %v1642_v50  ;;  %v1729_v30 = vsel %vm1725_vm0, %v4603_v15, %v1728_v16  ;;  %v6010_v23 = vshll.u32 %v4753_v53, 16  ;;  %v1911_v43 = vsel %vm1910_vm12, 1, %v5923_v7 }
 0x214   :  { %v1508_v29 = vsel %vm1385_vm4, %v1507_v22, %v6003_v10  ;;  %v1787_v5 = vadd.s32 1, %v1783_v58  ;;  %v1935_v31 = vadd.s32 %v1933_v44, %v1931_v8  ;;  %v2725_v1 = vadd.s32 4294967169, %v2003_v51 }
 0x215   :  { %v4899_v59 = vadd.s32 %v4767_v62, %v6010_v23  ;;  %v4908_v50 = vsel %vm1218_vm8, nan, %v4827_v36  ;;  %v1368_v15 = vadd.f32 -0.16666654, %v1367_v39  ;;  %v6012_v53 = vsel %vm4567_vm5, 0, %v4693_v2 }
 0x216   :  { %6011 = vst [vmem:[#allocation13_spill] sm:$0xff] %v4908_v50  ;;  %v4914_v62 = vand.u32 3, %v6012_v53  ;;  %v1730_v10 = vsel %vm1724_vm3, %v1727_v25, %v1729_v30  ;;  %v1913_v22 = vadd.s32 %v1911_v43, %v1909_v32  ;;  %v1925_v16 = vshrl.u32 %v4850_v6, 16  ;;  %v4959_v43 = vpop.f32.mrf.mxu3 }
 0x217   :  { %vm1786_vm10 = vc.u32 %v4884_v3, %v4899_v59  ;;  %v2009_v24 = vadd.s32 1, %v2725_v1  ;;  %v1361_v36 = vadd.f32 -0.4999988, %v4838_v21  ;;  %v1505_v26 = vxor.u32 2147483648, %v1504_v28 }
 0x218   :  { %v1510_v41 = vsel %vm4872_vm14, 0, %v1508_v29  ;;  %v2717_v39 = vadd.s32 4294967294, %v1643_v19  ;;  %v1788_v2 = vsel %vm1786_vm10, %v1787_v5, %v1783_v58  ;;  %v1903_v4 = vshrl.u32 %v4843_v56, 16 }
 0x219   :  { %v1936_v46 = vadd.s32 %v1935_v31, %v1925_v16  ;;  %vm2010_vm5 = vcmp.gt.s32.totalorder %v2009_v24, 0  ;;  %v1369_v61 = vmul.f32 %v1368_v15, %v4644_v0  ;;  %v1784_v49 = vmul.u32 %v4658_v11, %v1730_v10 }
 0x21a   :  { %v1861_v6 = vshrl.u32 %v5913_v37, %v4717_v40  ;;  %v2011_v47 = vsel %vm2010_vm5, %v2009_v24, 0  ;;  %v1882_v21 = vsel %vm1880_vm11, %v4764_v48, 2102212464  ;;  %v1914_v34 = vadd.s32 %v1913_v22, %v1903_v4 }
 0x21b   :  { %v1927_v57 = vshrl.u32 %v4859_v18, 16  ;;  %v2013_v58 = vand.u32 31, %v2011_v47  ;;  %v1506_v56 = vsel %vm1385_vm4, %v1505_v26, %v1504_v28  ;;  %vm2718_vm0 = vcmp.lt.s32.totalorder %v2717_v39, 0 }
 0x21c   :  { %v4935_v8 = vadd.s32 %v1788_v2, %v1784_v49  ;;  %v5880_v11 = vand.u32 2147483647, %v4866_v17  ;;  %v1362_v25 = vmul.f32 %v1361_v36, %v4644_v0  ;;  %v1905_v40 = vshrl.u32 %v4853_v33, 16 }
 0x21d   :  { %v1937_v32 = vadd.s32 %v1936_v46, %v1927_v57  ;;  %v4940_v44 = vsub.s32 32, %v2013_v58  ;;  %v1370_v48 = vadd.f32 1.0, %v1369_v61  ;;  %v4942_v51 = vand.u32 3, %v1510_v41 }
 0x21e   :  { %v1881_v19 = vsel %vm1877_vm13, %v1861_v6, %v4760_v42  ;;  %v1883_v28 = vsel %vm1879_vm15, %v4762_v20, %v1882_v21  ;;  %v4953_v0 = vsel %vm4872_vm14, %v6004_v27, %v1506_v56  ;;  %v1631_v33 = vadd.s32 %v4670_v45, %v4646_v13 }
 0x21f   :  { %v1646_v30 = vsel %vm2718_vm0, 0, %v2717_v39  ;;  %v4957_v23 = vadd.s32 %v1914_v34, %v1905_v40  ;;  %v1790_v29 = vadd.s32 536870912, %v4935_v8  ;;  %v2006_v42 = vand.u32 8388607, %v5880_v11 }
 0x220   :  { %v2025_v20 = vshll.u32 %v5920_v54, %v2013_v58  ;;  %v2026_v63 = vshrl.u32 %v5908_v60, %v4940_v44  ;;  %v1884_v5 = vsel %vm1878_vm7, %v1881_v19, %v1883_v28  ;;  %v4972_v13 = vadd.s32 %v4880_v9, %v1926_v52 }
 0x221   :  { %v1941_v45 = vadd.s32 1, %v1937_v32  ;;  %v4974_v31 = vshrl.u32 %v2011_v47, 5  ;;  %v2016_v1 = vshll.u32 %v5913_v37, %v2013_v58  ;;  %v2017_v15 = vshrl.u32 %v5910_v35, %v4940_v44 }
 0x222   :  { %v2019_v53 = vshll.u32 %v5910_v35, %v2013_v58  ;;  %v2020_v10 = vshrl.u32 %v5911_v14, %v4940_v44  ;;  %vm1940_vm3 = vc.u32 %v4957_v23, %v4972_v13  ;;  %v2022_v12 = vshll.u32 %v5911_v14, %v2013_v58 }
 0x223   :  { %v2023_v18 = vshrl.u32 %v5920_v54, %v4940_v44  ;;  %v2156_v52 = vand.u32 2139095040, %v4959_v43  ;;  %v2007_v9 = vor.u32 8388608, %v2006_v42  ;;  %v2027_v22 = vor.u32 %v2026_v63, %v2025_v20  ;;  %v6014_v42 = vld [vmem:[#allocation21_spill] sm:$0xff] }
 0x224   :  { %v2028_v16 = vshll.u32 %v5908_v60, %v2013_v58  ;;  %v2029_v24 = vshrl.u32 %v5909_v55, %v4940_v44  ;;  %v4993_v36 = vmul.f32 %v4953_v0, %v4953_v0  ;;  %v1647_v26 = vsub.s32 32, %v1646_v30  ;;  %v6013_v58 = vld [vmem:[#allocation16_spill] sm:$0xff] }
 0x225   :  { %v1651_v41 = vsub.s32 4294967266, %v1646_v30  ;;  %v4995_v39 = vshrl.u32 %v1790_v29, 30  ;;  %v1942_v2 = vsel %vm1940_vm3, %v1941_v45, %v1937_v32  ;;  %v4997_v4 = vor.u32 %v2017_v15, %v2016_v1 }
 0x226   :  { %v4999_v46 = vor.u32 %v2020_v10, %v2019_v53  ;;  %vm2034_vm11 = vcmp.lt.s32.totalorder %v4974_v31, 4  ;;  %v1938_v61 = vmul.u32 %v4810_v38, %v1884_v5  ;;  %v5003_v49 = vor.u32 %v2023_v18, %v2022_v12 }
 0x227   :  { %vm2031_vm13 = vcmp.lt.s32.totalorder %v4974_v31, 1  ;;  %v2157_v6 = vshrl.u32 %v2156_v52, 23  ;;  %v2030_v47 = vor.u32 %v2029_v24, %v2028_v16  ;;  %vm2033_vm15 = vcmp.lt.s32.totalorder %v4974_v31, 3 }
 0x228   :  { %v2040_v21 = vsel %vm2034_vm11, %v2027_v22, 920167782  ;;  %v5009_v34 = vshll.u32 %v2007_v9, 8  ;;  %v5011_v57 = vadd.f32 1.0, %v1362_v25  ;;  %v5014_v56 = vmul.f32 %v1370_v48, %v6013_v58 }
 0x229   :  { %v1649_v40 = vshrl.u32 %v1631_v33, %v1647_v26  ;;  %v5016_v38 = vadd.s32 %v1942_v2, %v1938_v61  ;;  %v1652_v32 = vadd.s32 127, %v1651_v41  ;;  %v1792_v19 = vshll.u32 %v4995_v39, 30 }
 0x22a   :  { %vm2032_vm7 = vcmp.lt.s32.totalorder %v4974_v31, 2  ;;  %v2039_v28 = vsel %vm2031_vm13, %v4997_v4, %v4999_v46  ;;  %v1512_v29 = vmul.f32 -0.001358992, %v4993_v36  ;;  %v1519_v25 = vmul.f32 -0.00019511016, %v4993_v36 }
 0x22b   :  { %v2041_v48 = vsel %vm2033_vm15, %v5003_v49, %v2040_v21  ;;  %v2043_v33 = vsel %vm2031_vm13, %v4999_v46, %v5003_v49  ;;  %v1648_v20 = vshll.u32 %v6014_v42, %v1646_v30  ;;  %v2044_v63 = vsel %vm2034_vm11, %v2030_v47, 1326507024 }
 0x22c   :  { %v2048_v5 = vand.u32 65535, %v5009_v34  ;;  %v2728_v45 = vadd.s32 4294967169, %v2157_v6  ;;  %v1944_v1 = vadd.s32 536870912, %v5016_v38  ;;  %v2042_v15 = vsel %vm2032_vm7, %v2039_v28, %v2041_v48 }
 0x22d   :  { %v2045_v53 = vsel %vm2033_vm15, %v2027_v22, %v2044_v63  ;;  %v2049_v10 = vshrl.u32 %v5009_v34, 16  ;;  %v1650_v12 = vor.u32 %v1649_v40, %v1648_v20  ;;  %v1653_v18 = vshll.u32 %v1652_v32, 23 }
 0x22e   :  { %v5044_v30 = vsub.s32 %v4935_v8, %v1792_v19  ;;  %v2046_v52 = vsel %vm2032_vm7, %v2043_v33, %v2045_v53  ;;  %v1376_v9 = vxor.u32 2147483648, %v5014_v56  ;;  %v1379_v16 = vxor.u32 2147483648, %v5011_v57 }
 0x22f   :  { %v2050_v24 = vand.u32 65535, %v2046_v52  ;;  %v2051_v26 = vshrl.u32 %v2046_v52, 16  ;;  %v5050_v41 = vadd.f32 0.041655596, %v1512_v29  ;;  %v2072_v2 = vand.u32 65535, %v2042_v15 }
 0x230   :  { %v2073_v22 = vshrl.u32 %v2042_v15, 16  ;;  %v2163_v61 = vadd.s32 1, %v2728_v45  ;;  %v5052_v6 = vshrl.u32 %v1944_v1, 30  ;;  %v5054_v58 = vadd.f32 0.008332121, %v1519_v25 }
 0x231   :  { %v2052_v47 = vmul.u32 %v2050_v24, %v2048_v5  ;;  %v2053_v21 = vmul.u32 %v2051_v26, %v2048_v5  ;;  %v2054_v8 = vmul.u32 %v2050_v24, %v2049_v10  ;;  %v1654_v40 = vor.u32 4788187, %v1653_v18 }
 0x232   :  { %v1657_v32 = vcvt.s32.f32 %v1650_v12  ;;  %vm1794_vm9 = vcmp.lt.s32.totalorder %v5044_v30, 0  ;;  %v2055_v19 = vmul.u32 %v2051_v26, %v2049_v10  ;;  %v5881_v29 = vand.u32 2147483647, %v4959_v43 }
 0x233   :  { %v2056_v28 = vshll.u32 %v2053_v21, 16  ;;  %v2058_v48 = vshll.u32 %v2054_v8, 16  ;;  %v2074_v33 = vmul.u32 %v2072_v2, %v2048_v5  ;;  %v2075_v42 = vmul.u32 %v2073_v22, %v2048_v5 }
 0x234   :  { %v2076_v20 = vmul.u32 %v2072_v2, %v2049_v10  ;;  %vm2164_vm4 = vcmp.gt.s32.totalorder %v2163_v61, 0  ;;  %v1795_v63 = vsub.s32 0, %v5044_v30  ;;  %v1946_v45 = vshll.u32 %v5052_v6, 30 }
 0x235   :  { %vm2060_vm8 = vc.u32 %v2052_v47, %v2056_v28  ;;  %v2062_v25 = vadd.s32 %v2056_v28, %v2052_v47  ;;  %v2057_v1 = vshrl.u32 %v2053_v21, 16  ;;  %v2077_v53 = vmul.u32 %v2073_v22, %v2049_v10 }
 0x236   :  { %v2061_v15 = vsel %vm2060_vm8, 1, %v5923_v7  ;;  %v2078_v12 = vshll.u32 %v2075_v42, 16  ;;  %v2080_v52 = vshll.u32 %v2076_v20, 16  ;;  %v2165_v24 = vsel %vm2164_vm4, %v2163_v61, 0 }
 0x237   :  { %v2063_v18 = vadd.s32 %v2061_v15, %v2055_v19  ;;  %vm2064_vm6 = vc.u32 %v2062_v25, %v2058_v48  ;;  %v1655_v26 = vand.u32 2147483647, %v1654_v40  ;;  %v2160_v2 = vand.u32 8388607, %v5881_v29 }
 0x238   :  { %v2065_v5 = vsel %vm2064_vm6, 1, %v5923_v7  ;;  %vm2082_vm14 = vc.u32 %v2074_v33, %v2078_v12  ;;  %v2015_v11 = vshrl.u32 %v5913_v37, %v4940_v44  ;;  %v2084_v28 = vadd.s32 %v2078_v12, %v2074_v33 }
 0x239   :  { %v2067_v47 = vadd.s32 %v2065_v5, %v2063_v18  ;;  %v2083_v21 = vsel %vm2082_vm14, 1, %v5923_v7  ;;  %v1796_v10 = vsel %vm1794_vm9, %v1795_v63, %v5044_v30  ;;  %v5071_v22 = vsub.s32 %v5016_v38, %v1946_v45 }
 0x23a   :  { %v2085_v61 = vadd.s32 %v2083_v21, %v2077_v53  ;;  %v2167_v40 = vand.u32 31, %v2165_v24  ;;  %v2036_v19 = vsel %vm2034_vm11, %v5003_v49, 2102212464  ;;  %v2079_v25 = vshrl.u32 %v2075_v42, 16 }
 0x23b   :  { %v2068_v48 = vadd.s32 %v2067_v47, %v2057_v1  ;;  %vm2086_vm1 = vc.u32 %v2084_v28, %v2080_v52  ;;  %v5076_v44 = vmul.f32 %v1657_v32, %v1655_v26  ;;  %v2059_v15 = vshrl.u32 %v2054_v8, 16 }
 0x23c   :  { %v2087_v33 = vsel %vm2086_vm1, 1, %v5923_v7  ;;  %v5079_v12 = vsub.s32 32, %v2167_v40  ;;  %v1797_v63 = vclz %v1796_v10  ;;  %v2035_v38 = vsel %vm2031_vm13, %v2015_v11, %v4997_v4 }
 0x23d   :  { %v2089_v45 = vadd.s32 %v2087_v33, %v2085_v61  ;;  %v2161_v53 = vor.u32 8388608, %v2160_v2  ;;  %vm1948_vm12 = vcmp.lt.s32.totalorder %v5071_v22, 0  ;;  %v2037_v49 = vsel %vm2033_vm15, %v4999_v46, %v2036_v19 }
 0x23e   :  { %v5088_v32 = vadd.s32 %v2068_v48, %v2059_v15  ;;  %v2081_v8 = vshrl.u32 %v2076_v20, 16  ;;  %v2173_v1 = vshll.u32 %v5910_v35, %v2167_v40  ;;  %v2174_v18 = vshrl.u32 %v5911_v14, %v5079_v12 }
 0x23f   :  { %v2090_v42 = vadd.s32 %v2089_v45, %v2079_v25  ;;  %v2176_v26 = vshll.u32 %v5911_v14, %v2167_v40  ;;  %v1949_v11 = vsub.s32 0, %v5071_v22  ;;  %v5095_v4 = vadd.s32 %v2084_v28, %v2080_v52  ;;  %v6015_v28 = vld [vmem:[#allocation7_spill] sm:$0xff] }
 0x240   :  { %v5097_v5 = vshrl.u32 %v2165_v24, 5  ;;  %v2177_v46 = vshrl.u32 %v5920_v54, %v5079_v12  ;;  %vm1375_vm2 = vcmp.eq.s32.totalorder %v4914_v62, 0  ;;  %v2179_v2 = vshll.u32 %v5920_v54, %v2167_v40 }
 0x241   :  { %v2091_v20 = vadd.s32 %v2090_v42, %v2081_v8  ;;  %v2180_v47 = vshrl.u32 %v5908_v60, %v5079_v12  ;;  %v2182_v21 = vshll.u32 %v5908_v60, %v2167_v40  ;;  %v2038_v10 = vsel %vm2032_vm7, %v2035_v38, %v2037_v49 }
 0x242   :  { %vm2094_vm10 = vc.u32 %v5088_v32, %v5095_v4  ;;  %v2170_v52 = vshll.u32 %v5913_v37, %v2167_v40  ;;  %v2183_v24 = vshrl.u32 %v5909_v55, %v5079_v12  ;;  %vm1539_vm5 = vcmp.lt.s32.totalorder %v6015_v28, 0 }
 0x243   :  { %v2095_v61 = vadd.s32 1, %v2091_v20  ;;  %v2171_v19 = vshrl.u32 %v5910_v35, %v5079_v12  ;;  %v5116_v48 = vor.u32 %v2174_v18, %v2173_v1  ;;  %v5118_v25 = vor.u32 %v2177_v46, %v2176_v26 }
 0x244   :  { %vm1378_vm0 = vcmp.eq.s32.totalorder %v4914_v62, 2  ;;  %v2181_v31 = vor.u32 %v2180_v47, %v2179_v2  ;;  %v2184_v15 = vor.u32 %v2183_v24, %v2182_v21  ;;  %vm2185_vm3 = vcmp.lt.s32.totalorder %v5097_v5, 1 }
 0x245   :  { %vm2188_vm11 = vcmp.lt.s32.totalorder %v5097_v5, 4  ;;  %vm1374_vm13 = vcmp.lt.s32.totalorder %v4914_v62, 2  ;;  %v2720_v40 = vadd.s32 4294967294, %v1797_v63  ;;  %v1950_v33 = vsel %vm1948_vm12, %v1949_v11, %v5071_v22 }
 0x246   :  { %v2096_v38 = vsel %vm2094_vm10, %v2095_v61, %v2091_v20  ;;  %v5130_v45 = vshll.u32 %v2161_v53, 8  ;;  %v1514_v49 = vmul.f32 %v5050_v41, %v4993_v36  ;;  %v1521_v8 = vmul.f32 %v5054_v58, %v4993_v36 }
 0x247   :  { %v6016_v42 = vand.u32 2147483647, %v6015_v28  ;;  %v2092_v1 = vmul.u32 %v5009_v34, %v2038_v10  ;;  %vm2187_vm7 = vcmp.lt.s32.totalorder %v5097_v5, 3  ;;  %v5144_v18 = vor.u32 %v2171_v19, %v2170_v52 }
 0x248   :  { %vm2186_vm9 = vcmp.lt.s32.totalorder %v5097_v5, 2  ;;  %v2197_v41 = vsel %vm2185_vm3, %v5116_v48, %v5118_v25  ;;  %v2198_v58 = vsel %vm2188_vm11, %v2184_v15, 1326507024  ;;  %v1659_v53 = vxor.u32 2147483648, %v5076_v44 }
 0x249   :  { %vm5138_vm15 = vcmp.le.f32.partialorder %v6016_v42, 0.7853982  ;;  %v1951_v26 = vclz %v1950_v33  ;;  %v5154_v11 = vadd.s32 %v2096_v38, %v2092_v1  ;;  %v2194_v34 = vsel %vm2188_vm11, %v2181_v31, 920167782 }
 0x24a   :  { %vm2721_vm4 = vcmp.lt.s32.totalorder %v2720_v40, 0  ;;  %v2199_v46 = vsel %vm2187_vm7, %v2181_v31, %v2198_v58  ;;  %v2202_v20 = vand.u32 65535, %v5130_v45  ;;  %v2203_v2 = vshrl.u32 %v5130_v45, 16 }
 0x24b   :  { %v1377_v47 = vsel %vm1375_vm2, %v5011_v57, %v1376_v9  ;;  %v1515_v21 = vadd.f32 -0.4999988, %v1514_v49  ;;  %v1522_v10 = vadd.f32 -0.16666654, %v1521_v8  ;;  %v2200_v52 = vsel %vm2186_vm9, %v2197_v41, %v2199_v46 }
 0x24c   :  { %v2193_v24 = vsel %vm2185_vm3, %v5144_v18, %v5116_v48  ;;  %v2195_v61 = vsel %vm2187_vm7, %v5118_v25, %v2194_v34  ;;  %v2204_v19 = vand.u32 65535, %v2200_v52  ;;  %v2205_v31 = vshrl.u32 %v2200_v52, 16 }
 0x24d   :  { %v1660_v9 = vsel %vm1539_vm5, %v1659_v53, %v5076_v44  ;;  %v1800_v15 = vsel %vm2721_vm4, 0, %v2720_v40  ;;  %v2723_v33 = vadd.s32 4294967294, %v1951_v26  ;;  %v2098_v38 = vadd.s32 536870912, %v5154_v11  ;;  %v6019_v40 = vld [vmem:[#allocation20_spill] sm:$0xff] }
 0x24e   :  { %v1380_v49 = vsel %vm1378_vm0, %v1379_v16, %v5014_v56  ;;  %v2206_v8 = vmul.u32 %v2204_v19, %v2202_v20  ;;  %v2207_v42 = vmul.u32 %v2205_v31, %v2202_v20  ;;  %v5185_v1 = vmul.u32 %v2204_v19, %v2203_v2 }
 0x24f   :  { %v5189_v41 = vsel %vm1374_vm13, %v1377_v47, %v1380_v49  ;;  %v1516_v44 = vmul.f32 %v1515_v21, %v4993_v36  ;;  %v1661_v58 = vsub.s32 4, %v6019_v40  ;;  %v2196_v53 = vsel %vm2186_vm9, %v2193_v24, %v2195_v61 }
 0x250   :  { %v1523_v57 = vmul.f32 %v1522_v10, %v4993_v36  ;;  %v5199_v56 = vsel %vm5138_vm15, %v6015_v28, %v1660_v9  ;;  %v1801_v16 = vsub.s32 32, %v1800_v15  ;;  %v2210_v26 = vshll.u32 %v2207_v42, 16 }
 0x251   :  { %vm2724_vm8 = vcmp.lt.s32.totalorder %v2723_v33, 0  ;;  %v5201_v62 = vshrl.u32 %v2098_v38, 30  ;;  %v2209_v34 = vmul.u32 %v2205_v31, %v2203_v2  ;;  %v2212_v46 = vshll.u32 %v5185_v1, 16 }
 0x252   :  { %vm2214_vm6 = vc.u32 %v2206_v8, %v2210_v26  ;;  %v2216_v47 = vadd.s32 %v2210_v26, %v2206_v8  ;;  %v2226_v21 = vand.u32 65535, %v2196_v53  ;;  %v2227_v52 = vshrl.u32 %v2196_v53, 16 }
 0x253   :  { %6020 = vst [vmem:[#allocation11_spill] sm:$0xff] %v5201_v62  ;;  %v5207_v36 = vsel %vm1539_vm5, %v1661_v58, %v6019_v40  ;;  %v1785_v10 = vadd.s32 %v4899_v59, %v4884_v3  ;;  %v1805_v24 = vsub.s32 4294967266, %v1800_v15  ;;  %v2215_v61 = vsel %vm2214_vm6, 1, %v5923_v7 }
 0x254   :  { %v5212_v19 = vadd.f32 1.0, %v1516_v44  ;;  %v1524_v31 = vadd.f32 1.0, %v1523_v57  ;;  %v5216_v9 = vmul.f32 %v5199_v56, %v5199_v56  ;;  %v5218_v38 = vsel %vm2724_vm8, 0, %v2723_v33 }
 0x255   :  { %v1803_v49 = vshrl.u32 %v1785_v10, %v1801_v16  ;;  %v2100_v8 = vshll.u32 %v5201_v62, 30  ;;  %v2217_v40 = vadd.s32 %v2215_v61, %v2209_v34  ;;  %vm2218_vm14 = vc.u32 %v2216_v47, %v2212_v46 }
 0x256   :  { %v2219_v58 = vsel %vm2218_vm14, 1, %v5923_v7  ;;  %v2228_v3 = vmul.u32 %v2226_v21, %v2202_v20  ;;  %v2229_v59 = vmul.u32 %v2227_v52, %v2202_v20  ;;  %v2230_v53 = vmul.u32 %v2226_v21, %v2203_v2  ;;  %v5234_v21 = vpop.f32.mrf.mxu3 }
 0x257   :  { %v1802_v57 = vshll.u32 %v5044_v30, %v1800_v15  ;;  %v1806_v26 = vadd.s32 127, %v1805_v24  ;;  %v1959_v33 = vsub.s32 4294967266, %v5218_v38  ;;  %v2211_v29 = vshrl.u32 %v2207_v42, 16 }
 0x258   :  { %v2221_v16 = vadd.s32 %v2219_v58, %v2217_v40  ;;  %v2231_v10 = vmul.u32 %v2227_v52, %v2203_v2  ;;  %v2232_v50 = vshll.u32 %v2229_v59, 16  ;;  %v5228_v34 = vmul.f32 %v1524_v31, %v4953_v0 }
 0x259   :  { %v5232_v20 = vsub.s32 %v5154_v11, %v2100_v8  ;;  %v2234_v47 = vshll.u32 %v2230_v53, 16  ;;  %v1666_v30 = vmul.f32 -0.001358992, %v5216_v9  ;;  %v1673_v15 = vmul.f32 -0.00019511016, %v5216_v9 }
 0x25a   :  { %v1804_v24 = vor.u32 %v1803_v49, %v1802_v57  ;;  %vm2236_vm1 = vc.u32 %v2228_v3, %v2232_v50  ;;  %v1807_v42 = vshll.u32 %v1806_v26, 23  ;;  %v1960_v2 = vadd.s32 127, %v1959_v33  ;;  %v6021_v33 = vld [vmem:[#allocation19_spill] sm:$0xff] }
 0x25b   :  { %v2237_v52 = vsel %vm2236_vm1, 1, %v5923_v7  ;;  %v2238_v0 = vadd.s32 %v2232_v50, %v2228_v3  ;;  %v2169_v61 = vshrl.u32 %v5913_v37, %v5079_v12  ;;  %v2190_v11 = vsel %vm2188_vm11, %v5118_v25, 2102212464 }
 0x25c   :  { %v2222_v31 = vadd.s32 %v2221_v16, %v2211_v29  ;;  %v2239_v8 = vadd.s32 %v2237_v52, %v2231_v10  ;;  %v2103_v40 = vsub.s32 0, %v5232_v20  ;;  %v2233_v58 = vshrl.u32 %v2229_v59, 16 }
 0x25d   :  { %vm2240_vm12 = vc.u32 %v2238_v0, %v2234_v47  ;;  %v2310_v49 = vand.u32 2139095040, %v5234_v21  ;;  %v1955_v57 = vsub.s32 32, %v5218_v38  ;;  %vm2102_vm2 = vcmp.lt.s32.totalorder %v5232_v20, 0 }
 0x25e   :  { %v2213_v50 = vshrl.u32 %v5185_v1, 16  ;;  %v2241_v12 = vsel %vm2240_vm12, 1, %v5923_v7  ;;  %v1808_v3 = vor.u32 4788187, %v1807_v42  ;;  %v1939_v25 = vadd.s32 %v4972_v13, %v4957_v23 }
 0x25f   :  { %v2243_v29 = vadd.s32 %v2241_v12, %v2239_v8  ;;  %v2311_v26 = vshrl.u32 %v2310_v49, 23  ;;  %vm1372_vm10 = vweird.f32 %v6021_v33  ;;  %vm1532_vm5 = vcmp.eq.s32.totalorder %v4942_v51, 2 }
 0x260   :  { %v1961_v59 = vshll.u32 %v1960_v2, 23  ;;  %v2189_v16 = vsel %vm2185_vm3, %v2169_v61, %v5144_v18  ;;  %v2191_v1 = vsel %vm2187_vm7, %v5116_v48, %v2190_v11  ;;  %v5260_v10 = vadd.s32 %v2222_v31, %v2213_v50  ;;  %v6022_v50 = vld [vmem:[#allocation15_spill] sm:$0xff] }
 0x261   :  { %v2104_v42 = vsel %vm2102_vm2, %v2103_v40, %v5232_v20  ;;  %v2235_v23 = vshrl.u32 %v2230_v53, 16  ;;  %v2244_v13 = vadd.s32 %v2243_v29, %v2233_v58  ;;  %v2731_v52 = vadd.s32 4294967169, %v2311_v26 }
 0x262   :  { %v1667_v8 = vadd.f32 0.041655596, %v1666_v30  ;;  %v1674_v49 = vadd.f32 0.008332121, %v1673_v15  ;;  %v1957_v12 = vshrl.u32 %v1939_v25, %v1955_v57  ;;  %v5263_v44 = vadd.s32 %v2238_v0, %v2234_v47 }
 0x263   :  { %v1809_v2 = vand.u32 2147483647, %v1808_v3  ;;  %v2192_v18 = vsel %vm2186_vm9, %v2189_v16, %v2191_v1  ;;  %v2245_v61 = vadd.s32 %v2244_v13, %v2235_v23  ;;  %v2317_v46 = vadd.s32 1, %v2731_v52 }
 0x264   :  { %v1956_v48 = vshll.u32 %v5071_v22, %v5218_v38  ;;  %v1962_v11 = vor.u32 4788187, %v1961_v59  ;;  %v2105_v31 = vclz %v2104_v42  ;;  %vm2248_vm0 = vc.u32 %v5260_v10, %v5263_v44 }
 0x265   :  { %v1530_v53 = vxor.u32 2147483648, %v5228_v34  ;;  %v1811_v30 = vcvt.s32.f32 %v1804_v24  ;;  %v2249_v15 = vadd.s32 1, %v2245_v61  ;;  %vm2318_vm3 = vcmp.gt.s32.totalorder %v2317_v46, 0 }
 0x266   :  { %v1668_v47 = vmul.f32 %v1667_v8, %v5216_v9  ;;  %v1958_v0 = vor.u32 %v1957_v12, %v1956_v48  ;;  %v2246_v5 = vmul.u32 %v5130_v45, %v2192_v18  ;;  %v2319_v40 = vsel %vm2318_vm3, %v2317_v46, 0  ;;  %v6030_v48 = vld [vmem:[#allocation6_spill] sm:$0xff] }
 0x267   :  { %vm1528_vm11 = vcmp.lt.s32.totalorder %v4942_v51, 2  ;;  %v1675_v22 = vmul.f32 %v1674_v49, %v5216_v9  ;;  %v1812_v38 = vmul.f32 %v1811_v30, %v1809_v2  ;;  %v2250_v58 = vsel %vm2248_vm0, %v2249_v15, %v2245_v61 }
 0x268   :  { %v2321_v57 = vand.u32 31, %v2319_v40  ;;  %vm1693_vm13 = vcmp.lt.s32.totalorder %v6022_v50, 0  ;;  %v1963_v3 = vand.u32 2147483647, %v1962_v11  ;;  %v2726_v25 = vadd.s32 4294967294, %v2105_v31 }
 0x269   :  { %v2251_v24 = vadd.s32 %v2250_v58, %v2246_v5  ;;  %v5882_v29 = vand.u32 2147483647, %v5234_v21  ;;  %v5281_v26 = vsel %vm1372_vm10, nan, %v5189_v41  ;;  %vm1529_vm7 = vcmp.eq.s32.totalorder %v4942_v51, 0 }
 0x26a   :  { %6023 = vst [vmem:[#allocation10_spill] sm:$0xff] %v5281_v26  ;;  %v6024_v45 = vxor.u32 2147483648, %v5212_v19  ;;  %v6025_v59 = vsel %vm5138_vm15, 0, %v5207_v36  ;;  %v1531_v1 = vsel %vm1529_vm7, %v5212_v19, %v1530_v53  ;;  %v1965_v42 = vcvt.s32.f32 %v1958_v0 }
 0x26b   :  { %v5293_v16 = vand.u32 3, %v6025_v59  ;;  %v2252_v33 = vadd.s32 536870912, %v2251_v24  ;;  %v5296_v41 = vsub.s32 32, %v2321_v57  ;;  %v1669_v23 = vadd.f32 -0.4999988, %v1668_v47 }
 0x26c   :  { %v1534_v46 = vsel %vm1532_vm5, %v6024_v45, %v5228_v34  ;;  %v1676_v13 = vadd.f32 -0.16666654, %v1675_v22  ;;  %v6026_v52 = vand.u32 2147483647, %v6022_v50  ;;  %v1813_v34 = vxor.u32 2147483648, %v1812_v38  ;;  %v5338_v45 = vpop.f32.mrf.mxu3 }
 0x26d   :  { %v1815_v63 = vsub.s32 4, %v4995_v39  ;;  %v1966_v36 = vmul.f32 %v1965_v42, %v1963_v3  ;;  %vm2727_vm15 = vcmp.lt.s32.totalorder %v2726_v25, 0  ;;  %v5305_v49 = vshrl.u32 %v2252_v33, 30 }
 0x26e   :  { %vm5300_vm9 = vcmp.le.f32.partialorder %v6026_v52, 0.7853982  ;;  %v2314_v19 = vand.u32 8388607, %v5882_v29  ;;  %v5309_v12 = vshrl.u32 %v2319_v40, 5  ;;  %v2324_v2 = vshll.u32 %v5913_v37, %v2321_v57 }
 0x26f   :  { %6029 = vst [vmem:[#allocation12_spill] sm:$0xff] %v5305_v49  ;;  %v2327_v18 = vshll.u32 %v5910_v35, %v2321_v57  ;;  %v2333_v61 = vshll.u32 %v5920_v54, %v2321_v57  ;;  %vm1847_vm4 = vcmp.lt.s32.totalorder %v6030_v48, 0  ;;  %v2254_v11 = vshll.u32 %v5305_v49, 30 }
 0x270   :  { %v2325_v31 = vshrl.u32 %v5910_v35, %v5296_v41  ;;  %v2328_v53 = vshrl.u32 %v5911_v14, %v5296_v41  ;;  %v2334_v30 = vshrl.u32 %v5908_v60, %v5296_v41  ;;  %v2330_v15 = vshll.u32 %v5911_v14, %v2321_v57 }
 0x271   :  { %v2331_v47 = vshrl.u32 %v5920_v54, %v5296_v41  ;;  %v2336_v0 = vshll.u32 %v5908_v60, %v2321_v57  ;;  %v2337_v5 = vshrl.u32 %v5909_v55, %v5296_v41  ;;  %v5330_v40 = vsel %vm1528_vm11, %v1531_v1, %v1534_v46 }
 0x272   :  { %v5333_v22 = vmul.f32 %v1669_v23, %v5216_v9  ;;  %v1677_v58 = vmul.f32 %v1676_v13, %v5216_v9  ;;  %v5336_v3 = vsub.s32 %v2251_v24, %v2254_v11  ;;  %v1814_v59 = vsel %vm1693_vm13, %v1813_v34, %v1812_v38 }
 0x273   :  { %v5345_v57 = vsel %vm1693_vm13, %v1815_v63, %v4995_v39  ;;  %v1967_v51 = vxor.u32 2147483648, %v1966_v36  ;;  %v2315_v46 = vor.u32 8388608, %v2314_v19  ;;  %v6031_v1 = vand.u32 2147483647, %v6030_v48 }
 0x274   :  { %v5354_v9 = vsel %vm2727_vm15, 0, %v2726_v25  ;;  %v5356_v24 = vor.u32 %v2325_v31, %v2324_v2  ;;  %v5358_v33 = vor.u32 %v2328_v53, %v2327_v18  ;;  %v2335_v38 = vor.u32 %v2334_v30, %v2333_v61 }
 0x275   :  { %vm5349_vm8 = vcmp.le.f32.partialorder %v6031_v1, 0.7853982  ;;  %v5360_v23 = vor.u32 %v2331_v47, %v2330_v15  ;;  %v2338_v39 = vor.u32 %v2337_v5, %v2336_v0  ;;  %vm2339_vm6 = vcmp.lt.s32.totalorder %v5309_v12, 1 }
 0x276   :  { %vm2342_vm14 = vcmp.lt.s32.totalorder %v5309_v12, 4  ;;  %v2257_v52 = vsub.s32 0, %v5336_v3  ;;  %vm2341_vm1 = vcmp.lt.s32.totalorder %v5309_v12, 3  ;;  %v2464_v25 = vand.u32 2139095040, %v5338_v45 }
 0x277   :  { %v1678_v34 = vadd.f32 1.0, %v1677_v58  ;;  %v5373_v63 = vsel %vm5300_vm9, %v6022_v50, %v1814_v59  ;;  %vm2256_vm12 = vcmp.lt.s32.totalorder %v5336_v3, 0  ;;  %v5376_v19 = vshll.u32 %v2315_v46, 8 }
 0x278   :  { %6034 = vst [vmem:[#allocation16_spill] sm:$0xff] %v5373_v63  ;;  %v2113_v2 = vsub.s32 4294967266, %v5354_v9  ;;  %vm2340_vm2 = vcmp.lt.s32.totalorder %v5309_v12, 2  ;;  %v2347_v18 = vsel %vm2339_vm6, %v5356_v24, %v5358_v33  ;;  %v2348_v61 = vsel %vm2342_vm14, %v2335_v38, 920167782 }
 0x279   :  { %v1968_v11 = vsel %vm1847_vm4, %v1967_v51, %v1966_v36  ;;  %v2349_v31 = vsel %vm2341_vm1, %v5360_v23, %v2348_v61  ;;  %v2351_v53 = vsel %vm2339_vm6, %v5358_v33, %v5360_v23  ;;  %v2352_v30 = vsel %vm2342_vm14, %v2338_v39, 1326507024 }
 0x27a   :  { %v2258_v15 = vsel %vm2256_vm12, %v2257_v52, %v5336_v3  ;;  %v2353_v47 = vsel %vm2341_vm1, %v2335_v38, %v2352_v30  ;;  %v2357_v0 = vshrl.u32 %v5376_v19, 16  ;;  %v2465_v36 = vshrl.u32 %v2464_v25, 23 }
 0x27b   :  { %v5403_v5 = vmul.f32 %v5373_v63, %v5373_v63  ;;  %v2350_v58 = vsel %vm2340_vm2, %v2347_v18, %v2349_v31  ;;  %v2354_v59 = vsel %vm2340_vm2, %v2351_v53, %v2353_v47  ;;  %v2356_v51 = vand.u32 65535, %v5376_v19 }
 0x27c   :  { %v5411_v46 = vmul.f32 %v1678_v34, %v5199_v56  ;;  %v2109_v1 = vsub.s32 32, %v5354_v9  ;;  %v2114_v38 = vadd.s32 127, %v2113_v2  ;;  %v2358_v39 = vand.u32 65535, %v2354_v59 }
 0x27d   :  { %v5417_v52 = vsel %vm5349_vm8, %v6030_v48, %v1968_v11  ;;  %v2093_v25 = vadd.s32 %v5095_v4, %v5088_v32  ;;  %v2259_v18 = vclz %v2258_v15  ;;  %v2359_v61 = vshrl.u32 %v2354_v59, 16 }
 0x27e   :  { %6035 = vst [vmem:[#allocation21_spill] sm:$0xff] %v5417_v52  ;;  %v2362_v31 = vmul.u32 %v2358_v39, %v2357_v0  ;;  %v2380_v53 = vand.u32 65535, %v2350_v58  ;;  %v2381_v30 = vshrl.u32 %v2350_v58, 16  ;;  %v2734_v47 = vadd.s32 4294967169, %v2465_v36 }
 0x27f   :  { %v5422_v56 = vmul.f32 -0.001358992, %v5403_v5  ;;  %v5425_v34 = vmul.f32 -0.00019511016, %v5403_v5  ;;  %v2360_v2 = vmul.u32 %v2358_v39, %v2356_v51  ;;  %v2361_v29 = vmul.u32 %v2359_v61, %v2356_v51 }
 0x280   :  { %v5429_v11 = vmul.f32 %v5417_v52, %v5417_v52  ;;  %v5433_v4 = vshrl.u32 %v2093_v25, %v2109_v1  ;;  %v2115_v15 = vshll.u32 %v2114_v38, 23  ;;  %v2729_v58 = vadd.s32 4294967294, %v2259_v18 }
 0x281   :  { %v2363_v36 = vmul.u32 %v2359_v61, %v2357_v0  ;;  %v2364_v59 = vshll.u32 %v2361_v29, 16  ;;  %v2366_v13 = vshll.u32 %v2362_v31, 16  ;;  %v2382_v26 = vmul.u32 %v2380_v53, %v2356_v51 }
 0x282   :  { %v2383_v49 = vmul.u32 %v2381_v30, %v2356_v51  ;;  %v2384_v50 = vmul.u32 %v2380_v53, %v2357_v0  ;;  %v2471_v62 = vadd.s32 1, %v2734_v47  ;;  %v2323_v39 = vshrl.u32 %v5913_v37, %v5296_v41 }
 0x283   :  { %vm2368_vm10 = vc.u32 %v2360_v2, %v2364_v59  ;;  %v2370_v52 = vadd.s32 %v2364_v59, %v2360_v2  ;;  %v2385_v1 = vmul.u32 %v2381_v30, %v2357_v0  ;;  %vm2730_vm5 = vcmp.lt.s32.totalorder %v2729_v58, 0 }
 0x284   :  { %v2369_v32 = vsel %vm2368_vm10, 1, %v5923_v7  ;;  %v2386_v25 = vshll.u32 %v2383_v49, 16  ;;  %v2388_v38 = vshll.u32 %v2384_v50, 16  ;;  %v2365_v18 = vshrl.u32 %v2361_v29, 16 }
 0x285   :  { %v2371_v61 = vadd.s32 %v2369_v32, %v2363_v36  ;;  %vm2372_vm0 = vc.u32 %v2370_v52, %v2366_v13  ;;  %vm2472_vm11 = vcmp.gt.s32.totalorder %v2471_v62, 0  ;;  %v2344_v41 = vsel %vm2342_vm14, %v5360_v23, 2102212464 }
 0x286   :  { %v2373_v51 = vsel %vm2372_vm0, 1, %v5923_v7  ;;  %vm2390_vm3 = vc.u32 %v2382_v26, %v2386_v25  ;;  %v2392_v53 = vadd.s32 %v2386_v25, %v2382_v26  ;;  %v2473_v59 = vsel %vm2472_vm11, %v2471_v62, 0 }
 0x287   :  { %v2375_v47 = vadd.s32 %v2373_v51, %v2371_v61  ;;  %v2391_v2 = vsel %vm2390_vm3, 1, %v5923_v7  ;;  %v5444_v0 = vsel %vm2730_vm5, 0, %v2729_v58  ;;  %v2387_v30 = vshrl.u32 %v2383_v49, 16 }
 0x288   :  { %v2393_v63 = vadd.s32 %v2391_v2, %v2385_v1  ;;  %vm2394_vm13 = vc.u32 %v2392_v53, %v2388_v38  ;;  %v2367_v29 = vshrl.u32 %v2362_v31, 16  ;;  %v2475_v32 = vand.u32 31, %v2473_v59 }
 0x289   :  { %v2376_v13 = vadd.s32 %v2375_v47, %v2365_v18  ;;  %v2395_v52 = vsel %vm2394_vm13, 1, %v5923_v7  ;;  %v2116_v26 = vor.u32 4788187, %v2115_v15  ;;  %v2343_v36 = vsel %vm2339_vm6, %v2323_v39, %v5356_v24 }
 0x28a   :  { %v2345_v23 = vsel %vm2341_vm1, %v5358_v33, %v2344_v41  ;;  %v2397_v62 = vadd.s32 %v2395_v52, %v2393_v63  ;;  %v2267_v58 = vsub.s32 4294967266, %v5444_v0  ;;  %v6036_v31 = vand.u32 2147483647, %v5338_v45 }
 0x28b   :  { %v5454_v49 = vadd.s32 %v2376_v13, %v2367_v29  ;;  %v5458_v25 = vsub.s32 32, %v2475_v32  ;;  %v2389_v18 = vshrl.u32 %v2384_v50, 16  ;;  %v2478_v61 = vshll.u32 %v5913_v37, %v2475_v32 }
 0x28c   :  { %v2468_v1 = vand.u32 8388607, %v6036_v31  ;;  %v2398_v15 = vadd.s32 %v2397_v62, %v2387_v30  ;;  %v2481_v24 = vshll.u32 %v5910_v35, %v2475_v32  ;;  %v2346_v39 = vsel %vm2340_vm2, %v2343_v36, %v2345_v23 }
 0x28d   :  { %v5464_v33 = vadd.s32 %v2392_v53, %v2388_v38  ;;  %v5466_v63 = vshrl.u32 %v2473_v59, 5  ;;  %v2484_v51 = vshll.u32 %v5911_v14, %v2475_v32  ;;  %v2479_v47 = vshrl.u32 %v5910_v35, %v5458_v25 }
 0x28e   :  { %v2399_v41 = vadd.s32 %v2398_v15, %v2389_v18  ;;  %v2482_v50 = vshrl.u32 %v5911_v14, %v5458_v25  ;;  %v2485_v2 = vshrl.u32 %v5920_v54, %v5458_v25  ;;  %v2469_v12 = vor.u32 8388608, %v2468_v1 }
 0x28f   :  { %vm2402_vm7 = vc.u32 %v5454_v49, %v5464_v33  ;;  %v2487_v38 = vshll.u32 %v5920_v54, %v2475_v32  ;;  %v2488_v53 = vshrl.u32 %v5908_v60, %v5458_v25  ;;  %v2268_v59 = vadd.s32 127, %v2267_v58 }
 0x290   :  { %v2403_v30 = vadd.s32 1, %v2399_v41  ;;  %v5480_v29 = vor.u32 %v2479_v47, %v2478_v61  ;;  %v5482_v35 = vor.u32 %v2482_v50, %v2481_v24  ;;  %v2400_v14 = vmul.u32 %v5376_v19, %v2346_v39 }
 0x291   :  { %v2489_v13 = vor.u32 %v2488_v53, %v2487_v38  ;;  %v2490_v52 = vshll.u32 %v5908_v60, %v2475_v32  ;;  %vm2493_vm15 = vcmp.lt.s32.totalorder %v5466_v63, 1  ;;  %v5487_v23 = vor.u32 %v2485_v2, %v2484_v51 }
 0x292   :  { %v2404_v36 = vsel %vm2402_vm7, %v2403_v30, %v2399_v41  ;;  %v2491_v54 = vshrl.u32 %v5909_v55, %v5458_v25  ;;  %vm2496_vm6 = vcmp.lt.s32.totalorder %v5466_v63, 4  ;;  %v6037_v62 = vshll.u32 %v5232_v20, %v5354_v9 }
 0x293   :  { %v2263_v19 = vsub.s32 32, %v5444_v0  ;;  %v2405_v31 = vadd.s32 %v2404_v36, %v2400_v14  ;;  %vm2495_vm14 = vcmp.lt.s32.totalorder %v5466_v63, 3  ;;  %vm2494_vm1 = vcmp.lt.s32.totalorder %v5466_v63, 2 }
 0x294   :  { %v2112_v58 = vor.u32 %v5433_v4, %v6037_v62  ;;  %v2492_v60 = vor.u32 %v2491_v54, %v2490_v52  ;;  %v2501_v55 = vsel %vm2493_vm15, %v5480_v29, %v5482_v35  ;;  %v2502_v32 = vsel %vm2496_vm6, %v2489_v13, 920167782 }
 0x295   :  { %v1821_v20 = vadd.f32 0.041655596, %v5422_v56  ;;  %v2117_v9 = vand.u32 2147483647, %v2116_v26  ;;  %v2269_v4 = vshll.u32 %v2268_v59, 23  ;;  %v2406_v1 = vadd.s32 536870912, %v2405_v31 }
 0x296   :  { %v2247_v18 = vadd.s32 %v5263_v44, %v5260_v10  ;;  %v2503_v15 = vsel %vm2495_vm14, %v5487_v23, %v2502_v32  ;;  %v2506_v61 = vsel %vm2496_vm6, %v2492_v60, 1326507024  ;;  %v5513_v24 = vshll.u32 %v2469_v12, 8 }
 0x297   :  { %v2119_v39 = vcvt.s32.f32 %v2112_v58  ;;  %v5515_v51 = vshrl.u32 %v2406_v1, 30  ;;  %v2504_v56 = vsel %vm2494_vm1, %v2501_v55, %v2503_v15  ;;  %v2505_v44 = vsel %vm2493_vm15, %v5482_v35, %v5487_v23 }
 0x298   :  { %v5524_v10 = vadd.f32 1.0, %v5333_v22  ;;  %v1981_v26 = vmul.f32 -0.00019511016, %v5429_v11  ;;  %vm2001_vm12 = vcmp.lt.s32.totalorder %v4866_v17, 0  ;;  %v2265_v41 = vshrl.u32 %v2247_v18, %v2263_v19 }
 0x299   :  { %v2507_v47 = vsel %vm2495_vm14, %v2489_v13, %v2506_v61  ;;  %v2120_v50 = vmul.f32 %v2119_v39, %v2117_v9  ;;  %v2264_v2 = vshll.u32 %v5336_v3, %v5444_v0  ;;  %v2270_v12 = vor.u32 4788187, %v2269_v4 }
 0x29a   :  { %v2408_v38 = vshll.u32 %v5515_v51, 30  ;;  %v2508_v53 = vsel %vm2494_vm1, %v2505_v44, %v2507_v47  ;;  %v2510_v22 = vand.u32 65535, %v5513_v24  ;;  %v2511_v59 = vshrl.u32 %v5513_v24, 16 }
 0x29b   :  { %v2535_v30 = vshrl.u32 %v2504_v56, 16  ;;  %v1684_v14 = vxor.u32 2147483648, %v5411_v46  ;;  %v5539_v52 = vmul.f32 %v1821_v20, %v5403_v5  ;;  %v1828_v13 = vadd.f32 0.008332121, %v5425_v34 }
 0x29c   :  { %v2409_v36 = vsub.s32 %v2405_v31, %v2408_v38  ;;  %v2266_v3 = vor.u32 %v2265_v41, %v2264_v2  ;;  %v2512_v0 = vand.u32 65535, %v2508_v53  ;;  %v2513_v54 = vshrl.u32 %v2508_v53, 16 }
 0x29d   :  { %v2534_v62 = vand.u32 65535, %v2504_v56  ;;  %v1982_v58 = vadd.f32 0.008332121, %v1981_v26  ;;  %v2121_v19 = vxor.u32 2147483648, %v2120_v50  ;;  %v2271_v55 = vand.u32 2147483647, %v2270_v12 }
 0x29e   :  { %vm2410_vm2 = vcmp.lt.s32.totalorder %v2409_v36, 0  ;;  %v2411_v60 = vsub.s32 0, %v2409_v36  ;;  %v2515_v32 = vmul.u32 %v2513_v54, %v2510_v22  ;;  %v2516_v9 = vmul.u32 %v2512_v0, %v2511_v59 }
 0x29f   :  { %v5542_v4 = vmul.u32 %v2535_v30, %v2510_v22  ;;  %v1829_v1 = vmul.f32 %v1828_v13, %v5403_v5  ;;  %v1974_v20 = vmul.f32 -0.001358992, %v5429_v11  ;;  %v2514_v34 = vmul.u32 %v2512_v0, %v2510_v22 }
 0x2a0   :  { %v2412_v18 = vsel %vm2410_vm2, %v2411_v60, %v2409_v36  ;;  %v2273_v31 = vcvt.s32.f32 %v2266_v3  ;;  %v2536_v61 = vmul.u32 %v2534_v62, %v2510_v22  ;;  %v5546_v39 = vmul.u32 %v2534_v62, %v2511_v59 }
 0x2a1   :  { %v2413_v15 = vclz %v2412_v18  ;;  %v1983_v56 = vmul.f32 %v1982_v58, %v5429_v11  ;;  %v2122_v44 = vsel %vm2001_vm12, %v2121_v19, %v2120_v50  ;;  %v2517_v26 = vmul.u32 %v2513_v54, %v2511_v59 }
 0x2a2   :  { %v2518_v41 = vshll.u32 %v2515_v32, 16  ;;  %v2274_v47 = vmul.f32 %v2273_v31, %v2271_v55  ;;  %v2520_v12 = vshll.u32 %v2516_v9, 16  ;;  %v2540_v38 = vshll.u32 %v5542_v4, 16 }
 0x2a3   :  { %v2732_v2 = vadd.s32 4294967294, %v2413_v15  ;;  %v2519_v53 = vshrl.u32 %v2515_v32, 16  ;;  %v2539_v3 = vmul.u32 %v2535_v30, %v2511_v59  ;;  %v6038_v22 = vand.u32 2147483647, %v4866_v17 }
 0x2a4   :  { %vm2522_vm10 = vc.u32 %v2514_v34, %v2518_v41  ;;  %v2524_v13 = vadd.s32 %v2518_v41, %v2514_v34  ;;  %v2542_v54 = vshll.u32 %v5546_v39, 16  ;;  %vm2544_vm3 = vc.u32 %v2536_v61, %v2540_v38 }
 0x2a5   :  { %vm5554_vm5 = vcmp.le.f32.partialorder %v6038_v22, 0.7853982  ;;  %vm2733_vm0 = vcmp.lt.s32.totalorder %v2732_v2, 0  ;;  %v2523_v50 = vsel %vm2522_vm10, 1, %v5923_v7  ;;  %vm2155_vm11 = vcmp.lt.s32.totalorder %v4959_v43, 0 }
 0x2a6   :  { %v2416_v62 = vsel %vm2733_vm0, 0, %v2732_v2  ;;  %v2525_v58 = vadd.s32 %v2523_v50, %v2517_v26  ;;  %vm2526_vm13 = vc.u32 %v2524_v13, %v2520_v12  ;;  %v2545_v19 = vsel %vm2544_vm3, 1, %v5923_v7 }
 0x2a7   :  { %v2401_v59 = vadd.s32 %v5464_v33, %v5454_v49  ;;  %v2417_v30 = vsub.s32 32, %v2416_v62  ;;  %v2421_v60 = vsub.s32 4294967266, %v2416_v62  ;;  %v2527_v55 = vsel %vm2526_vm13, 1, %v5923_v7 }
 0x2a8   :  { %v2275_v32 = vxor.u32 2147483648, %v2274_v47  ;;  %v2529_v18 = vadd.s32 %v2527_v55, %v2525_v58  ;;  %v2546_v34 = vadd.s32 %v2540_v38, %v2536_v61  ;;  %v2547_v31 = vadd.s32 %v2545_v19, %v2539_v3 }
 0x2a9   :  { %v2418_v15 = vshll.u32 %v2409_v36, %v2416_v62  ;;  %v2419_v41 = vshrl.u32 %v2401_v59, %v2417_v30  ;;  %v2422_v22 = vadd.s32 127, %v2421_v60  ;;  %v2477_v26 = vshrl.u32 %v5913_v37, %v5458_v25 }
 0x2aa   :  { %vm1683_vm7 = vcmp.eq.s32.totalorder %v5293_v16, 0  ;;  %v2498_v49 = vsel %vm2496_vm6, %v5487_v23, 2102212464  ;;  %v2530_v33 = vadd.s32 %v2529_v18, %v2519_v53  ;;  %v2541_v2 = vshrl.u32 %v5542_v4, 16 }
 0x2ab   :  { %vm2548_vm2 = vc.u32 %v2546_v34, %v2542_v54  ;;  %v2420_v12 = vor.u32 %v2419_v41, %v2418_v15  ;;  %v2423_v13 = vshll.u32 %v2422_v22, 23  ;;  %v2521_v61 = vshrl.u32 %v2516_v9, 16 }
 0x2ac   :  { %v2549_v36 = vsel %vm2548_vm2, 1, %v5923_v7  ;;  %v1830_v38 = vadd.f32 -0.16666654, %v1829_v1  ;;  %v1969_v3 = vsub.s32 4, %v5052_v6  ;;  %v1975_v50 = vadd.f32 0.041655596, %v1974_v20 }
 0x2ad   :  { %v2551_v37 = vadd.s32 %v2549_v36, %v2547_v31  ;;  %vm1526_vm10 = vweird.f32 %v6004_v27  ;;  %v2424_v25 = vor.u32 4788187, %v2423_v13  ;;  %v2497_v23 = vsel %vm2493_vm15, %v2477_v26, %v5480_v29  ;;  %v6045_v36 = vld [vmem:[#allocation16_spill] sm:$0xff] }
 0x2ae   :  { %v2499_v4 = vsel %vm2495_vm14, %v5482_v35, %v2498_v49  ;;  %v5581_v53 = vadd.s32 %v2530_v33, %v2521_v61  ;;  %vm1686_vm6 = vcmp.eq.s32.totalorder %v5293_v16, 2  ;;  %v1984_v7 = vadd.f32 -0.16666654, %v1983_v56 }
 0x2af   :  { %v5587_v9 = vsel %vm5554_vm5, %v4866_v17, %v2122_v44  ;;  %v2543_v1 = vshrl.u32 %v5546_v39, 16  ;;  %v2552_v20 = vadd.s32 %v2551_v37, %v2541_v2  ;;  %vm1682_vm0 = vcmp.lt.s32.totalorder %v5293_v16, 2 }
 0x2b0   :  { %v2276_v29 = vsel %vm2155_vm11, %v2275_v32, %v2274_v47  ;;  %v2425_v62 = vand.u32 2147483647, %v2424_v25  ;;  %v2427_v35 = vcvt.s32.f32 %v2420_v12  ;;  %v5593_v58 = vadd.s32 %v2546_v34, %v2542_v54  ;;  %v6049_v25 = vld [vmem:[#allocation21_spill] sm:$0xff] }
 0x2b1   :  { %v1831_v19 = vmul.f32 %v1830_v38, %v5403_v5  ;;  %v1976_v56 = vmul.f32 %v1975_v50, %v5429_v11  ;;  %v2500_v44 = vsel %vm2494_vm1, %v2497_v23, %v2499_v4  ;;  %v2553_v59 = vadd.s32 %v2552_v20, %v2543_v1  ;;  %v6050_v4 = vld [vmem:[#allocation11_spill] sm:$0xff] }
 0x2b2   :  { %v5601_v39 = vmul.f32 %v5587_v9, %v5587_v9  ;;  %v6041_v30 = vand.u32 2147483647, %v4959_v43  ;;  %v2428_v54 = vmul.f32 %v2427_v35, %v2425_v62  ;;  %vm2556_vm14 = vc.u32 %v5581_v53, %v5593_v58 }
 0x2b3   :  { %v1823_v60 = vadd.f32 -0.4999988, %v5539_v52  ;;  %v1985_v63 = vmul.f32 %v1984_v7, %v5429_v11  ;;  %v2557_v32 = vadd.s32 1, %v2553_v59  ;;  %v1685_v18 = vsel %vm1683_vm7, %v5524_v10, %v1684_v14 }
 0x2b4   :  { %vm5605_vm15 = vcmp.le.f32.partialorder %v6041_v30, 0.7853982  ;;  %v1687_v34 = vxor.u32 2147483648, %v5524_v10  ;;  %v2429_v31 = vxor.u32 2147483648, %v2428_v54  ;;  %v2554_v15 = vmul.u32 %v5513_v24, %v2500_v44 }
 0x2b5   :  { %v5616_v55 = vsel %vm5605_vm15, %v4959_v43, %v2276_v29  ;;  %vm1680_vm1 = vweird.f32 %v6015_v28  ;;  %v1832_v52 = vadd.f32 1.0, %v1831_v19  ;;  %v1970_v41 = vsel %vm1847_vm4, %v1969_v3, %v5052_v6 }
 0x2b6   :  { %v1977_v22 = vadd.f32 -0.4999988, %v1976_v56  ;;  %v2558_v26 = vsel %vm2556_vm14, %v2557_v32, %v2553_v59  ;;  %v2135_v49 = vmul.f32 -0.00019511016, %v5601_v39  ;;  %v5632_v33 = vmul.f32 %v5616_v55, %v5616_v55 }
 0x2b7   :  { %vm2309_vm3 = vcmp.lt.s32.totalorder %v5234_v21, 0  ;;  %v2559_v10 = vadd.s32 %v2558_v26, %v2554_v15  ;;  %v5638_v24 = vsel %vm1526_vm10, nan, %v5330_v40  ;;  %v1824_v14 = vmul.f32 %v1823_v60, %v5403_v5  ;;  %v6051_v26 = vld [vmem:[#allocation15_spill] sm:$0xff] }
 0x2b8   :  { %v1986_v2 = vadd.f32 1.0, %v1985_v63  ;;  %v2430_v6 = vsel %vm2309_vm3, %v2429_v31, %v2428_v54  ;;  %v1688_v12 = vsel %vm1686_vm6, %v1687_v34, %v5411_v46  ;;  %v6044_v13 = vsel %vm5300_vm9, 0, %v5345_v57 }
 0x2b9   :  { %v1835_v61 = vand.u32 3, %v6044_v13  ;;  %v1972_v27 = vsel %vm5349_vm8, 0, %v1970_v41  ;;  %v2560_v40 = vadd.s32 536870912, %v2559_v10  ;;  %v1689_v5 = vsel %vm1682_vm0, %v1685_v18, %v1688_v12 }
 0x2ba   :  { %v1833_v38 = vmul.f32 %v1832_v52, %v6045_v36  ;;  %v1978_v3 = vmul.f32 %v1977_v22, %v5429_v11  ;;  %v6046_v50 = vand.u32 2147483647, %v5234_v21  ;;  %v2136_v8 = vadd.f32 0.008332121, %v2135_v49 }
 0x2bb   :  { %v2289_v57 = vmul.f32 -0.00019511016, %v5632_v33  ;;  %v5668_v16 = vshrl.u32 %v2560_v40, 30  ;;  %v1825_v37 = vadd.f32 1.0, %v1824_v14  ;;  %v1987_v23 = vmul.f32 %v1986_v2, %v6049_v25  ;;  %v6052_v14 = vld [vmem:[#allocation12_spill] sm:$0xff] }
 0x2bc   :  { %vm5658_vm4 = vcmp.le.f32.partialorder %v6046_v50, 0.7853982  ;;  %v1989_v11 = vand.u32 3, %v1972_v27  ;;  %v2123_v7 = vsub.s32 4, %v6050_v4  ;;  %vm1836_vm9 = vcmp.lt.s32.totalorder %v1835_v61, 2 }
 0x2bd   :  { %v5666_v42 = vsel %vm5658_vm4, %v5234_v21, %v2430_v6  ;;  %vm1837_vm8 = vcmp.eq.s32.totalorder %v1835_v61, 0  ;;  %v2128_v1 = vmul.f32 -0.001358992, %v5601_v39  ;;  %v2562_v20 = vshll.u32 %v5668_v16, 30 }
 0x2be   :  { %v1838_v29 = vxor.u32 2147483648, %v1833_v38  ;;  %vm1840_vm13 = vcmp.eq.s32.totalorder %v1835_v61, 2  ;;  %v1979_v62 = vadd.f32 1.0, %v1978_v3  ;;  %v5676_v35 = vmul.f32 %v5666_v42, %v5666_v42 }
 0x2bf   :  { %v5680_v19 = vsel %vm1680_vm1, nan, %v1689_v5  ;;  %v2137_v56 = vmul.f32 %v2136_v8, %v5601_v39  ;;  %v2290_v44 = vadd.f32 0.008332121, %v2289_v57  ;;  %v2563_v59 = vsub.s32 %v2559_v10, %v2562_v20  ;;  %v6053_v57 = vld [vmem:[#allocation17_spill] sm:$0xff] }
 0x2c0   :  { %v1841_v30 = vxor.u32 2147483648, %v1825_v37  ;;  %vm1990_vm7 = vcmp.lt.s32.totalorder %v1989_v11, 2  ;;  %v1992_v54 = vxor.u32 2147483648, %v1987_v23  ;;  %v2124_v60 = vsel %vm2001_vm12, %v2123_v7, %v6050_v4 }
 0x2c1   :  { %v2129_v63 = vadd.f32 0.041655596, %v2128_v1  ;;  %v2282_v32 = vmul.f32 -0.001358992, %v5632_v33  ;;  %vm2564_vm2 = vcmp.lt.s32.totalorder %v2563_v59, 0  ;;  %v2565_v18 = vsub.s32 0, %v2563_v59 }
 0x2c2   :  { %v1839_v28 = vsel %vm1837_vm8, %v1825_v37, %v1838_v29  ;;  %vm1991_vm10 = vcmp.eq.s32.totalorder %v1989_v11, 0  ;;  %v1995_v34 = vxor.u32 2147483648, %v1979_v62  ;;  %v2443_v31 = vmul.f32 -0.00019511016, %v5676_v35  ;;  %v6054_v29 = vld [vmem:[#allocation18_spill] sm:$0xff] }
 0x2c3   :  { %v2126_v15 = vsel %vm5554_vm5, 0, %v2124_v60  ;;  %v2138_v52 = vadd.f32 -0.16666654, %v2137_v56  ;;  %v2291_v41 = vmul.f32 %v2290_v44, %v5632_v33  ;;  %v2566_v22 = vsel %vm2564_vm2, %v2565_v18, %v2563_v59 }
 0x2c4   :  { %vm1834_vm12 = vweird.f32 %v6051_v26  ;;  %v1842_v49 = vsel %vm1840_vm13, %v1841_v30, %v1833_v38  ;;  %v1993_v10 = vsel %vm1991_vm10, %v1979_v62, %v1992_v54  ;;  %v2277_v2 = vsub.s32 4, %v6052_v14  ;;  %v6055_v54 = vld [vmem:[#allocation8_spill] sm:$0xff] }
 0x2c5   :  { %v2567_v6 = vclz %v2566_v22  ;;  %v1843_v12 = vsel %vm1836_vm9, %v1839_v28, %v1842_v49  ;;  %vm1994_vm6 = vcmp.eq.s32.totalorder %v1989_v11, 2  ;;  %v2130_v13 = vmul.f32 %v2129_v63, %v5601_v39  ;;  %v6056_v22 = vld [vmem:[#allocation5_spill] sm:$0xff] }
 0x2c6   :  { %v2283_v27 = vadd.f32 0.041655596, %v2282_v32  ;;  %vm1988_vm5 = vweird.f32 %v6030_v48  ;;  %v1996_v0 = vsel %vm1994_vm6, %v1995_v34, %v1987_v23  ;;  %v5698_v40 = vand.u32 3, %v2126_v15 }
 0x2c7   :  { %v2444_v5 = vadd.f32 0.008332121, %v2443_v31  ;;  %v2735_v36 = vadd.s32 4294967294, %v2567_v6  ;;  %v1997_v3 = vsel %vm1990_vm7, %v1993_v10, %v1996_v0  ;;  %v2139_v38 = vmul.f32 %v2138_v52, %v5601_v39 }
 0x2c8   :  { %v2292_v50 = vadd.f32 -0.16666654, %v2291_v41  ;;  %vm2615_vm0 = vcmask 64512   ;;  %v2278_v61 = vsel %vm2155_vm11, %v2277_v2, %v6052_v14  ;;  %v2436_v8 = vmul.f32 -0.001358992, %v5676_v35 }
 0x2c9   :  { %vm2736_vm14 = vcmp.lt.s32.totalorder %v2735_v36, 0  ;;  %v2617_v37 = vsel %vm2615_vm0, %v6053_v57, 0.0  ;;  %v2131_v25 = vadd.f32 -0.4999988, %v2130_v13  ;;  %v2284_v23 = vmul.f32 %v2283_v27, %v5632_v33 }
 0x2ca   :  { %v2555_v11 = vadd.s32 %v5593_v58, %v5581_v53  ;;  %v2570_v4 = vsel %vm2736_vm14, 0, %v2735_v36  ;;  %v2445_v7 = vmul.f32 %v2444_v5, %v5676_v35  ;;  %v2616_v62 = vsel %vm2615_vm0, %v6054_v29, 0.0 }
 0x2cb   :  { %v2571_v1 = vsub.s32 32, %v2570_v4  ;;  %v2575_v20 = vsub.s32 4294967266, %v2570_v4  ;;  %v2140_v56 = vadd.f32 1.0, %v2139_v38  ;;  %v2293_v44 = vmul.f32 %v2292_v50, %v5632_v33 }
 0x2cc   :  { %v2618_v30 = vadd.f32 %v2617_v37, %v2616_v62  ;;  %v2619_v60 = vsel %vm2615_vm0, %v6055_v54, 0.0  ;;  %v2437_v63 = vadd.f32 0.041655596, %v2436_v8  ;;  %v2572_v32 = vshll.u32 %v2563_v59, %v2570_v4  ;;  %v6063_v62 = vld [vmem:[#allocation10_spill] sm:$0xff] }
 0x2cd   :  { %v2573_v18 = vshrl.u32 %v2555_v11, %v2571_v1  ;;  %v2576_v28 = vadd.s32 127, %v2575_v20  ;;  %v5719_v53 = vsel %vm1834_vm12, nan, %v1843_v12  ;;  %v2132_v58 = vmul.f32 %v2131_v25, %v5601_v39  ;;  %v6057_v12 = vld [vmem:[#allocation9_spill] sm:$0xff] }
 0x2ce   :  { %v2285_v34 = vadd.f32 -0.4999988, %v2284_v23  ;;  %v2620_v31 = vadd.f32 %v2619_v60, %v2618_v30  ;;  %v2446_v15 = vadd.f32 -0.16666654, %v2445_v7  ;;  %v2621_v49 = vsel %vm2615_vm0, %v6056_v22, 0.0 }
 0x2cf   :  { %v2574_v52 = vor.u32 %v2573_v18, %v2572_v32  ;;  %v2577_v41 = vshll.u32 %v2576_v28, 23  ;;  %v5726_v10 = vsel %vm1988_vm5, nan, %v1997_v3  ;;  %vm2145_vm11 = vcmp.eq.s32.totalorder %v5698_v40, 0  ;;  %v6058_v3 = vld [vmem:[#allocation14_spill] sm:$0xff] }
 0x2d0   :  { %v2280_v59 = vsel %vm5605_vm15, 0, %v2278_v61  ;;  %v2294_v26 = vadd.f32 1.0, %v2293_v44  ;;  %v2622_v14 = vadd.f32 %v2621_v49, %v2620_v31  ;;  %v2141_v39 = vmul.f32 %v2140_v56, %v5587_v9 }
 0x2d1   :  { %v2438_v2 = vmul.f32 %v2437_v63, %v5676_v35  ;;  %v2578_v6 = vor.u32 4788187, %v2577_v41  ;;  %v2623_v13 = vsel %vm2615_vm0, %v6057_v12, 0.0  ;;  %v2133_v27 = vadd.f32 1.0, %v2132_v58 }
 0x2d2   :  { %vm2148_vm1 = vcmp.eq.s32.totalorder %v5698_v40, 2  ;;  %v2286_v48 = vmul.f32 %v2285_v34, %v5632_v33  ;;  %v2624_v0 = vadd.f32 %v2623_v13, %v2622_v14  ;;  %vm2144_vm9 = vcmp.lt.s32.totalorder %v5698_v40, 2  ;;  %v6059_v33 = vld [vmem:[#allocation13_spill] sm:$0xff] }
 0x2d3   :  { %v2447_v47 = vmul.f32 %v2446_v15, %v5676_v35  ;;  %v2579_v5 = vand.u32 2147483647, %v2578_v6  ;;  %v2581_v36 = vcvt.s32.f32 %v2574_v52  ;;  %v2625_v9 = vsel %vm2615_vm0, %v6058_v3, 0.0 }
 0x2d4   :  { %v2295_v38 = vmul.f32 %v2294_v26, %v5616_v55  ;;  %v2297_v50 = vand.u32 3, %v2280_v59  ;;  %v2431_v61 = vsub.s32 4, %v5515_v51  ;;  %v2626_v8 = vadd.f32 %v2625_v9, %v2624_v0 }
 0x2d5   :  { %v2146_v57 = vxor.u32 2147483648, %v2141_v39  ;;  %v2439_v37 = vadd.f32 -0.4999988, %v2438_v2  ;;  %v2582_v25 = vmul.f32 %v2581_v36, %v2579_v5  ;;  %v2627_v23 = vsel %vm2615_vm0, %v6059_v33, 0.0 }
 0x2d6   :  { %v2149_v11 = vxor.u32 2147483648, %v2133_v27  ;;  %v2287_v4 = vadd.f32 1.0, %v2286_v48  ;;  %vm2463_vm15 = vcmp.lt.s32.totalorder %v5338_v45, 0  ;;  %v2628_v7 = vadd.f32 %v2627_v23, %v2626_v8 }
 0x2d7   :  { %vm2142_vm8 = vweird.f32 %v4866_v17  ;;  %v2448_v1 = vadd.f32 1.0, %v2447_v47  ;;  %v6060_v55 = vand.u32 2147483647, %v5338_v45  ;;  %v2583_v29 = vxor.u32 2147483648, %v2582_v25 }
 0x2d8   :  { %v2629_v56 = vsel %vm2615_vm0, %v6063_v62, 0.0  ;;  %vm2299_vm7 = vcmp.eq.s32.totalorder %v2297_v50, 0  ;;  %v2300_v44 = vxor.u32 2147483648, %v2295_v38  ;;  %v2432_v30 = vsel %vm2309_vm3, %v2431_v61, %v5515_v51 }
 0x2d9   :  { %vm5749_vm13 = vcmp.le.f32.partialorder %v6060_v55, 0.7853982  ;;  %v2630_v54 = vadd.f32 %v2629_v56, %v2628_v7  ;;  %v2147_v60 = vsel %vm2145_vm11, %v2133_v27, %v2146_v57  ;;  %v2440_v63 = vmul.f32 %v2439_v37, %v5676_v35 }
 0x2da   :  { %v2584_v32 = vsel %vm2463_vm15, %v2583_v29, %v2582_v25  ;;  %v2631_v18 = vsel %vm2615_vm0, %v5638_v24, 0.0  ;;  %v2150_v28 = vsel %vm2148_vm1, %v2149_v11, %v2141_v39  ;;  %v2303_v58 = vxor.u32 2147483648, %v2287_v4 }
 0x2db   :  { %v2587_v51 = vsel %vm5749_vm13, %v5338_v45, %v2584_v32  ;;  %v2632_v34 = vadd.f32 %v2631_v18, %v2630_v54  ;;  %v2434_v31 = vsel %vm5658_vm4, 0, %v2432_v30  ;;  %v2449_v35 = vmul.f32 %v2448_v1, %v5666_v42 }
 0x2dc   :  { %v2589_v15 = vmul.f32 %v2587_v51, %v2587_v51  ;;  %v2633_v52 = vsel %vm2615_vm0, %v5680_v19, 0.0  ;;  %v2151_v24 = vsel %vm2144_vm9, %v2147_v60, %v2150_v28  ;;  %v2301_v41 = vsel %vm2299_vm7, %v2287_v4, %v2300_v44 }
 0x2dd   :  { %v2585_v22 = vsub.s32 4, %v5668_v16  ;;  %v2634_v49 = vadd.f32 %v2633_v52, %v2632_v34  ;;  %v2441_v59 = vadd.f32 1.0, %v2440_v63  ;;  %v2635_v46 = vsel %vm2615_vm0, %v5719_v53, 0.0 }
 0x2de   :  { %v2590_v26 = vmul.f32 -0.001358992, %v2589_v15  ;;  %v2597_v14 = vmul.f32 -0.00019511016, %v2589_v15  ;;  %vm2298_vm3 = vcmp.lt.s32.totalorder %v2297_v50, 2  ;;  %vm2302_vm4 = vcmp.eq.s32.totalorder %v2297_v50, 2 }
 0x2df   :  { %v2451_v42 = vand.u32 3, %v2434_v31  ;;  %v2636_v39 = vadd.f32 %v2635_v46, %v2634_v49  ;;  %v2304_v2 = vsel %vm2302_vm4, %v2303_v58, %v2295_v38  ;;  %v2454_v19 = vxor.u32 2147483648, %v2449_v35 }
 0x2e0   :  { %v2591_v6 = vadd.f32 0.041655596, %v2590_v26  ;;  %v2598_v40 = vadd.f32 0.008332121, %v2597_v14  ;;  %v2152_v12 = vsel %vm2142_vm8, nan, %v2151_v24  ;;  %v2305_v13 = vsel %vm2298_vm3, %v2301_v41, %v2304_v2 }
 0x2e1   :  { %v2586_v27 = vsel %vm2463_vm15, %v2585_v22, %v5668_v16  ;;  %v2637_v48 = vsel %vm2615_vm0, %v5726_v10, 0.0  ;;  %v2457_v53 = vxor.u32 2147483648, %v2441_v59  ;;  %vm2296_vm2 = vweird.f32 %v4959_v43 }
 0x2e2   :  { %v2592_v0 = vmul.f32 %v2591_v6, %v2589_v15  ;;  %v2599_v47 = vmul.f32 %v2598_v40, %v2589_v15  ;;  %v2638_v5 = vadd.f32 %v2637_v48, %v2636_v39  ;;  %vm2453_vm10 = vcmp.eq.s32.totalorder %v2451_v42, 0 }
 0x2e3   :  { %vm2452_vm12 = vcmp.lt.s32.totalorder %v2451_v42, 2  ;;  %v2455_v36 = vsel %vm2453_vm10, %v2441_v59, %v2454_v19  ;;  %v2306_v9 = vsel %vm2296_vm2, nan, %v2305_v13  ;;  %vm2456_vm6 = vcmp.eq.s32.totalorder %v2451_v42, 2 }
 0x2e4   :  { %v2593_v3 = vadd.f32 -0.4999988, %v2592_v0  ;;  %v2600_v17 = vadd.f32 -0.16666654, %v2599_v47  ;;  %v2588_v38 = vsel %vm5749_vm13, 0, %v2586_v27  ;;  %v2639_v16 = vsel %vm2615_vm0, %v2152_v12, 0.0 }
 0x2e5   :  { %v2458_v50 = vsel %vm2456_vm6, %v2457_v53, %v2449_v35  ;;  %v2640_v8 = vadd.f32 %v2639_v16, %v2638_v5  ;;  %vm2450_vm5 = vweird.f32 %v5234_v21  ;;  %v2605_v43 = vand.u32 3, %v2588_v38 }
 0x2e6   :  { %v2594_v10 = vmul.f32 %v2593_v3, %v2589_v15  ;;  %v2601_v61 = vmul.f32 %v2600_v17, %v2589_v15  ;;  %v2459_v57 = vsel %vm2452_vm12, %v2455_v36, %v2458_v50  ;;  %v2641_v33 = vsel %vm2615_vm0, %v2306_v9, 0.0 }
 0x2e7   :  { %v2460_v23 = vsel %vm2450_vm5, nan, %v2459_v57  ;;  %v2642_v7 = vadd.f32 %v2641_v33, %v2640_v8  ;;  %vm2607_vm14 = vcmp.eq.s32.totalorder %v2605_v43, 0  ;;  %vm2610_vm11 = vcmp.eq.s32.totalorder %v2605_v43, 2 }
 0x2e8   :  { %v2595_v37 = vadd.f32 1.0, %v2594_v10  ;;  %v2602_v25 = vadd.f32 1.0, %v2601_v61  ;;  %v2643_v55 = vsel %vm2615_vm0, %v2460_v23, 0.0  ;;  %vm2606_vm1 = vcmp.lt.s32.totalorder %v2605_v43, 2 }
 0x2e9   :  { %v2644_v62 = vadd.f32 %v2643_v55, %v2642_v7  ;;  %vm2604_vm9 = vweird.f32 %v5338_v45  ;;  %vm2654_vm15 = vcmask 57344  }
 0x2ea   :  { %v2603_v11 = vmul.f32 %v2602_v25, %v2587_v51  ;;  %v2611_v4 = vxor.u32 2147483648, %v2595_v37 }
 0x2ec   :  { %v2608_v1 = vxor.u32 2147483648, %v2603_v11  ;;  %v2612_v29 = vsel %vm2610_vm11, %v2611_v4, %v2603_v11 }
 0x2ee   :  { %v2609_v20 = vsel %vm2607_vm14, %v2595_v37, %v2608_v1 }
 0x2ef   :  { %v2613_v56 = vsel %vm2606_vm1, %v2609_v20, %v2612_v29 }
 0x2f0   :  { %v2614_v21 = vsel %vm2604_vm9, nan, %v2613_v56 }
 0x2f1   :  { %v2645_v44 = vsel %vm2615_vm0, %v2614_v21, 0.0 }
 0x2f2   :  { %v2646_v30 = vadd.f32 %v2645_v44, %v2644_v62 }
 0x2f4   :  { %v2647_v54 = vrot.slane %v2646_v30, 4 }
 0x2f6   :  { %v2648_v60 = vadd.f32 %v2647_v54, %v2646_v30 }
 0x2f8   :  { %v2649_v63 = vrot.slane %v2648_v60, 2 }
 0x2fa   :  { %v2650_v32 = vadd.f32 %v2649_v63, %v2648_v60 }
 0x2fc   :  { %v2651_v18 = vrot.slane %v2650_v32, 1 }
 0x2fe   :  { %v2652_v28 = vadd.f32 %v2651_v18, %v2650_v32 }
 0x300   :  { %v2653_v58 = vmul.f32 0.015625, %v2652_v28 }
 0x302   :  { %2655 = vst.msk [vmem:[#allocation2] sm:$0x1] %vm2654_vm15, %v2653_v58 }
 0x303   :  { %2666 = dma.vmem_to_hbm [thread:$0]  %s2662_s19, 16, %s2664_s1, [#allocation3]  }
 0x304   :  { %2772 = dma.done.wait [#allocation3], 16  }
 0x305   :  { %2773 = vsyncadd [#allocation3], 4294967280 }
 0x306   :  { %2671 = vsyncpa [#allocation3], 1 }

</bundles_post_ra>
